<compile_context>
chip_gen: v5e
topology: v5e:2x2
jax: 0.10.0
libtpu: 0.0.40
codegen_flags: <defaults>
</compile_context>

<pallas_src>
import functools

import jax
import jax.numpy as jnp
from jax.experimental import pallas as pl
from jax.experimental.pallas import tpu as pltpu


def autopad(k, p=None):
    if p is None:
        p = k // 2 if isinstance(k, int) else [x // 2 for x in k]
    return p


def _ceil_to(x, m):
    return -(-x // m) * m


def _vmem_est(lead, sub, lane, itemsize):
    """Conservative VMEM bytes of a (lead, sub, lane) array in tiled layout
    (last dim padded to 128 lanes, second-last to the sublane tile)."""
    sub_tile = 8 * (4 // itemsize)          # 8 for f32, 16 for bf16
    return lead * _ceil_to(max(sub, 1), sub_tile) * _ceil_to(max(lane, 1), 128) * itemsize


# ---------------------------------------------------------------------------
# Pallas kernel: implicit-GEMM conv tile + folded BN + SiLU
# ---------------------------------------------------------------------------
def _make_kernel(k, s, TH, Wo, C1, TN, resident):
    def kernel(x_ref, w_ref, sc_ref, bi_ref, o_ref):
        # x_ref : resident -> (Hp, Wp, C1) bf16 whole padded image
        #         gathered -> (TH_in, Wp, C1) bf16 tile incl. (k-1)*? halo rows
        # w_ref : (k, k*C1, TN) bf16   conv weight, (kh, kw*cin, cout-tile)
        # sc_ref: (1, TN)       f32   folded BN scale = gamma / sqrt(var+eps)
        # bi_ref: (1, TN)       f32   folded BN bias  = beta - mean * scale
        # o_ref : (TH*Wo, TN)   f32   output tile, channel-last, lane-dense
        if resident:
            row0 = pl.program_id(1) * (TH * s)   # first padded input row of tile
        else:
            row0 = 0

        acc = jnp.zeros((TH * Wo, TN), jnp.float32)
        for kh in range(k):
            parts = []
            for kw in range(k):
                if s == 1:
                    if resident:
                        xs = x_ref[pl.ds(row0 + kh, TH), kw:kw + Wo, :]
                    else:
                        xs = x_ref[kh:kh + TH, kw:kw + Wo, :]
                else:
                    # TODO(synk): strided (s>1) slice path is less exercised
                    # than the s==1 contiguous path.
                    xs = x_ref[pl.ds(row0 + kh, TH, s), pl.ds(kw, Wo, s), :]
                parts.append(xs)
            # fold kw into the contraction dim: (TH, Wo, k*C1)
            xcat = parts[0] if k == 1 else jnp.concatenate(parts, axis=-1)
            xmat = xcat.reshape(TH * Wo, k * C1)
            acc = acc + jnp.dot(xmat, w_ref[kh],
                                preferred_element_type=jnp.float32)

        y = acc * sc_ref[...] + bi_ref[...]                       # folded BN (f32)
        o_ref[...] = (y * jax.nn.sigmoid(y)).astype(o_ref.dtype)  # SiLU
    return kernel


# ---------------------------------------------------------------------------
# Host wrapper
# ---------------------------------------------------------------------------
@functools.partial(jax.jit, static_argnames=("k", "s", "p"))
def conv_bn_silu(x, weight, gamma, beta, running_mean, running_var,
                 *, k=1, s=1, p=None, eps=1e-5):
    """x: (N, C1, H, W) f32.  weight: (C2, C1, k, k).  Returns (N, C2, Ho, Wo) f32."""
    pad = autopad(k, p)
    N, C1, H, W = x.shape
    C2 = weight.shape[0]
    Ho = (H + 2 * pad - k) // s + 1
    Wo = (W + 2 * pad - k) // s + 1
    Wp = W + 2 * pad

    # ---- lane-dense output channels + C2 tiling -----------------------------
    C2p = _ceil_to(C2, 128)
    TN = 256 if (C2p % 256 == 0) else 128     # 256-wide N tile when it divides
    J = C2p // TN

    VMEM_LIMIT = 48 * 1024 * 1024             # below v7x 64 MiB physical
    VMEM_BUDGET = 36 * 1024 * 1024            # headroom for pipeline overheads

    # ---- output-row tiling: ~512 GEMM rows keeps the f32 acc mostly in vregs
    ROW_TARGET = 512
    TH = max(1, min(Ho, max(1, ROW_TARGET // max(Wo, 1))))

    def tile_stats(th):
        t = -(-Ho // th)
        ho_pad = t * th
        th_in = (th - 1) * s + k
        hp_need = (ho_pad - 1) * s + k
        return t, ho_pad, th_in, hp_need

    def fixed_bytes(th):
        w_b = 2 * _vmem_est(k, k * C1, TN, 2)          # weight, double-buffered
        o_b = 2 * _vmem_est(1, th * Wo, TN, 4)         # out tile, double-buffered
        acc_b = th * Wo * TN * 4                       # live f32 accumulator
        bn_b = 4 * _vmem_est(1, 1, TN, 4)              # scale/bias
        return w_b + o_b + acc_b + bn_b

    T, Ho_pad, TH_in, Hp_need = tile_stats(TH)
    Hp = max(H + 2 * pad, Hp_need)

    # prefer keeping the whole padded image resident in VMEM (no host gather)
    resident = (2 * _vmem_est(Hp, Wp, C1, 2) + fixed_bytes(TH)) <= VMEM_BUDGET
    if not resident:
        while TH > 1 and (2 * _vmem_est(tile_stats(TH)[2], Wp, C1, 2)
                          + fixed_bytes(TH)) > VMEM_BUDGET:
            TH = max(1, TH // 2)
        T, Ho_pad, TH_in, Hp_need = tile_stats(TH)
        Hp = max(H + 2 * pad, Hp_need)

    # ---- NHWC + spatial zero-pad (~1x input bytes, no im2col) ---------------
    x_nhwc = jnp.transpose(x, (0, 2, 3, 1)).astype(jnp.bfloat16)
    extra_h = Hp - (H + 2 * pad)
    x_p = jnp.pad(x_nhwc, ((0, 0), (pad, pad + extra_h), (pad, pad), (0, 0)))

    # ---- weight (C2, C1, kh, kw) -> (kh, kw*C1, C2p) bf16 for the MXU -------
    w_t = jnp.transpose(weight, (2, 3, 1, 0)).astype(jnp.bfloat16)   # (kh,kw,C1,C2)
    if C2p != C2:
        w_t = jnp.pad(w_t, ((0, 0), (0, 0), (0, 0), (0, C2p - C2)))
    w_flat = w_t.reshape(k, k * C1, C2p)

    # ---- folded eval-mode BatchNorm (padded columns -> identity/zero) -------
    bn_scale = (gamma / jnp.sqrt(running_var + eps)).astype(jnp.float32)
    bn_bias = (beta - running_mean * bn_scale).astype(jnp.float32)
    if C2p != C2:
        bn_scale = jnp.pad(bn_scale, (0, C2p - C2), constant_values=1.0)
        bn_bias = jnp.pad(bn_bias, (0, C2p - C2))
    sc = bn_scale.reshape(1, C2p)
    bi = bn_bias.reshape(1, C2p)

    kernel = _make_kernel(k, s, TH, Wo, C1, TN, resident)

    if resident:
        # whole padded image per batch element stays resident across (t, j)
        x_in = x_p                                            # (N, Hp, Wp, C1)
        x_spec = pl.BlockSpec((None, Hp, Wp, C1), lambda n, t, j: (n, 0, 0, 0))
    else:
        # fallback for very large images: gather overlapping row windows on
        # the host (only (k-1)*? halo rows duplicated).
        # TODO(synk): replace with in-kernel pltpu.make_async_copy of
        #             overlapping row windows from HBM (memory_space=pl.ANY).
        if T == 1:
            x_in = x_p[:, None, :TH_in]                       # (N,1,TH_in,Wp,C1)
        else:
            row_idx = (jnp.arange(T)[:, None] * (TH * s)
                       + jnp.arange(TH_in)[None, :])          # (T, TH_in)
            x_in = x_p[:, row_idx]                            # (N,T,TH_in,Wp,C1)
        x_spec = pl.BlockSpec((None, None, TH_in, Wp, C1),
                              lambda n, t, j: (n, t, 0, 0, 0))

    out_t = pl.pallas_call(
        kernel,
        out_shape=jax.ShapeDtypeStruct((N, T, TH * Wo, C2p), jnp.float32),
        grid_spec=pltpu.PrefetchScalarGridSpec(
            num_scalar_prefetch=0,
            grid=(N, T, J),
            in_specs=[
                x_spec,
                pl.BlockSpec((k, k * C1, TN), lambda n, t, j: (0, 0, j)),
                pl.BlockSpec((1, TN), lambda n, t, j: (0, j)),
                pl.BlockSpec((1, TN), lambda n, t, j: (0, j)),
            ],
            out_specs=pl.BlockSpec((None, None, TH * Wo, TN),
                                   lambda n, t, j: (n, t, 0, j)),
        ),
        compiler_params=pltpu.CompilerParams(
            dimension_semantics=("parallel", "parallel", "parallel"),
            vmem_limit_bytes=VMEM_LIMIT),
    )(x_in, w_flat, sc, bi)

    # drop padded output rows / channels, back to NCHW at the module boundary
    out = out_t.reshape(N, Ho_pad, Wo, C2p)[:, :Ho, :, :C2]
    return jnp.transpose(out, (0, 3, 1, 2))


if __name__ == "__main__":
    key = jax.random.PRNGKey(0)
    kx, kw_, kg, kb, km, kv = jax.random.split(key, 6)

    N, C1, H, W = 2, 4, 16, 16
    C2, K, S = 8, 3, 1

    x = jax.random.normal(kx, (N, C1, H, W), jnp.float32)
    weight = jax.random.normal(kw_, (C2, C1, K, K), jnp.float32) * 0.1
    gamma = 1.0 + 0.1 * jax.random.normal(kg, (C2,), jnp.float32)
    beta = 0.1 * jax.random.normal(kb, (C2,), jnp.float32)
    running_mean = 0.1 * jax.random.normal(km, (C2,), jnp.float32)
    running_var = jnp.abs(1.0 + 0.1 * jax.random.normal(kv, (C2,), jnp.float32))

    out = conv_bn_silu(x, weight, gamma, beta, running_mean, running_var,
                       k=K, s=S, p=None)
    jax.block_until_ready(out)
    assert out.shape == (N, C2, H, W), out.shape

    # pure-JAX f32 reference (Conv2d no-bias + eval BN + SiLU) sanity check.
    # NOTE: kernel uses bf16 MXU operands -> small precision delta vs f32.
    pad = autopad(K, None)
    ref = jax.lax.conv_general_dilated(
        x, weight, window_strides=(S, S),
        padding=[(pad, pad), (pad, pad)],
        dimension_numbers=("NCHW", "OIHW", "NCHW"),
        precision=jax.lax.Precision.HIGHEST)
    scale = gamma / jnp.sqrt(running_var + 1e-5)
    bias = beta - running_mean * scale
    ref = ref * scale[None, :, None, None] + bias[None, :, None, None]
    ref = ref * jax.nn.sigmoid(ref)
    err = float(jnp.max(jnp.abs(out - ref)))
    assert err < 5e-2, f"max abs error too large: {err}"
    print("KERNEL_OK")
</pallas_src>

<mosaic_0001>
module attributes {stable_mosaic.version = 11 : i64} {
  func.func @kernel(%arg0: i32, %arg1: i32, %arg2: i32, %arg3: memref<1x18x18x4xbf16, #tpu.memory_space<vmem>>, %arg4: memref<3x12x128xbf16, #tpu.memory_space<vmem>>, %arg5: memref<1x128xf32, #tpu.memory_space<vmem>>, %arg6: memref<1x128xf32, #tpu.memory_space<vmem>>, %arg7: memref<1x1x256x128xf32, #tpu.memory_space<vmem>>) attributes {dimension_semantics = [#tpu.dimension_semantics<parallel>, #tpu.dimension_semantics<parallel>, #tpu.dimension_semantics<parallel>], iteration_bounds = array<i64: 2, 1, 1>, scalar_prefetch = 0 : i64, scratch_operands = 0 : i64, tpu.core_type = #tpu.core_type<tc>, window_params = [{transform_indices = @transform_0, window_bounds = array<i64: 1, 18, 18, 4>}, {transform_indices = @transform_1, window_bounds = array<i64: 3, 12, 128>}, {transform_indices = @transform_2, window_bounds = array<i64: 1, 128>}, {transform_indices = @transform_3, window_bounds = array<i64: 1, 128>}, {transform_indices = @transform_4, window_bounds = array<i64: 1, 1, 256, 128>}]} {
    %c16_i32 = arith.constant 16 : i32
    %0 = arith.muli %arg1, %c16_i32 : i32
    %cst = arith.constant 0.000000e+00 : f32
    %1 = vector.broadcast %cst : f32 to vector<256x128xf32>
    %c0_i32 = arith.constant 0 : i32
    %2 = arith.addi %0, %c0_i32 : i32
    %c0 = arith.constant 0 : index
    %3 = arith.index_cast %2 : i32 to index
    %c0_0 = arith.constant 0 : index
    %c0_1 = arith.constant 0 : index
    %4 = vector.load %arg3[%c0, %3, %c0_0, %c0_1] : memref<1x18x18x4xbf16, #tpu.memory_space<vmem>>, vector<1x16x16x4xbf16>
    %5 = vector.shape_cast %4 : vector<1x16x16x4xbf16> to vector<16x16x4xbf16>
    %c0_i32_2 = arith.constant 0 : i32
    %6 = arith.addi %0, %c0_i32_2 : i32
    %c0_3 = arith.constant 0 : index
    %7 = arith.index_cast %6 : i32 to index
    %c1 = arith.constant 1 : index
    %c0_4 = arith.constant 0 : index
    %8 = vector.load %arg3[%c0_3, %7, %c1, %c0_4] : memref<1x18x18x4xbf16, #tpu.memory_space<vmem>>, vector<1x16x16x4xbf16>
    %9 = vector.shape_cast %8 : vector<1x16x16x4xbf16> to vector<16x16x4xbf16>
    %c0_i32_5 = arith.constant 0 : i32
    %10 = arith.addi %0, %c0_i32_5 : i32
    %c0_6 = arith.constant 0 : index
    %11 = arith.index_cast %10 : i32 to index
    %c2 = arith.constant 2 : index
    %c0_7 = arith.constant 0 : index
    %12 = vector.load %arg3[%c0_6, %11, %c2, %c0_7] : memref<1x18x18x4xbf16, #tpu.memory_space<vmem>>, vector<1x16x16x4xbf16>
    %13 = vector.shape_cast %12 : vector<1x16x16x4xbf16> to vector<16x16x4xbf16>
    %14 = tpu.concatenate %5, %9, %13 in 2 : vector<16x16x4xbf16>, vector<16x16x4xbf16>, vector<16x16x4xbf16> -> vector<16x16x12xbf16>
    %15 = vector.shape_cast %14 : vector<16x16x12xbf16> to vector<256x12xbf16>
    %c0_8 = arith.constant 0 : index
    %c0_9 = arith.constant 0 : index
    %c0_10 = arith.constant 0 : index
    %16 = vector.load %arg4[%c0_8, %c0_9, %c0_10] : memref<3x12x128xbf16, #tpu.memory_space<vmem>>, vector<1x12x128xbf16>
    %17 = vector.shape_cast %16 : vector<1x12x128xbf16> to vector<12x128xbf16>
    %cst_11 = arith.constant dense<0.000000e+00> : vector<256x128xf32>
    %18 = tpu.matmul %15, %17, %cst_11 {dimension_numbers = #tpu.dot_dimension_numbers<[1], [0], [0], [1], [0, 0, 1, 1], [], []>} : vector<256x12xbf16>, vector<12x128xbf16>, vector<256x128xf32> -> vector<256x128xf32>
    %19 = arith.addf %1, %18 : vector<256x128xf32>
    %c1_i32 = arith.constant 1 : i32
    %20 = arith.addi %0, %c1_i32 : i32
    %c0_12 = arith.constant 0 : index
    %21 = arith.index_cast %20 : i32 to index
    %c0_13 = arith.constant 0 : index
    %c0_14 = arith.constant 0 : index
    %22 = vector.load %arg3[%c0_12, %21, %c0_13, %c0_14] : memref<1x18x18x4xbf16, #tpu.memory_space<vmem>>, vector<1x16x16x4xbf16>
    %23 = vector.shape_cast %22 : vector<1x16x16x4xbf16> to vector<16x16x4xbf16>
    %c1_i32_15 = arith.constant 1 : i32
    %24 = arith.addi %0, %c1_i32_15 : i32
    %c0_16 = arith.constant 0 : index
    %25 = arith.index_cast %24 : i32 to index
    %c1_17 = arith.constant 1 : index
    %c0_18 = arith.constant 0 : index
    %26 = vector.load %arg3[%c0_16, %25, %c1_17, %c0_18] : memref<1x18x18x4xbf16, #tpu.memory_space<vmem>>, vector<1x16x16x4xbf16>
    %27 = vector.shape_cast %26 : vector<1x16x16x4xbf16> to vector<16x16x4xbf16>
    %c1_i32_19 = arith.constant 1 : i32
    %28 = arith.addi %0, %c1_i32_19 : i32
    %c0_20 = arith.constant 0 : index
    %29 = arith.index_cast %28 : i32 to index
    %c2_21 = arith.constant 2 : index
    %c0_22 = arith.constant 0 : index
    %30 = vector.load %arg3[%c0_20, %29, %c2_21, %c0_22] : memref<1x18x18x4xbf16, #tpu.memory_space<vmem>>, vector<1x16x16x4xbf16>
    %31 = vector.shape_cast %30 : vector<1x16x16x4xbf16> to vector<16x16x4xbf16>
    %32 = tpu.concatenate %23, %27, %31 in 2 : vector<16x16x4xbf16>, vector<16x16x4xbf16>, vector<16x16x4xbf16> -> vector<16x16x12xbf16>
    %33 = vector.shape_cast %32 : vector<16x16x12xbf16> to vector<256x12xbf16>
    %c1_23 = arith.constant 1 : index
    %c0_24 = arith.constant 0 : index
    %c0_25 = arith.constant 0 : index
    %34 = vector.load %arg4[%c1_23, %c0_24, %c0_25] : memref<3x12x128xbf16, #tpu.memory_space<vmem>>, vector<1x12x128xbf16>
    %35 = vector.shape_cast %34 : vector<1x12x128xbf16> to vector<12x128xbf16>
    %cst_26 = arith.constant dense<0.000000e+00> : vector<256x128xf32>
    %36 = tpu.matmul %33, %35, %cst_26 {dimension_numbers = #tpu.dot_dimension_numbers<[1], [0], [0], [1], [0, 0, 1, 1], [], []>} : vector<256x12xbf16>, vector<12x128xbf16>, vector<256x128xf32> -> vector<256x128xf32>
    %37 = arith.addf %19, %36 : vector<256x128xf32>
    %c2_i32 = arith.constant 2 : i32
    %38 = arith.addi %0, %c2_i32 : i32
    %c0_27 = arith.constant 0 : index
    %39 = arith.index_cast %38 : i32 to index
    %c0_28 = arith.constant 0 : index
    %c0_29 = arith.constant 0 : index
    %40 = vector.load %arg3[%c0_27, %39, %c0_28, %c0_29] : memref<1x18x18x4xbf16, #tpu.memory_space<vmem>>, vector<1x16x16x4xbf16>
    %41 = vector.shape_cast %40 : vector<1x16x16x4xbf16> to vector<16x16x4xbf16>
    %c2_i32_30 = arith.constant 2 : i32
    %42 = arith.addi %0, %c2_i32_30 : i32
    %c0_31 = arith.constant 0 : index
    %43 = arith.index_cast %42 : i32 to index
    %c1_32 = arith.constant 1 : index
    %c0_33 = arith.constant 0 : index
    %44 = vector.load %arg3[%c0_31, %43, %c1_32, %c0_33] : memref<1x18x18x4xbf16, #tpu.memory_space<vmem>>, vector<1x16x16x4xbf16>
    %45 = vector.shape_cast %44 : vector<1x16x16x4xbf16> to vector<16x16x4xbf16>
    %c2_i32_34 = arith.constant 2 : i32
    %46 = arith.addi %0, %c2_i32_34 : i32
    %c0_35 = arith.constant 0 : index
    %47 = arith.index_cast %46 : i32 to index
    %c2_36 = arith.constant 2 : index
    %c0_37 = arith.constant 0 : index
    %48 = vector.load %arg3[%c0_35, %47, %c2_36, %c0_37] : memref<1x18x18x4xbf16, #tpu.memory_space<vmem>>, vector<1x16x16x4xbf16>
    %49 = vector.shape_cast %48 : vector<1x16x16x4xbf16> to vector<16x16x4xbf16>
    %50 = tpu.concatenate %41, %45, %49 in 2 : vector<16x16x4xbf16>, vector<16x16x4xbf16>, vector<16x16x4xbf16> -> vector<16x16x12xbf16>
    %51 = vector.shape_cast %50 : vector<16x16x12xbf16> to vector<256x12xbf16>
    %c2_38 = arith.constant 2 : index
    %c0_39 = arith.constant 0 : index
    %c0_40 = arith.constant 0 : index
    %52 = vector.load %arg4[%c2_38, %c0_39, %c0_40] : memref<3x12x128xbf16, #tpu.memory_space<vmem>>, vector<1x12x128xbf16>
    %53 = vector.shape_cast %52 : vector<1x12x128xbf16> to vector<12x128xbf16>
    %cst_41 = arith.constant dense<0.000000e+00> : vector<256x128xf32>
    %54 = tpu.matmul %51, %53, %cst_41 {dimension_numbers = #tpu.dot_dimension_numbers<[1], [0], [0], [1], [0, 0, 1, 1], [], []>} : vector<256x12xbf16>, vector<12x128xbf16>, vector<256x128xf32> -> vector<256x128xf32>
    %55 = arith.addf %37, %54 : vector<256x128xf32>
    %c0_42 = arith.constant 0 : index
    %c0_43 = arith.constant 0 : index
    %56 = vector.load %arg5[%c0_42, %c0_43] : memref<1x128xf32, #tpu.memory_space<vmem>>, vector<1x128xf32>
    %57 = vector.broadcast %56 : vector<1x128xf32> to vector<256x128xf32>
    %58 = arith.mulf %55, %57 : vector<256x128xf32>
    %c0_44 = arith.constant 0 : index
    %c0_45 = arith.constant 0 : index
    %59 = vector.load %arg6[%c0_44, %c0_45] : memref<1x128xf32, #tpu.memory_space<vmem>>, vector<1x128xf32>
    %60 = vector.broadcast %59 : vector<1x128xf32> to vector<256x128xf32>
    %61 = arith.addf %58, %60 : vector<256x128xf32>
    %62 = arith.negf %61 : vector<256x128xf32>
    %63 = math.exp %62 : vector<256x128xf32>
    %cst_46 = arith.constant 1.000000e+00 : f32
    %64 = vector.broadcast %cst_46 : f32 to vector<256x128xf32>
    %65 = arith.addf %64, %63 : vector<256x128xf32>
    %66 = arith.divf %64, %65 : vector<256x128xf32>
    %67 = arith.mulf %61, %66 : vector<256x128xf32>
    %c0_47 = arith.constant 0 : index
    %c0_48 = arith.constant 0 : index
    %c0_49 = arith.constant 0 : index
    %c0_50 = arith.constant 0 : index
    %68 = vector.load %arg7[%c0_47, %c0_48, %c0_49, %c0_50] : memref<1x1x256x128xf32, #tpu.memory_space<vmem>>, vector<1x1x256x128xf32>
    %69 = vector.shape_cast %68 : vector<1x1x256x128xf32> to vector<256x128xf32>
    %70 = vector.shape_cast %67 : vector<256x128xf32> to vector<1x1x256x128xf32>
    tpu.vector_store %arg7[%c0_47, %c0_48, %c0_49, %c0_50], %70 {strides = array<i32>} : memref<1x1x256x128xf32, #tpu.memory_space<vmem>>, vector<1x1x256x128xf32>,
    return
  }
  func.func @transform_0(%arg0: i32, %arg1: i32, %arg2: i32) -> (i32, i32, i32, i32) {
    %c0_i32 = arith.constant 0 : i32
    %c0_i32_0 = arith.constant 0 : i32
    %c0_i32_1 = arith.constant 0 : i32
    %c0_i32_2 = arith.constant 0 : i32
    return %arg0, %c0_i32, %c0_i32_0, %c0_i32_1 : i32, i32, i32, i32
  }
  func.func @transform_1(%arg0: i32, %arg1: i32, %arg2: i32) -> (i32, i32, i32) {
    %c0_i32 = arith.constant 0 : i32
    %c0_i32_0 = arith.constant 0 : i32
    %c0_i32_1 = arith.constant 0 : i32
    return %c0_i32, %c0_i32_0, %arg2 : i32, i32, i32
  }
  func.func @transform_2(%arg0: i32, %arg1: i32, %arg2: i32) -> (i32, i32) {
    %c0_i32 = arith.constant 0 : i32
    %c0_i32_0 = arith.constant 0 : i32
    return %c0_i32, %arg2 : i32, i32
  }
  func.func @transform_3(%arg0: i32, %arg1: i32, %arg2: i32) -> (i32, i32) {
    %c0_i32 = arith.constant 0 : i32
    %c0_i32_0 = arith.constant 0 : i32
    return %c0_i32, %arg2 : i32, i32
  }
  func.func @transform_4(%arg0: i32, %arg1: i32, %arg2: i32) -> (i32, i32, i32, i32) {
    %c0_i32 = arith.constant 0 : i32
    %c0_i32_0 = arith.constant 0 : i32
    return %arg0, %arg1, %c0_i32, %arg2 : i32, i32, i32, i32
  }
}

</mosaic_0001>

<bundles_post_ra>
// kernel: conv_bn_silu.1
= control target key start
LH: loop header
LB: loop body
LE: loop exit
PB: predicated region body
PF: predicated region fallthrough
CT: control target
= control target key end

     0   :  { %s4166_s15 = smov 0   ;;  %s4168_s16 = smov 0   ;;  %s5678_s0 = inlined_call_operand.vmem [shape: bf16[2,18,18,4], index: 0, kind: input, shape index: {}]   ;;  %s5679_s1 = inlined_call_operand.vmem [shape: bf16[3,12,128], index: 1, kind: input, shape index: {}]   ;;  %s5680_s2 = inlined_call_operand.vmem [shape: f32[1,128], index: 2, kind: input, shape index: {}]   ;;  %s5681_s3 = inlined_call_operand.vmem [shape: f32[1,128], index: 3, kind: input, shape index: {}]   ;;  %s5682_s4 = inlined_call_operand.vmem [shape: f32[2,1,256,128], index: 4, kind: output, shape index: {}]  }
   0x1   :  { %s4170_s17 = smov 0  }
   0x2 LB: > { %s33_s18 = sadd.s32 1, %s4133_s16  ;;  %p3447_p0 = scmp.ge.s32.totalorder %s4137_s17, 1  ;;  %s4137_s17 = sphi %s4170_s17, %s14_s17   ;;  %s4133_s16 = sphi %s4168_s16, %s5702_s16   ;;  %s4129_s15 = sphi %s4166_s15, %s5701_s15  }
   0x3   : > { %p35_p1 = scmp.ge.s32.totalorder %s33_s18, 2  ;;  %p210_p2 = scmp.lt.s32.totalorder %s4137_s17, 3 }
   0x5   : > { %s5704_s18 = smov (%p35_p1, %s33_s18), 0  ;;  %p211_p3 = pnand %p3447_p0, %p210_p2 }
   0x6   : > { %p253_p4 = scmp.lt.s32.totalorder (!%p211_p3), %s4129_s15, 1  ;;  %s4139_s23 = smov (!%p211_p3), 8  }
   0x7   : > { %214 = sbr.rel (%p211_p3) target bundleno = 564 (0x234), region = 36  ;;  %s4140_s24 = smov (!%p211_p3), 4  }
   0xc   : > { %s5706_s15 = smov (!%p253_p4, %s4129_s15), 1  ;;  %vm750_vm0 = vcmask 1046528   ;;  %vm477_vm1 = vsmask.f32 7424  ;;  %vm1552_vm2 = vcmask 1045504   ;;  %vm831_vm3 = vcmask 31744  }
   0xd   : > { %s3875_s19 = smul.u32 216, %s5706_s15  ;;  %vm864_vm4 = vcmask 64512   ;;  %vm1519_vm5 = vcmask 97280  }
   0xf   : > { %s4190_s22 = scalar_lea.vmem %s5678_s0, %s3875_s19  ;;  %s3677_s19 = sshll.u32 %s5706_s15, 8 }
  0x10   : > { %v4193_v0 = vld [vmem:[%s4190_s22 + $0x9c] sm:$0xff]   ;;  %v3495_v2 = vld [vmem:[%s4190_s22 + $0xa4] sm:$0x1]  ;;  %v317_v6 = vld [vmem:[%s4190_s22 + $0x8] sm:$0x1]  ;;  %s5155_s21 = scalar_lea.vmem %s5682_s4, %s3677_s19 }
  0x11   : > { %v4121_v1 = vld [vmem:[%s4190_s22 + $0x9c] sm:$0xf0]  ;;  %v4122_v3 = vld [vmem:[%s4190_s22 + $0x9c] sm:$0xe]  ;;  %v1075_v4 = vunpack.c.l.b16 %v3495_v2  ;;  %v3784_v5 = vld [vmem:[%s4190_s22] sm:$0xf0]  ;;  %v445_v8 = vunpack.c.l.b16 %v317_v6 }
  0x12   : > { %v3785_v7 = vld [vmem:[%s4190_s22] sm:$0xe]  ;;  %v3848_v10 = vld [vmem:[%s4190_s22 + $0x18] sm:$0xf0]  ;;  %v3589_v11 = vld [vmem:[%s4190_s22 + $0x20] sm:$0x1]  ;;  %v4123_v14 = vor.u32 %v4122_v3, %v4121_v1 }
  0x13   : > { %v3786_v9 = vor.u32 %v3785_v7, %v3784_v5  ;;  %v3849_v12 = vld [vmem:[%s4190_s22 + $0x18] sm:$0xe]  ;;  %v1091_v13 = vpack.c.b16 %v1075_v4, %v1075_v4  ;;  %v1938_v15 = vunpack.c.l.b16 %v3589_v11  ;;  %v3483_v17 = vld [vmem:[%s4190_s22 + $0x14] sm:$0x1]  ;;  %v461_v18 = vpack.c.b16 %v445_v8, %v445_v8  ;;  %v4210_v25 = vld [vmem:[%s4190_s22 + $0xc] sm:$0xff]  }
  0x14   : > { %v4205_v16 = vld [vmem:[%s4190_s22 + $0x18] sm:$0xff]   ;;  %v3850_v20 = vor.u32 %v3849_v12, %v3848_v10  ;;  %v1403_v21 = vrot.slane %v4123_v14, 1  ;;  %v4124_v26 = vld [vmem:[%s4190_s22 + $0xc] sm:$0xf0]  ;;  %v4125_v27 = vld [vmem:[%s4190_s22 + $0xc] sm:$0xe]  ;;  %v1063_v31 = vunpack.c.l.b16 %v3483_v17 }
  0x15   : > { %v751_v19 = vrot.slane %v3786_v9, 1  ;;  %v1404_v22 = vrot.slane %v1091_v13, 1  ;;  %v1954_v23 = vpack.c.b16 %v1938_v15, %v1938_v15  ;;  %v1973_v24 = vshll.u32 %v4205_v16, 16  ;;  %v4219_v37 = vld [vmem:[%s4190_s22] sm:$0xff]   ;;  %v3496_v39 = vld [vmem:[%s4190_s22 + $0xb0] sm:$0x1] }
  0x16   : > { %v752_v28 = vrot.slane %v461_v18, 1  ;;  %v2242_v29 = vrot.slane %v3850_v20, 1  ;;  %v1971_v30 = vshrl.u32 %v4205_v16, 16  ;;  %v4222_v38 = vpack.c.b16 %v1063_v31, %v1063_v31  ;;  %v4229_v43 = vld [vmem:[%s4190_s22 + $0x24] sm:$0xff]   ;;  %v3590_v52 = vld [vmem:[%s4190_s22 + $0x2c] sm:$0x1] }
  0x17   : > { %v1405_v32 = vsel %vm750_vm0, %v1403_v21, %v1404_v22  ;;  %v2243_v33 = vrot.slane %v1954_v23, 1  ;;  %v1975_v34 = vrot.slane %v1973_v24, 1  ;;  %v1978_v35 = vshll.u32 %v1954_v23, 16  ;;  %v4232_v44 = vld [vmem:[%s4190_s22 + $0x24] sm:$0xf0]  ;;  %v4244_v63 = vld [vmem:[%s4190_s22 + $0xc] sm:$0xff]  }
  0x18   : > { %1439 = vrot.lane.b32.xlu1 %v1405_v32, %s4139_s23  ;;  %v753_v36 = vsel %vm750_vm0, %v751_v19, %v752_v28  ;;  %v1242_v42 = vshll.u32 %v4193_v0, 16  ;;  %v479_v46 = vshrl.u32 %v4219_v37, 16  ;;  %v481_v47 = vshll.u32 %v4219_v37, 16  ;;  %v3814_v56 = vld [vmem:[%s4190_s22 + $0xa8] sm:$0xff]   ;;  %v4247_v1 = vld [vmem:[%s4190_s22 + $0xc] sm:$0xf0] }
  0x19   : > { %799 = vrot.lane.b32.xlu0 %v753_v36, %s4139_s23  ;;  %v4225_v40 = vor.u32 %v1975_v34, %v1971_v30  ;;  %v1980_v41 = vrot.slane %v1978_v35, 1  ;;  %v2244_v45 = vsel %vm750_vm0, %v2242_v29, %v2243_v33  ;;  %v4126_v48 = vor.u32 %v4125_v27, %v4124_v26  ;;  %v3834_v8 = vld [vmem:[%s4190_s22 + $0xa8] sm:$0xf0]  ;;  %v3835_v9 = vld [vmem:[%s4190_s22 + $0xa8] sm:$0xe]  ;;  %v4268_v29 = vld [vmem:[%s4190_s22 + $0xb4] sm:$0xff]  }
  0x1a   : > { %v1247_v49 = vshll.u32 %v1091_v13, 16  ;;  %v486_v50 = vshll.u32 %v461_v18, 16  ;;  %v1076_v51 = vunpack.c.l.b16 %v3496_v39  ;;  %v1240_v53 = vshrl.u32 %v4193_v0, 16  ;;  %v3484_v13 = vld [vmem:[%s4190_s22 + $0x20] sm:$0x1] }
  0x1b   : > { %v1244_v54 = vrot.slane %v1242_v42, 1  ;;  %v483_v55 = vrot.slane %v481_v47, 1  ;;  %v1981_v57 = vsel %vm477_vm1, %v4225_v40, %v1980_v41  ;;  %v1368_v58 = vrot.slane %v4222_v38, 1  ;;  %v318_v17 = vld [vmem:[%s4190_s22 + $0x14] sm:$0x1] }
  0x1c   : > { %v488_v59 = vrot.slane %v486_v50, 1  ;;  %v1092_v61 = vpack.c.b16 %v1076_v51, %v1076_v51  ;;  %v1939_v62 = vunpack.c.l.b16 %v3590_v52  ;;  %v1367_v2 = vrot.slane %v4126_v48, 1  ;;  %v4271_v30 = vld [vmem:[%s4190_s22 + $0xb4] sm:$0xf0]  ;;  %v3497_v47 = vld [vmem:[%s4190_s22 + $0xbc] sm:$0x1] }
  0x1d   : > { %v484_v60 = vor.u32 %v483_v55, %v479_v46  ;;  %v1249_v3 = vrot.slane %v1247_v49, 1  ;;  %v1252_v4 = vshrl.u32 %v3814_v56, 16  ;;  %v1254_v5 = vshll.u32 %v3814_v56, 16  ;;  %v4044_v52 = vld [vmem:[%s4190_s22 + $0x24] sm:$0xe] }
  0x1e   : > { %v1245_v6 = vor.u32 %v1244_v54, %v1240_v53  ;;  %v1259_v10 = vshll.u32 %v1092_v61, 16  ;;  %v4255_v11 = vpack.c.b16 %v1939_v62, %v1939_v62  ;;  %v1985_v14 = vshll.u32 %v4229_v43, 16 }
  0x1f   : > { %v489_v7 = vsel %vm477_vm1, %v484_v60, %v488_v59  ;;  %v1256_v12 = vrot.slane %v1254_v5, 1  ;;  %v1369_v18 = vsel %vm750_vm0, %v1367_v2, %v1368_v58  ;;  %v3836_v19 = vor.u32 %v3835_v9, %v3834_v8  ;;  %v3817_v5 = vld [vmem:[%s4190_s22 + $0x18] sm:$0xe] }
  0x20   : > { %2290 = vrot.lane.b32.xlu1 %v2244_v45, %s4139_s23  ;;  %670 = vrot.lane.b32.xlu2 %v489_v7, %s4140_s24  ;;  %v1261_v15 = vrot.slane %v1259_v10, 1  ;;  %v1250_v21 = vsel %vm477_vm1, %v1245_v6, %v1249_v3  ;;  %v1983_v22 = vshrl.u32 %v4229_v43, 16  ;;  %v1064_v23 = vunpack.c.l.b16 %v3484_v13 }
  0x21   : > { %2162 = vrot.lane.b32.xlu0 %v1981_v57, %s4140_s24  ;;  %v4261_v20 = vor.u32 %v1256_v12, %v1252_v4  ;;  %v1098_v24 = vshll.u32 %v4210_v25, 16  ;;  %v1987_v26 = vrot.slane %v1985_v14, 1  ;;  %v1990_v27 = vshll.u32 %v4255_v11, 16  ;;  %v3816_v4 = vld [vmem:[%s4190_s22 + $0x18] sm:$0xf0] }
  0x22   : > { %v446_v28 = vunpack.c.l.b16 %v318_v17  ;;  %v1096_v32 = vshrl.u32 %v4210_v25, 16  ;;  %v1103_v34 = vshll.u32 %v4222_v38, 16  ;;  %v1406_v35 = vrot.slane %v3836_v19, 1  ;;  %v4313_v17 = vld [vmem:[%s4190_s22 + $0x24] sm:$0xff]  }
  0x23   : > { %v1262_v31 = vsel %vm477_vm1, %v4261_v20, %v1261_v15  ;;  %v1100_v33 = vrot.slane %v1098_v24, 1  ;;  %v1407_v36 = vrot.slane %v1092_v61, 1  ;;  %v4279_v39 = vpack.c.b16 %v1064_v23, %v1064_v23  ;;  %v4047_v61 = vld [vmem:[%s4190_s22 + $0xc] sm:$0xe]  ;;  %v4050_v15 = vld [vmem:[%s4190_s22 + $0xb4] sm:$0xe] }
  0x24   : > { %v1988_v41 = vor.u32 %v1987_v26, %v1983_v22  ;;  %v1992_v42 = vrot.slane %v1990_v27, 1  ;;  %v4282_v45 = vpack.c.b16 %v446_v28, %v446_v28  ;;  %v493_v46 = vshll.u32 %v4244_v63, 16  ;;  %v3851_v23 = vld [vmem:[%s4190_s22 + $0x30] sm:$0xf0]  ;;  %v3852_v24 = vld [vmem:[%s4190_s22 + $0x30] sm:$0xe] }
  0x25   : > { %v1101_v48 = vor.u32 %v1100_v33, %v1096_v32  ;;  %v1105_v38 = vrot.slane %v1103_v34, 1  ;;  %v1408_v49 = vsel %vm750_vm0, %v1406_v35, %v1407_v36  ;;  %v1115_v50 = vshll.u32 %v4279_v39, 16  ;;  %v3841_v27 = vld [vmem:[%s4190_s22 + $0x30] sm:$0xff]   ;;  %v3485_v32 = vld [vmem:[%s4190_s22 + $0x2c] sm:$0x1] }
  0x26   : > { %v1077_v51 = vunpack.c.l.b16 %v3497_v47  ;;  %v1993_v53 = vsel %vm477_vm1, %v1988_v41, %v1992_v42  ;;  %v491_v54 = vshrl.u32 %v4244_v63, 16  ;;  %v495_v55 = vrot.slane %v493_v46, 1  ;;  %v319_v46 = vld [vmem:[%s4190_s22 + $0x20] sm:$0x1] }
  0x27   : > { %v498_v56 = vshll.u32 %v4282_v45, 16  ;;  %v1106_v57 = vsel %vm477_vm1, %v1101_v48, %v1105_v38  ;;  %v1117_v58 = vrot.slane %v1115_v50, 1  ;;  %v1266_v60 = vshll.u32 %v4268_v29, 16  ;;  %v4336_v38 = vld [vmem:[%s4190_s22 + $0x3c] sm:$0xf0] }
  0x28   : > { %1415 = vrot.lane.b32.xlu1 %v1369_v18, %s4139_s23  ;;  %1313 = vrot.lane.b32.xlu2 %v1262_v31, %s4140_s24  ;;  %v4295_v59 = vpack.c.b16 %v1077_v51, %v1077_v51  ;;  %v496_v62 = vor.u32 %v495_v55, %v491_v54  ;;  %v4045_v3 = vor.u32 %v4044_v52, %v4232_v44  ;;  %v2246_v6 = vrot.slane %v4255_v11, 1  ;;  %v3591_v44 = vld [vmem:[%s4190_s22 + $0x38] sm:$0x1]  ;;  %v4316_v18 = vld [vmem:[%s4190_s22 + $0x24] sm:$0xf0] }
  0x29   : > { %1311 = vrot.lane.b32.xlu0 %v1250_v21, %s4140_s24  ;;  %v500_v2 = vrot.slane %v498_v56, 1  ;;  %v1118_v8 = vsel %vm477_vm1, %v4225_v40, %v1117_v58  ;;  %v1264_v9 = vshrl.u32 %v4268_v29, 16  ;;  %v1268_v10 = vrot.slane %v1266_v60, 1  ;;  %v3787_v56 = vld [vmem:[%s4190_s22 + $0x18] sm:$0xf0] }
  0x2a   : > { %v2245_v7 = vrot.slane %v4045_v3, 1  ;;  %v1271_v12 = vshll.u32 %v4295_v59, 16  ;;  %v3818_v14 = vor.u32 %v3817_v5, %v3816_v4  ;;  %v4048_v19 = vor.u32 %v4047_v61, %v4247_v1  ;;  %v3592_v61 = vld [vmem:[%s4190_s22 + $0x44] sm:$0x1] }
  0x2b   : > { %v501_v13 = vsel %vm477_vm1, %v496_v62, %v500_v2  ;;  %v1269_v21 = vor.u32 %v1268_v10, %v1264_v9  ;;  %v1940_v26 = vunpack.c.l.b16 %v3591_v44  ;;  %v1371_v31 = vrot.slane %v4279_v39, 1  ;;  %v4333_v39 = vld [vmem:[%s4190_s22 + $0x3c] sm:$0xff]   ;;  %v3498_v62 = vld [vmem:[%s4190_s22 + $0xc8] sm:$0x1] }
  0x2c   : > { %v2247_v11 = vsel %vm750_vm0, %v2245_v7, %v2246_v6  ;;  %v1273_v22 = vrot.slane %v1271_v12, 1  ;;  %v1370_v28 = vrot.slane %v3818_v14, 1  ;;  %v754_v1 = vrot.slane %v4048_v19, 1  ;;  %v4360_v14 = vld [vmem:[%s4190_s22 + $0x24] sm:$0xf0]  ;;  %v3815_v44 = vld [vmem:[%s4190_s22 + $0xc0] sm:$0xff]  }
  0x2d   : > { %v755_v33 = vrot.slane %v4282_v45, 1  ;;  %v3853_v34 = vor.u32 %v3852_v24, %v3851_v23  ;;  %v1997_v35 = vshll.u32 %v3841_v27, 16  ;;  %v1956_v41 = vpack.c.b16 %v1940_v26, %v1940_v26 }
  0x2e   : > { %v1274_v36 = vsel %vm477_vm1, %v1269_v21, %v1273_v22  ;;  %v4051_v42 = vor.u32 %v4050_v15, %v4271_v30  ;;  %v1372_v47 = vsel %vm750_vm0, %v1370_v28, %v1371_v31  ;;  %v1065_v48 = vunpack.c.l.b16 %v3485_v32  ;;  %v4053_v22 = vld [vmem:[%s4190_s22 + $0x24] sm:$0xe]  ;;  %v320_v32 = vld [vmem:[%s4190_s22 + $0x2c] sm:$0x1] }
  0x2f   : > { %v1995_v45 = vshrl.u32 %v3841_v27, 16  ;;  %v1999_v50 = vrot.slane %v1997_v35, 1  ;;  %v2002_v51 = vshll.u32 %v1956_v41, 16  ;;  %v2248_v30 = vrot.slane %v3853_v34, 1 }
  0x30   : > { %1441 = vrot.lane.b32.xlu1 %v1408_v49, %s4139_s23  ;;  %1287 = vrot.lane.b32.xlu2 %v1106_v57, %s4140_s24  ;;  %v756_v49 = vsel %vm750_vm0, %v754_v1, %v755_v33  ;;  %v1410_v52 = vrot.slane %v4295_v59, 1  ;;  %v2249_v54 = vrot.slane %v1956_v41, 1  ;;  %v1409_v55 = vrot.slane %v4051_v42, 1  ;;  %v3788_v57 = vld [vmem:[%s4190_s22 + $0x18] sm:$0xe] }
  0x31   : > { %2164 = vrot.lane.b32.xlu0 %v1993_v53, %s4140_s24  ;;  %v447_v53 = vunpack.c.l.b16 %v319_v46  ;;  %v4344_v58 = vpack.c.b16 %v1065_v48, %v1065_v48  ;;  %v1122_v60 = vshll.u32 %v4313_v17, 16  ;;  %v4350_v2 = vor.u32 %v1999_v50, %v1995_v45 }
  0x32   : > { %v2004_v59 = vrot.slane %v2002_v51, 1  ;;  %v3789_v4 = vor.u32 %v3788_v57, %v3787_v56  ;;  %v2250_v5 = vsel %vm750_vm0, %v2248_v30, %v2249_v54  ;;  %v1411_v6 = vsel %vm750_vm0, %v1409_v55, %v1410_v52  ;;  %v3486_v57 = vld [vmem:[%s4190_s22 + $0x38] sm:$0x1] }
  0x33   : > { %v463_v3 = vpack.c.b16 %v447_v53, %v447_v53  ;;  %v1941_v7 = vunpack.c.l.b16 %v3592_v61  ;;  %v1124_v9 = vrot.slane %v1122_v60, 1  ;;  %v1127_v10 = vshll.u32 %v4344_v58, 16  ;;  %v3838_v60 = vld [vmem:[%s4190_s22 + $0xc0] sm:$0xe] }
  0x34   : > { %v1078_v12 = vunpack.c.l.b16 %v3498_v62  ;;  %v2005_v15 = vsel %vm477_vm1, %v4350_v2, %v2004_v59  ;;  %v757_v19 = vrot.slane %v3789_v4, 1  ;;  %v2009_v24 = vshll.u32 %v4333_v39, 16  ;;  %v4059_v4 = vld [vmem:[%s4190_s22 + $0x24] sm:$0xe] }
  0x35   : > { %v758_v21 = vrot.slane %v463_v3, 1  ;;  %v4368_v23 = vpack.c.b16 %v1941_v7, %v1941_v7  ;;  %v1129_v27 = vrot.slane %v1127_v10, 1  ;;  %v1278_v31 = vshll.u32 %v3815_v44, 16 }
  0x36   : > { %v4371_v28 = vpack.c.b16 %v1078_v12, %v1078_v12  ;;  %v2007_v34 = vshrl.u32 %v4333_v39, 16  ;;  %v2011_v35 = vrot.slane %v2009_v24, 1  ;;  %v448_v41 = vunpack.c.l.b16 %v320_v32  ;;  %v3819_v12 = vld [vmem:[%s4190_s22 + $0x30] sm:$0xf0] }
  0x37   : > { %v759_v33 = vsel %vm750_vm0, %v757_v19, %v758_v21  ;;  %v1276_v46 = vshrl.u32 %v3815_v44, 16  ;;  %v4054_v50 = vor.u32 %v4053_v22, %v4316_v18  ;;  %v3837_v18 = vld [vmem:[%s4190_s22 + $0xc0] sm:$0xf0]  ;;  %v3820_v44 = vld [vmem:[%s4190_s22 + $0x30] sm:$0xe] }
  0x38   : > { %1289 = vrot.lane.b32.xlu1 %v1118_v8, %s4140_s24  ;;  %2292 = vrot.lane.b32.xlu2 %v2247_v11, %s4139_s23  ;;  %v1120_v8 = vshrl.u32 %v4313_v17, 16  ;;  %v510_v11 = vshll.u32 %v463_v3, 16  ;;  %v1283_v48 = vshll.u32 %v4371_v28, 16  ;;  %v2012_v51 = vor.u32 %v2011_v35, %v2007_v34  ;;  %v3593_v19 = vld [vmem:[%s4190_s22 + $0x50] sm:$0x1]  ;;  %v4415_v34 = vld [vmem:[%s4190_s22 + $0x3c] sm:$0xff]  }
  0x39   : > { %672 = vrot.lane.b32.xlu0 %v501_v13, %s4140_s24  ;;  %v4357_v13 = vld [vmem:[%s4190_s22 + $0x24] sm:$0xff]   ;;  %v4386_v52 = vpack.c.b16 %v448_v41, %v448_v41  ;;  %v1373_v56 = vrot.slane %v4054_v50, 1  ;;  %v3839_v7 = vor.u32 %v3838_v60, %v3837_v18  ;;  %v1413_v22 = vrot.slane %v4371_v28, 1  ;;  %v4418_v35 = vld [vmem:[%s4190_s22 + $0x3c] sm:$0xf0] }
  0x3a   : > { %v1125_v26 = vor.u32 %v1124_v9, %v1120_v8  ;;  %v512_v1 = vrot.slane %v510_v11, 1  ;;  %v517_v53 = vshll.u32 %v4357_v13, 16  ;;  %v1285_v55 = vrot.slane %v1283_v48, 1  ;;  %v3803_v41 = vld [vmem:[%s4190_s22 + $0x90] sm:$0xe] }
  0x3b   : > { %v515_v62 = vshrl.u32 %v4357_v13, 16  ;;  %v522_v3 = vshll.u32 %v4386_v52, 16  ;;  %v1066_v8 = vunpack.c.l.b16 %v3486_v57  ;;  %v2252_v11 = vrot.slane %v4368_v23, 1 }
  0x3c   : > { %v1130_v42 = vsel %vm477_vm1, %v1125_v26, %v1129_v27  ;;  %v513_v45 = vsel %vm477_vm1, %v4225_v40, %v512_v1  ;;  %v1374_v40 = vrot.slane %v4344_v58, 1  ;;  %v519_v59 = vrot.slane %v517_v53, 1  ;;  %v3487_v53 = vld [vmem:[%s4190_s22 + $0x44] sm:$0x1] }
  0x3d   : > { %v524_v10 = vrot.slane %v522_v3, 1  ;;  %v1412_v21 = vrot.slane %v3839_v7, 1  ;;  %v1082_v24 = vpack.c.b16 %v1066_v8, %v1066_v8  ;;  %v3821_v26 = vor.u32 %v3820_v44, %v3819_v12 }
  0x3e   : > { %v1375_v58 = vsel %vm750_vm0, %v1373_v56, %v1374_v40  ;;  %v520_v9 = vor.u32 %v519_v59, %v515_v62  ;;  %v4060_v27 = vor.u32 %v4059_v4, %v4360_v14  ;;  %v761_v48 = vrot.slane %v4386_v52, 1  ;;  %v4438_v62 = vld [vmem:[%s4190_s22 + $0x9c] sm:$0xf0] }
  0x3f   : > { %v1414_v28 = vsel %vm750_vm0, %v1412_v21, %v1413_v22  ;;  %v1376_v14 = vrot.slane %v3821_v26, 1  ;;  %v1067_v60 = vunpack.c.l.b16 %v3487_v53  ;;  %v330_v21 = vld [vmem:[%s4190_s22 + $0xa4] sm:$0x1] }
  0x40   : > { %1315 = vrot.lane.b32.xlu1 %v1274_v36, %s4140_s24  ;;  %801 = vrot.lane.b32.xlu2 %v756_v49, %s4139_s23  ;;  %v2014_v36 = vshll.u32 %v4368_v23, 16  ;;  %v4056_v49 = vld [vmem:[%s4190_s22 + $0x3c] sm:$0xe]  ;;  %v3842_v23 = vld [vmem:[%s4190_s22 + $0x48] sm:$0xff]  }
  0x41   : > { %1417 = vrot.lane.b32.xlu0 %v1372_v47, %s4139_s23  ;;  %v1280_v47 = vrot.slane %v1278_v31, 1  ;;  %v525_v31 = vsel %vm477_vm1, %v520_v9, %v524_v10  ;;  %v2019_v57 = vshrl.u32 %v3842_v23, 16  ;;  %v3678_v10 = vld [vmem:[%s5679_s1] sm:$0x30]  ;;  %v4451_v44 = vpack.c.b16 %v1067_v60, %v1067_v60 }
  0x42   : > { %v2016_v30 = vrot.slane %v2014_v36, 1  ;;  %v3802_v36 = vld [vmem:[%s4190_s22 + $0x90] sm:$0xf0] }
  0x43   : > { %v1281_v54 = vor.u32 %v1280_v47, %v1276_v46  ;;  %v1377_v46 = vrot.slane %v1082_v24, 1  ;;  %v760_v47 = vrot.slane %v4060_v27, 1 }
  0x44   : > { %v2017_v61 = vsel %vm477_vm1, %v2012_v51, %v2016_v30  ;;  %v3804_v51 = vor.u32 %v3803_v41, %v3802_v36  ;;  %v458_v36 = vunpack.c.l.b16 %v330_v21 }
  0x45   : > { %v1378_v40 = vsel %vm750_vm0, %v1376_v14, %v1377_v46  ;;  %v762_v52 = vsel %vm750_vm0, %v760_v47, %v761_v48  ;;  %v3625_v47 = vld [vmem:[%s5679_s1 + $0x10] sm:$0xf] }
  0x46   : > { %v787_v59 = vrot.slane %v3804_v51, 1  ;;  %v4483_v51 = vpack.c.b16 %v458_v36, %v458_v36 }
  0x48   : > { %2294 = vrot.lane.b32.xlu1 %v2250_v5, %s4139_s23  ;;  %2166 = vrot.lane.b32.xlu2 %v2005_v15, %s4140_s24  ;;  %v1286_v5 = vsel %vm477_vm1, %v1281_v54, %v1285_v55  ;;  %v321_v54 = vld [vmem:[%s4190_s22 + $0x38] sm:$0x1] }
  0x49   : > { %1443 = vrot.lane.b32.xlu0 %v1411_v6, %s4139_s23  ;;  %v4057_v6 = vor.u32 %v4056_v49, %v4336_v38  ;;  %v329_v38 = vld [vmem:[%s4190_s22 + $0x98] sm:$0x1]  ;;  %v3782_v49 = vld [vmem:[%s4190_s22 + $0x90] sm:$0xff]  }
  0x4a   : > { %v457_v1 = vunpack.c.l.b16 %v329_v38  ;;  %v625_v56 = vshll.u32 %v3782_v49, 16  ;;  %v623_v7 = vshrl.u32 %v3782_v49, 16  ;;  %v3680_v49 = vld [vmem:[%s5679_s1 + $0x10] sm:$0x30] }
  0x4b   : > { %v2251_v15 = vrot.slane %v4057_v6, 1  ;;  %v3539_v6 = vld [vmem:[%s5679_s1] sm:$0xf]  ;;  %v3626_v53 = vor.u32 %v3680_v49, %v3625_v47  ;;  %v322_v47 = vld [vmem:[%s4190_s22 + $0x44] sm:$0x1] }
  0x4c   : > { %v473_v50 = vpack.c.b16 %v457_v1, %v457_v1  ;;  %v627_v8 = vrot.slane %v625_v56, 1  ;;  %v3540_v12 = vor.u32 %v3678_v10, %v3539_v6  ;;  %v1144_v1 = vshrl.u32 %v4415_v34, 16  ;;  %v4064_v56 = vld [vmem:[%s4190_s22 + $0x54] sm:$0xf0]  ;;  %v3594_v6 = vld [vmem:[%s4190_s22 + $0x5c] sm:$0x1] }
  0x4d   : > { %v2253_v32 = vsel %vm750_vm0, %v2251_v15, %v2252_v11  ;;  %v1146_v15 = vshll.u32 %v4415_v34, 16  ;;  %v4068_v10 = vld [vmem:[%s4190_s22 + $0x9c] sm:$0xe]  ;;  %v1943_v21 = vunpack.c.l.b16 %v3594_v6 }
  0x4e   : > { %v788_v3 = vrot.slane %v473_v50, 1  ;;  %v630_v9 = vshll.u32 %v473_v50, 16  ;;  %v4461_v22 = vsel %vm1552_vm2, %v3540_v12, 0 }
  0x4f   : > { %1692 = vmatpush.bf16.msra.mxu1 %v4461_v22 }
  0x50   : > { %803 = vrot.lane.b32.xlu1 %v759_v33, %s4139_s23  ;;  %674 = vrot.lane.b32.xlu2 %v513_v45, %s4140_s24  ;;  %v1942_v33 = vunpack.c.l.b16 %v3593_v19  ;;  %v2021_v45 = vshll.u32 %v3842_v23, 16  ;;  %v632_v26 = vrot.slane %v630_v9, 1  ;;  %v789_v27 = vsel %vm750_vm0, %v787_v59, %v788_v3  ;;  %v3790_v59 = vld [vmem:[%s4190_s22 + $0x30] sm:$0xf0]  ;;  %v3791_v3 = vld [vmem:[%s4190_s22 + $0x30] sm:$0xe] }
  0x51   : > { %1291 = vrot.lane.b32.xlu0 %v1130_v42, %s4140_s24  ;;  %v1139_v42 = vshll.u32 %v1082_v24, 16  ;;  %v628_v24 = vor.u32 %v627_v8, %v623_v7  ;;  %v1148_v23 = vrot.slane %v1146_v15, 1  ;;  %v4065_v7 = vld [vmem:[%s4190_s22 + $0x54] sm:$0xe]  ;;  %v3519_v8 = vld [vmem:[%s5679_s1 + $0x8] sm:$0xf]  ;;  %v3792_v15 = vor.u32 %v3791_v3, %v3790_v59 }
  0x52   : > { %v4427_v30 = vpack.c.b16 %v1942_v33, %v1942_v33  ;;  %v2023_v18 = vrot.slane %v2021_v45, 1  ;;  %v1151_v33 = vshll.u32 %v4451_v44, 16  ;;  %v3679_v9 = vld [vmem:[%s5679_s1 + $0x8] sm:$0x30] }
  0x53   : > { %v1141_v55 = vrot.slane %v1139_v42, 1  ;;  %v4062_v42 = vld [vmem:[%s4190_s22 + $0x3c] sm:$0xe]  ;;  %v633_v14 = vsel %vm477_vm1, %v628_v24, %v632_v26  ;;  %v1149_v45 = vor.u32 %v1148_v23, %v1144_v1  ;;  %v4070_v26 = vld [vmem:[%s4190_s22 + $0x3c] sm:$0xf0]  ;;  %v763_v23 = vrot.slane %v3792_v15, 1 }
  0x54   : > { %v2026_v4 = vshll.u32 %v4427_v30, 16  ;;  %v4454_v11 = vor.u32 %v2023_v18, %v2019_v57  ;;  %v1153_v50 = vrot.slane %v1151_v33, 1  ;;  %v4492_v57 = vsel %vm1552_vm2, %v3626_v53, 0  ;;  %v4516_v24 = vld [vmem:[%s4190_s22 + $0x3c] sm:$0xff]   ;;  %v3488_v1 = vld [vmem:[%s4190_s22 + $0x50] sm:$0x1] }
  0x55   : > { %2436 = vmatpush.bf16.msra.mxu2 %v4492_v57  ;;  %v1068_v49 = vunpack.c.l.b16 %v3488_v1  ;;  %v539_v15 = vshrl.u32 %v4516_v24, 16 }
  0x56   : > { %v2028_v38 = vrot.slane %v2026_v4, 1  ;;  %v1154_v4 = vsel %vm477_vm1, %v1149_v45, %v1153_v50 }
  0x58   : > { %2168 = vrot.lane.b32.xlu1 %v2017_v61, %s4140_s24  ;;  %1419 = vrot.lane.b32.xlu2 %v1375_v58, %s4139_s23  ;;  %v4435_v61 = vld [vmem:[%s4190_s22 + $0x9c] sm:$0xff]   ;;  %v1142_v58 = vsel %vm477_vm1, %v4350_v2, %v1141_v55  ;;  %v2029_v41 = vsel %vm477_vm1, %v4454_v11, %v2028_v38  ;;  %v4487_v55 = vld [vmem:[%s4190_s22 + $0x54] sm:$0xff]   ;;  %v3520_v38 = vor.u32 %v3679_v9, %v3519_v8 }
  0x59   : > { %1317 = vrot.lane.b32.xlu0 %v1286_v5, %s4140_s24  ;;  %v449_v5 = vunpack.c.l.b16 %v321_v54  ;;  %v637_v48 = vshll.u32 %v4435_v61, 16  ;;  %v635_v18 = vshrl.u32 %v4435_v61, 16  ;;  %v2033_v36 = vshll.u32 %v4487_v55, 16  ;;  %v3843_v8 = vld [vmem:[%s4190_s22 + $0x60] sm:$0xff]  }
  0x5a   : > { %v2031_v45 = vshrl.u32 %v4487_v55, 16 }
  0x5b   : > { %v4456_v19 = vpack.c.b16 %v449_v5, %v449_v5  ;;  %v639_v60 = vrot.slane %v637_v48, 1  ;;  %v642_v5 = vshll.u32 %v4483_v51, 16  ;;  %v4071_v48 = vld [vmem:[%s4190_s22 + $0x3c] sm:$0xe]  ;;  %v2035_v50 = vrot.slane %v2033_v36, 1 }
  0x5d   : > { %v764_v33 = vrot.slane %v4456_v19, 1  ;;  %v2036_v59 = vor.u32 %v2035_v50, %v2031_v45 }
  0x60   : > { %676 = vrot.lane.b32.xlu1 %v525_v31, %s4140_s24  ;;  %1445 = vrot.lane.b32.xlu2 %v1414_v28, %s4139_s23  ;;  %v3854_v31 = vld [vmem:[%s4190_s22 + $0x48] sm:$0xf0]  ;;  %v534_v28 = vshll.u32 %v4456_v19, 16  ;;  %v765_v19 = vsel %vm750_vm0, %v763_v23, %v764_v33  ;;  %v323_v33 = vld [vmem:[%s4190_s22 + $0x50] sm:$0x1] }
  0x61   : > { %2296 = vrot.lane.b32.xlu0 %v2253_v32, %s4139_s23  ;;  %v3855_v32 = vld [vmem:[%s4190_s22 + $0x48] sm:$0xe] }
  0x62   : > { %v3856_v46 = vor.u32 %v3855_v32, %v3854_v31  ;;  %v536_v54 = vrot.slane %v534_v28, 1  ;;  %v1380_v32 = vrot.slane %v4451_v44, 1 }
  0x68   : > { %1421 = vrot.lane.b32.xlu1 %v1378_v40, %s4139_s23  ;;  %1293 = vrot.lane.b32.xlu2 %v1142_v58, %s4140_s24  ;;  %v2254_v40 = vrot.slane %v3856_v46, 1  ;;  %v4063_v58 = vor.u32 %v4062_v42, %v4418_v35  ;;  %v644_v35 = vrot.slane %v642_v5, 1  ;;  %v1959_v42 = vpack.c.b16 %v1943_v21, %v1943_v21 }
  0x69   : > { %805 = vrot.lane.b32.xlu0 %v762_v52, %s4139_s23  ;;  %v2255_v52 = vrot.slane %v4427_v30, 1  ;;  %v537_v30 = vsel %vm477_vm1, %v4350_v2, %v536_v54  ;;  %v640_v2 = vor.u32 %v639_v60, %v635_v18  ;;  %v4069_v46 = vor.u32 %v4068_v10, %v4438_v62  ;;  %v331_v60 = vld [vmem:[%s4190_s22 + $0xb0] sm:$0x1] }
  0x6a   : > { %v1379_v31 = vrot.slane %v4063_v58, 1  ;;  %v2038_v53 = vshll.u32 %v1959_v42, 16  ;;  %v2258_v54 = vrot.slane %v1959_v42, 1  ;;  %v4537_v18 = vpack.c.b16 %v1068_v49, %v1068_v49 }
  0x6b   : > { %v2256_v12 = vsel %vm750_vm0, %v2254_v40, %v2255_v52  ;;  %v645_v28 = vsel %vm477_vm1, %v640_v2, %v644_v35  ;;  %v3595_v40 = vld [vmem:[%s4190_s22 + $0x68] sm:$0x1]  ;;  %v790_v62 = vrot.slane %v4069_v46, 1  ;;  %v791_v52 = vrot.slane %v4483_v51, 1 }
  0x6c   : > { %v1381_v44 = vsel %vm750_vm0, %v1379_v31, %v1380_v32  ;;  %v2040_v3 = vrot.slane %v2038_v53, 1  ;;  %v1944_v6 = vunpack.c.l.b16 %v3595_v40  ;;  %v1163_v51 = vshll.u32 %v4537_v18, 16 }
  0x6d   : > { %v792_v9 = vsel %vm750_vm0, %v790_v62, %v791_v52  ;;  %v459_v10 = vunpack.c.l.b16 %v331_v60  ;;  %v2045_v21 = vshll.u32 %v3843_v8, 16  ;;  %v3857_v60 = vld [vmem:[%s4190_s22 + $0x60] sm:$0xf0] }
  0x6e   : > { %v4551_v35 = vpack.c.b16 %v1944_v6, %v1944_v6  ;;  %v1165_v1 = vrot.slane %v1163_v51, 1  ;;  %v3805_v51 = vld [vmem:[%s4190_s22 + $0xa8] sm:$0xf0] }
  0x6f   : > { %v4558_v23 = vpack.c.b16 %v459_v10, %v459_v10  ;;  %v3806_v10 = vld [vmem:[%s4190_s22 + $0xa8] sm:$0xe] }
  0x70   : > { %823 = vrot.lane.b32.xlu1 %v789_v27, %s4139_s23  ;;  %694 = vrot.lane.b32.xlu2 %v633_v14, %s4140_s24  ;;  %v1554_v27 = vsel %vm1552_vm2, %v3520_v38, 0  ;;  %v4066_v14 = vor.u32 %v4065_v7, %v4064_v56  ;;  %v450_v56 = vunpack.c.l.b16 %v322_v47  ;;  %v4072_v7 = vor.u32 %v4071_v48, %v4070_v26  ;;  %v3822_v47 = vld [vmem:[%s4190_s22 + $0x48] sm:$0xf0]  ;;  %v3823_v48 = vld [vmem:[%s4190_s22 + $0x48] sm:$0xe] }
  0x71   : > { %2170 = vrot.lane.b32.xlu0 %v2029_v41, %s4140_s24  ;;  %1563 = vmatpush.bf16.msra.mxu0 %v1554_v27  ;;  %v1166_v45 = vsel %vm477_vm1, %v4454_v11, %v1165_v1  ;;  %v654_v50 = vshll.u32 %v4558_v23, 16 }
  0x72   : > { %3872 = vmatpush.bf16.msra.mxu3 %v1554_v27  ;;  %v466_v58 = vpack.c.b16 %v450_v56, %v450_v56  ;;  %v766_v27 = vrot.slane %v4072_v7, 1 }
  0x73   : > { %v656_v52 = vrot.slane %v654_v50, 1 }
  0x74   : > { %v546_v2 = vshll.u32 %v466_v58, 16  ;;  %v767_v31 = vrot.slane %v466_v58, 1  ;;  %v1383_v58 = vrot.slane %v4537_v18, 1 }
  0x76   : > { %3873 = vmatpush.bf16.msrb.mxu3 %v4461_v22  ;;  %v2257_v22 = vrot.slane %v4066_v14, 1  ;;  %v548_v14 = vrot.slane %v546_v2, 1  ;;  %v768_v49 = vsel %vm750_vm0, %v766_v27, %v767_v31  ;;  %v3489_v2 = vld [vmem:[%s4190_s22 + $0x5c] sm:$0x1]  ;;  %v4606_v27 = vld [vmem:[%s4190_s22 + $0x6c] sm:$0xf0]  ;;  %v3807_v31 = vor.u32 %v3806_v10, %v3805_v51 }
  0x78   : > { %1295 = vrot.lane.b32.xlu1 %v1154_v4, %s4140_s24  ;;  %2298 = vrot.lane.b32.xlu2 %v2256_v12, %s4139_s23  ;;  %v541_v4 = vshll.u32 %v4516_v24, 16  ;;  %v2041_v12 = vsel %vm477_vm1, %v2036_v59, %v2040_v3  ;;  %v3858_v59 = vld [vmem:[%s4190_s22 + $0x60] sm:$0xe]  ;;  %v4582_v3 = vld [vmem:[%s4190_s22 + $0x54] sm:$0xff]  }
  0x79   : > { %678 = vrot.lane.b32.xlu0 %v537_v30, %s4140_s24  ;;  %v2259_v30 = vsel %vm750_vm0, %v2257_v22, %v2258_v54  ;;  %v3824_v22 = vor.u32 %v3823_v48, %v3822_v47  ;;  %v793_v48 = vrot.slane %v3807_v31, 1 }
  0x7a   : > { %v671_v41 = vpop.permute.xlu2 %670  ;;  %v543_v38 = vrot.slane %v541_v4, 1  ;;  %v4073_v4 = vld [vmem:[%s4190_s22 + $0x54] sm:$0xf0] }
  0x7b   : > { %v833_v26 = vsel %vm831_vm3, %v4219_v37, %v671_v41  ;;  %v2047_v41 = vrot.slane %v2045_v21, 1  ;;  %v4074_v21 = vld [vmem:[%s4190_s22 + $0x54] sm:$0xe] }
  0x7c   : > { %v544_v42 = vor.u32 %v543_v38, %v539_v15  ;;  %v3859_v38 = vor.u32 %v3858_v59, %v3857_v60  ;;  %v4075_v50 = vor.u32 %v4074_v21, %v4073_v4  ;;  %v4644_v4 = vld [vmem:[%s4190_s22 + $0x54] sm:$0xf0]  ;;  %v324_v21 = vld [vmem:[%s4190_s22 + $0x5c] sm:$0x1] }
  0x7e   : > { %v549_v53 = vsel %vm477_vm1, %v544_v42, %v548_v14  ;;  %v4616_v42 = vld [vmem:[%s4190_s22 + $0xb4] sm:$0xf0] }
  0x80   : > { %696 = vrot.lane.b32.xlu1 %v645_v28, %s4140_s24  ;;  %807 = vrot.lane.b32.xlu2 %v765_v19, %s4139_s23  ;;  %v2043_v28 = vshrl.u32 %v3843_v8, 16  ;;  %v451_v19 = vunpack.c.l.b16 %v323_v33  ;;  %v1069_v33 = vunpack.c.l.b16 %v3489_v2  ;;  %v3490_v2 = vld [vmem:[%s4190_s22 + $0x68] sm:$0x1] }
  0x81   : > { %1423 = vrot.lane.b32.xlu0 %v1381_v44, %s4139_s23  ;;  %v2050_v44 = vshll.u32 %v4551_v35, 16 }
  0x82   : > { %v4542_v5 = vpop.permute.xlu2 %1313  ;;  %v4573_v54 = vor.u32 %v2047_v41, %v2043_v28  ;;  %v4576_v40 = vpack.c.b16 %v451_v19, %v451_v19  ;;  %v2260_v28 = vrot.slane %v3859_v38, 1  ;;  %v3793_v41 = vld [vmem:[%s4190_s22 + $0x48] sm:$0xf0]  ;;  %v1170_v19 = vshll.u32 %v4582_v3, 16 }
  0x83   : > { %v2052_v56 = vrot.slane %v2050_v44, 1  ;;  %v3794_v44 = vld [vmem:[%s4190_s22 + $0x48] sm:$0xe] }
  0x84   : > { %v558_v15 = vshll.u32 %v4576_v40, 16  ;;  %v770_v10 = vrot.slane %v4576_v40, 1 }
  0x85   : > { %v2053_v8 = vsel %vm477_vm1, %v4573_v54, %v2052_v56 }
  0x88   : > { %2300 = vrot.lane.b32.xlu1 %v2259_v30, %s4139_s23  ;;  %2172 = vrot.lane.b32.xlu2 %v2041_v12, %s4140_s24  ;;  %v1382_v30 = vrot.slane %v3824_v22, 1 }
  0x89   : > { %825 = vrot.lane.b32.xlu0 %v792_v9, %s4139_s23 }
  0x8a   : > { %v4556_v32 = vpop.permute.xlu1 %1439  ;;  %v1288_v46 = vpop.permute.xlu2 %1287  ;;  %v1384_v18 = vsel %vm750_vm0, %v1382_v30, %v1383_v58  ;;  %v1172_v30 = vrot.slane %v1170_v19, 1  ;;  %v1385_v58 = vrot.slane %v4075_v50, 1 }
  0x8b   : > { %v800_v36 = vpop.permute.xlu0 %799  ;;  %v1448_v1 = vsel %vm831_vm3, %v4210_v25, %v1288_v46  ;;  %v3596_v46 = vld [vmem:[%s4190_s22 + $0x74] sm:$0x1] }
  0x8c   : > { %v866_v37 = vsel %vm864_vm4, %v833_v26, %v800_v36  ;;  %v4603_v26 = vld [vmem:[%s4190_s22 + $0x6c] sm:$0xff]   ;;  %v560_v36 = vrot.slane %v558_v15, 1 }
  0x8d   : > { %3541 = vmatmul.msk.bf16.vlgmr.msra.gmra.mxu1 %vm1519_vm5, %v866_v37  ;;  %v2261_v37 = vrot.slane %v4551_v35, 1  ;;  %v2057_v38 = vshll.u32 %v4603_v26, 16 }
  0x8e   : > { %v561_v56 = vsel %vm477_vm1, %v4454_v11, %v560_v36 }
  0x8f   : > { %v2262_v60 = vsel %vm750_vm0, %v2260_v28, %v2261_v37 }
  0x90   : > { %809 = vrot.lane.b32.xlu1 %v768_v49, %s4139_s23  ;;  %680 = vrot.lane.b32.xlu2 %v549_v53, %s4140_s24  ;;  %v794_v49 = vrot.slane %v4558_v23, 1  ;;  %v3795_v23 = vor.u32 %v3794_v44, %v3793_v41  ;;  %v1070_v41 = vunpack.c.l.b16 %v3490_v2  ;;  %v452_v44 = vunpack.c.l.b16 %v324_v21  ;;  %v3844_v21 = vld [vmem:[%s4190_s22 + $0x78] sm:$0xff]  }
  0x91   : > { %1297 = vrot.lane.b32.xlu0 %v1166_v45, %s4140_s24  ;;  %v1085_v45 = vpack.c.b16 %v1069_v33, %v1069_v33 }
  0x92   : > { %v2291_v62 = vpop.permute.xlu1 %2290  ;;  %v4590_v9 = vpop.permute.xlu2 %2292  ;;  %v795_v59 = vsel %vm750_vm0, %v793_v48, %v794_v49  ;;  %v769_v51 = vrot.slane %v3795_v23, 1  ;;  %v4677_v50 = vpack.c.b16 %v452_v44, %v452_v44  ;;  %v4715_v44 = vld [vmem:[%s4190_s22 + $0x18] sm:$0xff]  }
  0x93   : > { %v2163_v6 = vpop.permute.xlu0 %2162  ;;  %v1175_v11 = vshll.u32 %v1085_v45, 16 }
  0x94   : > { %v2323_v7 = vsel %vm831_vm3, %v4205_v16, %v2163_v6  ;;  %v657_v16 = vsel %vm477_vm1, %v4261_v20, %v656_v52  ;;  %v4613_v20 = vld [vmem:[%s4190_s22 + $0xb4] sm:$0xff]   ;;  %v771_v37 = vsel %vm750_vm0, %v769_v51, %v770_v10  ;;  %v570_v2 = vshll.u32 %v4677_v50, 16 }
  0x95   : > { %v2355_v12 = vsel %vm864_vm4, %v2323_v7, %v2291_v62  ;;  %v332_v62 = vld [vmem:[%s4190_s22 + $0xbc] sm:$0x1]  ;;  %v4077_v52 = vld [vmem:[%s4190_s22 + $0xb4] sm:$0xe]  ;;  %v1386_v7 = vrot.slane %v1085_v45, 1  ;;  %v661_v31 = vshll.u32 %v4613_v20, 16  ;;  %v4675_v45 = vpack.c.b16 %v1070_v41, %v1070_v41 }
  0x96   : > { %3627 = vmatmul.msk.bf16.vlgmr.msra.gmra.mxu2 %vm1519_vm5, %v2355_v12  ;;  %v4641_v6 = vld [vmem:[%s4190_s22 + $0x54] sm:$0xff]   ;;  %v4078_v36 = vor.u32 %v4077_v52, %v4616_v42  ;;  %v3601_v41 = vld [vmem:[%s4190_s22 + $0xb0] sm:$0x1] }
  0x97   : > { %v1387_v33 = vsel %vm750_vm0, %v1385_v58, %v1386_v7  ;;  %v663_v48 = vrot.slane %v661_v31, 1  ;;  %v565_v52 = vshll.u32 %v4641_v6, 16  ;;  %v4083_v31 = vld [vmem:[%s4190_s22 + $0x54] sm:$0xe] }
  0x98   : > { %2174 = vrot.lane.b32.xlu1 %v2053_v8, %s4140_s24  ;;  %1425 = vrot.lane.b32.xlu2 %v1384_v18, %s4139_s23  ;;  %v460_v8 = vunpack.c.l.b16 %v332_v62  ;;  %v1177_v18 = vrot.slane %v1175_v11, 1 }
  0x99   : > { %698 = vrot.lane.b32.xlu0 %v657_v16, %s4140_s24 }
  0x9a   : > { %v1416_v14 = vpop.permute.xlu1 %1415  ;;  %v4629_v53 = vpop.permute.xlu2 %801  ;;  %v476_v40 = vpack.c.b16 %v460_v8, %v460_v8 }
  0x9b   : > { %v1312_v47 = vpop.permute.xlu0 %1311  ;;  %v1480_v25 = vsel %vm864_vm4, %v1448_v1, %v1416_v14 }
  0x9c   : > { %v1472_v35 = vsel %vm831_vm3, %v4193_v0, %v1312_v47  ;;  %3521 = vmatmul.msk.bf16.vlgmr.msra.gmra.mxu0 %vm1519_vm5, %v1480_v25  ;;  %v1945_v0 = vunpack.c.l.b16 %v3596_v46  ;;  %v2059_v47 = vrot.slane %v2057_v38, 1  ;;  %v659_v46 = vshrl.u32 %v4613_v20, 16 }
  0x9d   : > { %v1504_v22 = vsel %vm864_vm4, %v1472_v35, %v4556_v32  ;;  %v1168_v32 = vshrl.u32 %v4582_v3, 16  ;;  %v666_v49 = vshll.u32 %v476_v40, 16  ;;  %v797_v19 = vrot.slane %v476_v40, 1  ;;  %v4080_v35 = vld [vmem:[%s4190_s22 + $0x6c] sm:$0xe] }
  0x9e   : > { %3533 = vmatmul.msk.bf16.vlgmr.msra.gmra.mxu3 %vm1519_vm5, %v1504_v22  ;;  %v4651_v15 = vpack.c.b16 %v1945_v0, %v1945_v0  ;;  %v3597_v22 = vld [vmem:[%s4190_s22 + $0x80] sm:$0x1]  ;;  %v664_v0 = vor.u32 %v663_v48, %v659_v46  ;;  %v1187_v38 = vshll.u32 %v4675_v45, 16  ;;  %v2067_v46 = vshrl.u32 %v3844_v21, 16 }
  0x9f   : > { %3874 = vmatpush.bf16.msra.mxu3 %v4492_v57  ;;  %v1173_v16 = vor.u32 %v1172_v30, %v1168_v32  ;;  %v4683_v32 = vld [vmem:[%s4190_s22 + $0xa8] sm:$0xff]   ;;  %v1946_v8 = vunpack.c.l.b16 %v3597_v22  ;;  %v1950_v22 = vunpack.c.l.b16 %v3601_v41  ;;  %v4771_v41 = vld [vmem:[%s4190_s22 + $0xb4] sm:$0xff]  }
  0xa0   : > { %682 = vrot.lane.b32.xlu1 %v561_v56, %s4140_s24  ;;  %827 = vrot.lane.b32.xlu2 %v795_v59, %s4139_s23  ;;  %v2062_v25 = vshll.u32 %v4651_v15, 16  ;;  %v668_v59 = vrot.slane %v666_v49, 1  ;;  %v1474_v30 = vsel %vm831_vm3, %v4683_v32, %v4542_v5  ;;  %v563_v5 = vshrl.u32 %v4641_v6, 16 }
  0xa1   : > { %2302 = vrot.lane.b32.xlu0 %v2262_v60, %s4139_s23  ;;  %v1178_v42 = vsel %vm477_vm1, %v1173_v16, %v1177_v18  ;;  %v4706_v16 = vpack.c.b16 %v1946_v8, %v1946_v8  ;;  %v2069_v18 = vshll.u32 %v3844_v21, 16  ;;  %v1389_v8 = vrot.slane %v4675_v45, 1  ;;  %v4749_v21 = vld [vmem:[%s4190_s22 + $0x30] sm:$0xff]  }
  0xa2   : > { %v1442_v12 = vpop.permute.xlu1 %1441  ;;  %v4662_v28 = vpop.permute.xlu2 %2166  ;;  %v2064_v62 = vrot.slane %v2062_v25, 1  ;;  %v2264_v25 = vrot.slane %v4651_v15, 1  ;;  %v3866_v15 = vld [vmem:[%s4190_s22 + $0xa8] sm:$0xf0] }
  0xa3   : > { %v2165_v57 = vpop.permute.xlu0 %2164  ;;  %v1506_v51 = vsel %vm864_vm4, %v1474_v30, %v1442_v12  ;;  %v567_v12 = vrot.slane %v565_v52, 1  ;;  %v2071_v48 = vrot.slane %v2069_v18, 1  ;;  %v2074_v49 = vshll.u32 %v4706_v16, 16  ;;  %v4732_v52 = vld [vmem:[%s4190_s22 + $0x6c] sm:$0xff]  }
  0xa4   : > { %v2325_v1 = vsel %vm831_vm3, %v4229_v43, %v2165_v57  ;;  %v2055_v43 = vshrl.u32 %v4603_v26, 16  ;;  %v4081_v57 = vor.u32 %v4080_v35, %v4606_v27 }
  0xa5   : > { %v2357_v14 = vsel %vm864_vm4, %v2325_v1, %v4590_v9  ;;  %v796_v9 = vrot.slane %v4078_v36, 1  ;;  %v1189_v1 = vrot.slane %v1187_v38, 1  ;;  %v568_v36 = vor.u32 %v567_v12, %v563_v5  ;;  %v3860_v38 = vld [vmem:[%s4190_s22 + $0x78] sm:$0xf0]  ;;  %v3491_v5 = vld [vmem:[%s4190_s22 + $0x74] sm:$0x1] }
  0xa6   : > { %3628 = vmatmul.msk.bf16.gmra.mxu2 %vm1519_vm5, %v2357_v14  ;;  %v2060_v23 = vor.u32 %v2059_v47, %v2055_v43  ;;  %v3825_v14 = vld [vmem:[%s4190_s22 + $0x60] sm:$0xf0]  ;;  %v2263_v47 = vrot.slane %v4081_v57, 1  ;;  %v2076_v30 = vrot.slane %v2074_v49, 1  ;;  %v773_v12 = vrot.slane %v4677_v50, 1 }
  0xa7   : > { %v798_v58 = vsel %vm750_vm0, %v796_v9, %v797_v19  ;;  %v1190_v19 = vsel %vm477_vm1, %v4573_v54, %v1189_v1  ;;  %v325_v50 = vld [vmem:[%s4190_s22 + $0x68] sm:$0x1] }
  0xa8   : > { %1427 = vrot.lane.b32.xlu1 %v1387_v33, %s4139_s23  ;;  %1299 = vrot.lane.b32.xlu2 %v1178_v42, %s4140_s24  ;;  %v572_v33 = vrot.slane %v570_v2, 1  ;;  %v3861_v2 = vld [vmem:[%s4190_s22 + $0x78] sm:$0xe] }
  0xa9   : > { %811 = vrot.lane.b32.xlu0 %v771_v37, %s4139_s23  ;;  %v3826_v37 = vld [vmem:[%s4190_s22 + $0x60] sm:$0xe]  ;;  %v3862_v1 = vor.u32 %v3861_v2, %v3860_v38 }
  0xaa   : > { %v1290_v56 = vpop.permute.xlu1 %1289  ;;  %v4691_v7 = vpop.permute.xlu2 %674  ;;  %v3827_v35 = vor.u32 %v3826_v37, %v3825_v14 }
  0xab   : > { %v673_v60 = vpop.permute.xlu0 %672  ;;  %v1450_v27 = vsel %vm831_vm3, %v4715_v44, %v1290_v56  ;;  %v573_v56 = vsel %vm477_vm1, %v568_v36, %v572_v33  ;;  %v2266_v49 = vrot.slane %v3862_v1, 1 }
  0xac   : > { %v835_v11 = vsel %vm831_vm3, %v4244_v63, %v673_v60  ;;  %v2065_v63 = vsel %vm477_vm1, %v2060_v23, %v2064_v62  ;;  %v3867_v23 = vld [vmem:[%s4190_s22 + $0xa8] sm:$0xe]  ;;  %v2265_v62 = vsel %vm750_vm0, %v2263_v47, %v2264_v25  ;;  %v4735_v60 = vld [vmem:[%s4190_s22 + $0x6c] sm:$0xf0] }
  0xad   : > { %v868_v10 = vsel %vm864_vm4, %v835_v11, %v4629_v53  ;;  %v669_v53 = vsel %vm477_vm1, %v664_v0, %v668_v59  ;;  %v4084_v0 = vor.u32 %v4083_v31, %v4644_v4  ;;  %v4739_v59 = vor.u32 %v2071_v48, %v2067_v46  ;;  %v4742_v11 = vld [vmem:[%s4190_s22 + $0xa8] sm:$0xff]  }
  0xae   : > { %3534 = vmatmul.msk.bf16.gmra.mxu3 %vm1519_vm5, %v1506_v51  ;;  %3542 = vmatmul.msk.bf16.gmra.mxu1 %vm1519_vm5, %v868_v10  ;;  %v1966_v51 = vpack.c.b16 %v1950_v22, %v1950_v22  ;;  %v3868_v10 = vor.u32 %v3867_v23, %v3866_v15  ;;  %v2327_v4 = vsel %vm831_vm3, %v4749_v21, %v4662_v28  ;;  %v2117_v31 = vshll.u32 %v4742_v11, 16  ;;  %v4778_v47 = vld [vmem:[%s4190_s22 + $0x84] sm:$0xff]   ;;  %v3602_v23 = vld [vmem:[%s4190_s22 + $0xbc] sm:$0x1] }
  0xaf   : > { %v772_v18 = vrot.slane %v4084_v0, 1  ;;  %v4781_v25 = vld [vmem:[%s4190_s22 + $0x84] sm:$0xf0]  ;;  %v3796_v22 = vld [vmem:[%s4190_s22 + $0x60] sm:$0xf0] }
  0xb0   : > { %829 = vrot.lane.b32.xlu1 %v798_v58, %s4139_s23  ;;  %700 = vrot.lane.b32.xlu2 %v669_v53, %s4140_s24  ;;  %v1388_v58 = vrot.slane %v3827_v35, 1  ;;  %v2278_v14 = vrot.slane %v3868_v10, 1  ;;  %v2279_v37 = vrot.slane %v1966_v51, 1  ;;  %v2119_v46 = vrot.slane %v2117_v31, 1  ;;  %v4815_v31 = vld [vmem:[%s4190_s22 + $0x6c] sm:$0xf0] }
  0xb1   : > { %2176 = vrot.lane.b32.xlu0 %v2065_v63, %s4140_s24  ;;  %v2122_v48 = vshll.u32 %v1966_v51, 16  ;;  %v453_v35 = vunpack.c.l.b16 %v325_v50  ;;  %v3598_v51 = vld [vmem:[%s4190_s22 + $0x8c] sm:$0x1] }
  0xb2   : > { %v1316_v40 = vpop.permute.xlu1 %1315  ;;  %v4722_v9 = vpop.permute.xlu2 %1419  ;;  %v1390_v36 = vsel %vm750_vm0, %v1388_v58, %v1389_v8  ;;  %v2280_v8 = vsel %vm750_vm0, %v2278_v14, %v2279_v37 }
  0xb3   : > { %v1418_v43 = vpop.permute.xlu0 %1417  ;;  %v1476_v45 = vsel %vm831_vm3, %v4268_v29, %v1316_v40  ;;  %v2077_v29 = vsel %vm477_vm1, %v4739_v59, %v2076_v30  ;;  %v1071_v40 = vunpack.c.l.b16 %v3491_v5  ;;  %v1194_v30 = vshll.u32 %v4732_v52, 16 }
  0xb4   : > { %v1482_v42 = vsel %vm864_vm4, %v1450_v27, %v1418_v43  ;;  %v4774_v27 = vld [vmem:[%s4190_s22 + $0xb4] sm:$0xf0]  ;;  %v774_v43 = vsel %vm750_vm0, %v772_v18, %v773_v12  ;;  %v2124_v38 = vrot.slane %v2122_v48, 1  ;;  %v4812_v18 = vld [vmem:[%s4190_s22 + $0x6c] sm:$0xff]   ;;  %v326_v48 = vld [vmem:[%s4190_s22 + $0x74] sm:$0x1] }
  0xb5   : > { %3522 = vmatmul.msk.bf16.gmra.mxu0 %vm1519_vm5, %v1482_v42  ;;  %v2115_v42 = vshrl.u32 %v4742_v11, 16  ;;  %v4789_v15 = vpack.c.b16 %v1071_v40, %v1071_v40  ;;  %v4086_v40 = vld [vmem:[%s4190_s22 + $0x6c] sm:$0xe] }
  0xb7   : > { %v2120_v10 = vor.u32 %v2119_v46, %v2115_v42  ;;  %v2081_v46 = vshll.u32 %v4778_v47, 16 }
  0xb8   : > { %1301 = vrot.lane.b32.xlu1 %v1190_v19, %s4140_s24  ;;  %2304 = vrot.lane.b32.xlu2 %v2265_v62, %s4139_s23  ;;  %v2267_v19 = vrot.slane %v4706_v16, 1  ;;  %v837_v62 = vsel %vm831_vm3, %v4715_v44, %v4691_v7  ;;  %v469_v7 = vpack.c.b16 %v453_v35, %v453_v35  ;;  %v4035_v35 = vld [vmem:[%s4190_s22 + $0xc0] sm:$0xff]  }
  0xb9   : > { %684 = vrot.lane.b32.xlu0 %v573_v56, %s4140_s24  ;;  %v3797_v56 = vld [vmem:[%s4190_s22 + $0x60] sm:$0xe] }
  0xba   : > { %v2295_v63 = vpop.permute.xlu1 %2294  ;;  %v4763_v33 = vpop.permute.xlu2 %1445  ;;  %v3798_v44 = vor.u32 %v3797_v56, %v3796_v22  ;;  %v2268_v12 = vsel %vm750_vm0, %v2266_v49, %v2267_v19  ;;  %v582_v1 = vshll.u32 %v469_v7, 16 }
  0xbb   : > { %v1444_v53 = vpop.permute.xlu0 %1443  ;;  %v2359_v57 = vsel %vm864_vm4, %v2327_v4, %v2295_v63  ;;  %v1951_v63 = vunpack.c.l.b16 %v3602_v23  ;;  %v2127_v23 = vshrl.u32 %v4771_v41, 16 }
  0xbc   : > { %3629 = vmatmul.msk.bf16.gmra.mxu2 %vm1519_vm5, %v2359_v57  ;;  %v1508_v28 = vsel %vm864_vm4, %v1476_v45, %v1444_v53  ;;  %v1192_v45 = vshrl.u32 %v4732_v52, 16  ;;  %v1196_v53 = vrot.slane %v1194_v30, 1  ;;  %v1947_v57 = vunpack.c.l.b16 %v3598_v51 }
  0xbd   : > { %v4819_v50 = vpack.c.b16 %v1951_v63, %v1951_v63  ;;  %v584_v19 = vrot.slane %v582_v1, 1  ;;  %v2079_v51 = vshrl.u32 %v4778_v47, 16  ;;  %v1392_v1 = vrot.slane %v4789_v15, 1 }
  0xbe   : > { %3535 = vmatmul.msk.bf16.gmra.mxu3 %vm1519_vm5, %v1508_v28  ;;  %v2125_v28 = vsel %vm477_vm1, %v2120_v10, %v2124_v38  ;;  %v1197_v37 = vor.u32 %v1196_v53, %v1192_v45  ;;  %v4824_v42 = vpack.c.b16 %v1947_v57, %v1947_v57  ;;  %v2083_v10 = vrot.slane %v2081_v46, 1  ;;  %v4095_v46 = vld [vmem:[%s4190_s22 + $0x6c] sm:$0xe] }
  0xbf   : > { %v589_v45 = vshll.u32 %v4812_v18, 16 }
  0xc0   : > { %2178 = vrot.lane.b32.xlu1 %v2077_v29, %s4140_s24  ;;  %813 = vrot.lane.b32.xlu2 %v774_v43, %s4139_s23  ;;  %v776_v29 = vrot.slane %v469_v7, 1  ;;  %v2086_v38 = vshll.u32 %v4824_v42, 16  ;;  %v585_v7 = vsel %vm477_vm1, %v4573_v54, %v584_v19 }
  0xc1   : > { %1429 = vrot.lane.b32.xlu0 %v1390_v36, %s4139_s23  ;;  %v2129_v36 = vshll.u32 %v4771_v41, 16 }
  0xc2   : > { %v804_v0 = vpop.permute.xlu1 %803  ;;  %v4803_v4 = vpop.permute.xlu2 %1293  ;;  %v2088_v57 = vrot.slane %v2086_v38, 1 }
  0xc3   : > { %v1292_v58 = vpop.permute.xlu0 %1291  ;;  %v870_v16 = vsel %vm864_vm4, %v837_v62, %v804_v0  ;;  %v2134_v62 = vshll.u32 %v4819_v50, 16 }
  0xc4   : > { %v1452_v2 = vsel %vm831_vm3, %v4313_v17, %v1292_v58  ;;  %3543 = vmatmul.msk.bf16.gmra.mxu1 %vm1519_vm5, %v870_v16  ;;  %v1199_v17 = vshll.u32 %v4789_v15, 16  ;;  %v2131_v58 = vrot.slane %v2129_v36, 1  ;;  %v454_v16 = vunpack.c.l.b16 %v326_v48 }
  0xc5   : > { %v1484_v5 = vsel %vm864_vm4, %v1452_v2, %v4722_v9  ;;  %v775_v9 = vrot.slane %v3798_v44, 1  ;;  %v4089_v2 = vld [vmem:[%s4190_s22 + $0xb4] sm:$0xe]  ;;  %v4087_v44 = vor.u32 %v4086_v40, %v4735_v60  ;;  %v587_v36 = vshrl.u32 %v4812_v18, 16 }
  0xc6   : > { %3523 = vmatmul.msk.bf16.gmra.mxu0 %vm1519_vm5, %v1484_v5  ;;  %v1201_v43 = vrot.slane %v1199_v17, 1  ;;  %v2132_v63 = vor.u32 %v2131_v58, %v2127_v23  ;;  %v2136_v5 = vrot.slane %v2134_v62, 1  ;;  %v2084_v17 = vor.u32 %v2083_v10, %v2079_v51  ;;  %v3829_v23 = vld [vmem:[%s4190_s22 + $0x78] sm:$0xe]  ;;  %v3603_v51 = vld [vmem:[%s4190_s22 + $0xc8] sm:$0x1] }
  0xc7   : > { %v777_v56 = vsel %vm750_vm0, %v775_v9, %v776_v29  ;;  %v4090_v15 = vor.u32 %v4089_v2, %v4774_v27  ;;  %v1454_v62 = vsel %vm831_vm3, %v4749_v21, %v4803_v4  ;;  %v2282_v58 = vrot.slane %v4819_v50, 1 }
  0xc8   : > { %2314 = vrot.lane.b32.xlu1 %v2280_v8, %s4139_s23  ;;  %2186 = vrot.lane.b32.xlu2 %v2125_v28, %s4140_s24  ;;  %v1202_v8 = vsel %vm477_vm1, %v1197_v37, %v1201_v43  ;;  %v1391_v28 = vrot.slane %v4087_v44, 1  ;;  %v2137_v40 = vsel %vm477_vm1, %v2132_v63, %v2136_v5  ;;  %v591_v37 = vrot.slane %v589_v45, 1  ;;  %v4893_v5 = vld [vmem:[%s4190_s22 + $0x84] sm:$0xff]  }
  0xc9   : > { %2306 = vrot.lane.b32.xlu0 %v2268_v12, %s4139_s23  ;;  %v4849_v12 = vpack.c.b16 %v454_v16, %v454_v16  ;;  %v2270_v4 = vrot.slane %v4824_v42, 1  ;;  %v4096_v44 = vor.u32 %v4095_v46, %v4815_v31  ;;  %v1952_v42 = vunpack.c.l.b16 %v3603_v51  ;;  %v4896_v45 = vld [vmem:[%s4190_s22 + $0x84] sm:$0xf0]  ;;  %v3493_v46 = vld [vmem:[%s4190_s22 + $0x8c] sm:$0x1] }
  0xca   : > { %v2169_v14 = vpop.permute.xlu1 %2168  ;;  %v4834_v0 = vpop.permute.xlu2 %694  ;;  %v1393_v48 = vsel %vm750_vm0, %v1391_v28, %v1392_v1  ;;  %v4904_v28 = vld [vmem:[%s4190_s22 + $0x90] sm:$0xff]  }
  0xcb   : > { %v1318_v49 = vpop.permute.xlu0 %1317  ;;  %v2329_v54 = vsel %vm831_vm3, %v4333_v39, %v2169_v14  ;;  %v594_v43 = vshll.u32 %v4849_v12, 16  ;;  %v3492_v39 = vld [vmem:[%s4190_s22 + $0x80] sm:$0x1]  ;;  %v2089_v14 = vsel %vm477_vm1, %v2084_v17, %v2088_v57  ;;  %v778_v1 = vrot.slane %v4096_v44, 1 }
  0xcc   : > { %v1478_v22 = vsel %vm831_vm3, %v4035_v35, %v1318_v49  ;;  %v1072_v19 = vunpack.c.l.b16 %v3492_v39  ;;  %v592_v35 = vor.u32 %v591_v37, %v587_v36  ;;  %v3864_v36 = vld [vmem:[%s4190_s22 + $0x90] sm:$0xe] }
  0xcd   : > { %v1510_v30 = vsel %vm864_vm4, %v1478_v22, %v4763_v33  ;;  %v4092_v33 = vld [vmem:[%s4190_s22 + $0x84] sm:$0xe]  ;;  %v596_v22 = vrot.slane %v594_v43, 1  ;;  %v4036_v37 = vld [vmem:[%s4190_s22 + $0x90] sm:$0xff]  }
  0xce   : > { %3536 = vmatmul.msk.bf16.gmra.mxu3 %vm1519_vm5, %v1510_v30  ;;  %v4093_v49 = vor.u32 %v4092_v33, %v4781_v25  ;;  %v2281_v30 = vrot.slane %v4090_v15, 1  ;;  %v1088_v38 = vpack.c.b16 %v1072_v19, %v1072_v19  ;;  %v3599_v33 = vld [vmem:[%s4190_s22 + $0x98] sm:$0x1]  ;;  %v857_v43 = vsel %vm831_vm3, %v4036_v37, %v4834_v0 }
  0xd0   : > { %815 = vrot.lane.b32.xlu1 %v777_v56, %s4139_s23  ;;  %686 = vrot.lane.b32.xlu2 %v585_v7, %s4140_s24  ;;  %v3828_v56 = vld [vmem:[%s4190_s22 + $0x78] sm:$0xf0]  ;;  %v2269_v10 = vrot.slane %v4093_v49, 1  ;;  %v2283_v63 = vsel %vm750_vm0, %v2281_v30, %v2282_v58  ;;  %v1211_v57 = vshll.u32 %v1088_v38, 16 }
  0xd1   : > { %1303 = vrot.lane.b32.xlu0 %v1202_v8, %s4140_s24  ;;  %v3830_v2 = vor.u32 %v3829_v23, %v3828_v56 }
  0xd2   : > { %v677_v53 = vpop.permute.xlu1 %676  ;;  %v4857_v29 = vpop.permute.xlu2 %2298  ;;  %v2271_v17 = vsel %vm750_vm0, %v2269_v10, %v2270_v4  ;;  %v1213_v19 = vrot.slane %v1211_v57, 1 }
  0xd3   : > { %v2297_v60 = vpop.permute.xlu0 %2296  ;;  %v839_v25 = vsel %vm831_vm3, %v4357_v13, %v677_v53  ;;  %v597_v13 = vsel %vm477_vm1, %v592_v35, %v596_v22  ;;  %v4899_v53 = vld [vmem:[%s4190_s22 + $0xc0] sm:$0xff]   ;;  %v1394_v31 = vrot.slane %v3830_v2, 1  ;;  %v2093_v35 = vshll.u32 %v4904_v28, 16  ;;  %v4922_v22 = vld [vmem:[%s4190_s22 + $0x48] sm:$0xff]  }
  0xd4   : > { %v2361_v9 = vsel %vm864_vm4, %v2329_v54, %v2297_v60  ;;  %v1395_v54 = vrot.slane %v1088_v38, 1  ;;  %v1948_v60 = vunpack.c.l.b16 %v3599_v33  ;;  %v2141_v15 = vshll.u32 %v4899_v53, 16 }
  0xd5   : > { %3630 = vmatmul.msk.bf16.gmra.mxu2 %vm1519_vm5, %v2361_v9  ;;  %v779_v9 = vrot.slane %v4849_v12, 1  ;;  %v327_v12 = vld [vmem:[%s4190_s22 + $0x80] sm:$0x1]  ;;  %v2139_v51 = vshrl.u32 %v4899_v53, 16  ;;  %v1214_v38 = vsel %vm477_vm1, %v4739_v59, %v1213_v19  ;;  %v2095_v2 = vrot.slane %v2093_v35, 1 }
  0xd6   : > { %v1396_v56 = vsel %vm750_vm0, %v1394_v31, %v1395_v54  ;;  %v1964_v23 = vpack.c.b16 %v1948_v60, %v1948_v60  ;;  %v2143_v10 = vrot.slane %v2141_v15, 1  ;;  %v3869_v15 = vld [vmem:[%s4190_s22 + $0xc0] sm:$0xf0] }
  0xd7   : > { %v780_v58 = vsel %vm750_vm0, %v778_v1, %v779_v9 }
  0xd8   : > { %2188 = vrot.lane.b32.xlu1 %v2137_v40, %s4140_s24  ;;  %1431 = vrot.lane.b32.xlu2 %v1393_v48, %s4139_s23  ;;  %v3863_v40 = vld [vmem:[%s4190_s22 + $0x90] sm:$0xf0]  ;;  %v2273_v33 = vrot.slane %v1964_v23, 1  ;;  %v2144_v31 = vor.u32 %v2143_v10, %v2139_v51  ;;  %v4980_v10 = vld [vmem:[%s4190_s22 + $0xcc] sm:$0xff]  }
  0xd9   : > { %2180 = vrot.lane.b32.xlu0 %v2089_v14, %s4140_s24  ;;  %v4913_v14 = vpack.c.b16 %v1952_v42, %v1952_v42  ;;  %v1218_v42 = vshll.u32 %v4893_v5, 16 }
  0xda   : > { %v1422_v27 = vpop.permute.xlu1 %1421  ;;  %v4885_v7 = vpop.permute.xlu2 %807 }
  0xdb   : > { %v806_v16 = vpop.permute.xlu0 %805  ;;  %v1486_v8 = vsel %vm864_vm4, %v1454_v62, %v1422_v27  ;;  %v3865_v62 = vor.u32 %v3864_v36, %v3863_v40  ;;  %v2146_v4 = vshll.u32 %v4913_v14, 16 }
  0xdc   : > { %3524 = vmatmul.msk.bf16.gmra.mxu0 %vm1519_vm5, %v1486_v8  ;;  %v872_v50 = vsel %vm864_vm4, %v839_v25, %v806_v16  ;;  %v1073_v25 = vunpack.c.l.b16 %v3493_v46  ;;  %v4934_v16 = vld [vmem:[%s4190_s22 + $0x9c] sm:$0xff]  }
  0xdd   : > { %3544 = vmatmul.msk.bf16.gmra.mxu1 %vm1519_vm5, %v872_v50  ;;  %v4937_v8 = vld [vmem:[%s4190_s22 + $0x9c] sm:$0xf0]  ;;  %v455_v50 = vunpack.c.l.b16 %v327_v12  ;;  %v2272_v44 = vrot.slane %v3865_v62, 1  ;;  %v2148_v54 = vrot.slane %v2146_v4, 1  ;;  %v1220_v12 = vrot.slane %v1218_v42, 1 }
  0xde   : > { %v3870_v46 = vld [vmem:[%s4190_s22 + $0xc0] sm:$0xe]  ;;  %v2105_v62 = vshll.u32 %v4934_v16, 16  ;;  %v4100_v4 = vld [vmem:[%s4190_s22 + $0xcc] sm:$0xf0]  ;;  %v2103_v42 = vshrl.u32 %v4934_v16, 16 }
  0xdf   : > { %v4951_v60 = vpack.c.b16 %v455_v50, %v455_v50  ;;  %v2274_v37 = vsel %vm750_vm0, %v2272_v44, %v2273_v33  ;;  %v3800_v44 = vld [vmem:[%s4190_s22 + $0x78] sm:$0xe] }
  0xe0   : > { %688 = vrot.lane.b32.xlu1 %v597_v13, %s4140_s24  ;;  %2308 = vrot.lane.b32.xlu2 %v2271_v17, %s4139_s23  ;;  %v2098_v13 = vshll.u32 %v1964_v23, 16  ;;  %v3600_v17 = vld [vmem:[%s4190_s22 + $0xa4] sm:$0x1]  ;;  %v3871_v23 = vor.u32 %v3870_v46, %v3869_v15 }
  0xe1   : > { %2316 = vrot.lane.b32.xlu0 %v2283_v63, %s4139_s23  ;;  %v4947_v63 = vpack.c.b16 %v1073_v25, %v1073_v25  ;;  %v606_v35 = vshll.u32 %v4951_v60, 16 }
  0xe2   : > { %v824_v39 = vpop.permute.xlu1 %823  ;;  %v4928_v27 = vpop.permute.xlu2 %2172  ;;  %v2100_v40 = vrot.slane %v2098_v13, 1  ;;  %v3799_v13 = vld [vmem:[%s4190_s22 + $0x78] sm:$0xf0] }
  0xe3   : > { %v890_v48 = vsel %vm864_vm4, %v857_v43, %v824_v39  ;;  %v2171_v49 = vpop.permute.xlu0 %2170  ;;  %v1949_v39 = vunpack.c.l.b16 %v3600_v17  ;;  %v1223_v19 = vshll.u32 %v4947_v63, 16  ;;  %v608_v51 = vrot.slane %v606_v35, 1 }
  0xe4   : > { %v2331_v0 = vsel %vm831_vm3, %v4922_v22, %v2171_v49  ;;  %3553 = vmatmul.msk.bf16.vlgmr.msrb.gmra.mxu3 %vm1519_vm5, %v890_v48  ;;  %v1216_v49 = vshrl.u32 %v4893_v5, 16  ;;  %v2107_v17 = vrot.slane %v2105_v62, 1  ;;  %v782_v62 = vrot.slane %v4951_v60, 1 }
  0xe5   : > { %v2363_v30 = vsel %vm864_vm4, %v2331_v0, %v4857_v29  ;;  %v2091_v29 = vshrl.u32 %v4904_v28, 16  ;;  %v4098_v0 = vld [vmem:[%s4190_s22 + $0x84] sm:$0xe] }
  0xe6   : > { %3631 = vmatmul.msk.bf16.gmra.mxu2 %vm1519_vm5, %v2363_v30  ;;  %v1221_v30 = vor.u32 %v1220_v12, %v1216_v49  ;;  %v2108_v15 = vor.u32 %v2107_v17, %v2103_v42  ;;  %v1398_v49 = vrot.slane %v4947_v63, 1  ;;  %v5006_v12 = vld [vmem:[%s4190_s22 + $0x84] sm:$0xff]  }
  0xe7   : > { %v4954_v9 = vor.u32 %v2095_v2, %v2091_v29  ;;  %v2284_v29 = vrot.slane %v3871_v23, 1  ;;  %v2285_v2 = vrot.slane %v4913_v14, 1  ;;  %v609_v14 = vsel %vm477_vm1, %v4739_v59, %v608_v51  ;;  %v4106_v59 = vld [vmem:[%s4190_s22 + $0x84] sm:$0xf0]  ;;  %v3494_v23 = vld [vmem:[%s4190_s22 + $0x98] sm:$0x1] }
  0xe8   : > { %1433 = vrot.lane.b32.xlu1 %v1396_v56, %s4139_s23  ;;  %1305 = vrot.lane.b32.xlu2 %v1214_v38, %s4140_s24  ;;  %v1074_v60 = vunpack.c.l.b16 %v3494_v23 }
  0xe9   : > { %817 = vrot.lane.b32.xlu0 %v780_v58, %s4139_s23  ;;  %v2101_v56 = vsel %vm477_vm1, %v4954_v9, %v2100_v40  ;;  %v1225_v58 = vrot.slane %v1223_v19, 1  ;;  %v4101_v40 = vld [vmem:[%s4190_s22 + $0xcc] sm:$0xe]  ;;  %v2333_v19 = vsel %vm831_vm3, %v4487_v55, %v4928_v27 }
  0xea   : > { %v1296_v57 = vpop.permute.xlu1 %1295  ;;  %v4959_v43 = vpop.permute.xlu2 %680 }
  0xeb   : > { %v679_v1 = vpop.permute.xlu0 %678  ;;  %v1456_v50 = vsel %vm831_vm3, %v4415_v34, %v1296_v57  ;;  %v1226_v34 = vsel %vm477_vm1, %v1221_v30, %v1225_v58  ;;  %v4099_v57 = vor.u32 %v4098_v0, %v4896_v45  ;;  %v2153_v30 = vshll.u32 %v4980_v10, 16 }
  0xec   : > { %v841_v36 = vsel %vm831_vm3, %v4749_v21, %v679_v1  ;;  %v2149_v21 = vsel %vm477_vm1, %v2144_v31, %v2148_v54  ;;  %v3604_v1 = vld [vmem:[%s4190_s22 + $0xd4] sm:$0x1] }
  0xed   : > { %v874_v48 = vsel %vm864_vm4, %v841_v36, %v4885_v7  ;;  %v4974_v7 = vpack.c.b16 %v1949_v39, %v1949_v39  ;;  %v3801_v36 = vor.u32 %v3800_v44, %v3799_v13  ;;  %v2286_v39 = vsel %vm750_vm0, %v2284_v29, %v2285_v2  ;;  %v4107_v29 = vld [vmem:[%s4190_s22 + $0x84] sm:$0xe] }
  0xee   : > { %3545 = vmatmul.msk.bf16.gmra.mxu1 %vm1519_vm5, %v874_v48  ;;  %v1397_v48 = vrot.slane %v4099_v57, 1  ;;  %v1953_v45 = vunpack.c.l.b16 %v3604_v1  ;;  %v2151_v13 = vshrl.u32 %v4980_v10, 16  ;;  %v2155_v44 = vrot.slane %v2153_v30, 1 }
  0xef   : > { %v2110_v31 = vshll.u32 %v4974_v7, 16  ;;  %v781_v35 = vrot.slane %v3801_v36, 1  ;;  %v2276_v57 = vrot.slane %v4974_v7, 1 }
  0xf0   : > { %2310 = vrot.lane.b32.xlu1 %v2274_v37, %s4139_s23  ;;  %2182 = vrot.lane.b32.xlu2 %v2101_v56, %s4140_s24  ;;  %v4104_v37 = vld [vmem:[%s4190_s22 + $0x9c] sm:$0xe]  ;;  %v1969_v51 = vpack.c.b16 %v1953_v45, %v1953_v45  ;;  %v2156_v36 = vor.u32 %v2155_v44, %v2151_v13 }
  0xf1   : > { %2190 = vrot.lane.b32.xlu0 %v2149_v21, %s4140_s24  ;;  %v2112_v46 = vrot.slane %v2110_v31, 1  ;;  %v783_v2 = vsel %vm750_vm0, %v781_v35, %v782_v62 }
  0xf2   : > { %v697_v25 = vpop.permute.xlu1 %696  ;;  %v4991_v54 = vpop.permute.xlu2 %1425  ;;  %v2288_v17 = vrot.slane %v1969_v51, 1 }
  0xf3   : > { %v1424_v38 = vpop.permute.xlu0 %1423  ;;  %v859_v0 = vsel %vm831_vm3, %v4435_v61, %v697_v25  ;;  %v2113_v27 = vsel %vm477_vm1, %v2108_v15, %v2112_v46  ;;  %v4102_v61 = vor.u32 %v4101_v40, %v4100_v4  ;;  %v1399_v25 = vsel %vm750_vm0, %v1397_v48, %v1398_v49 }
  0xf4   : > { %v1488_v33 = vsel %vm864_vm4, %v1456_v50, %v1424_v38  ;;  %v4105_v50 = vor.u32 %v4104_v37, %v4937_v8  ;;  %v328_v38 = vld [vmem:[%s4190_s22 + $0x8c] sm:$0x1]  ;;  %v843_v8 = vsel %vm831_vm3, %v4516_v24, %v4959_v43  ;;  %v4108_v48 = vor.u32 %v4107_v29, %v4106_v59 }
  0xf5   : > { %3525 = vmatmul.msk.bf16.gmra.mxu0 %vm1519_vm5, %v1488_v33  ;;  %v2158_v33 = vshll.u32 %v1969_v51, 16  ;;  %v2287_v42 = vrot.slane %v4102_v61, 1  ;;  %v456_v4 = vunpack.c.l.b16 %v328_v38  ;;  %v3831_v51 = vld [vmem:[%s4190_s22 + $0x90] sm:$0xf0]  ;;  %v3832_v61 = vld [vmem:[%s4190_s22 + $0x90] sm:$0xe] }
  0xf7   : > { %v2160_v37 = vrot.slane %v2158_v33, 1  ;;  %v2289_v7 = vsel %vm750_vm0, %v2287_v42, %v2288_v17  ;;  %v472_v46 = vpack.c.b16 %v456_v4, %v456_v4 }
  0xf8   : > { %1307 = vrot.lane.b32.xlu1 %v1226_v34, %s4140_s24  ;;  %2318 = vrot.lane.b32.xlu2 %v2286_v39, %s4139_s23  ;;  %v2275_v34 = vrot.slane %v4105_v50, 1  ;;  %v613_v39 = vshll.u32 %v5006_v12, 16 }
  0xf9   : > { %690 = vrot.lane.b32.xlu0 %v609_v14, %s4140_s24  ;;  %v1090_v14 = vpack.c.b16 %v1074_v60, %v1074_v60  ;;  %v3833_v60 = vor.u32 %v3832_v61, %v3831_v51 }
  0xfa   : > { %v2301_v21 = vpop.permute.xlu1 %2300  ;;  %v828_v55 = vpop.permute.xlu2 %827  ;;  %v2277_v49 = vsel %vm750_vm0, %v2275_v34, %v2276_v57  ;;  %v615_v35 = vrot.slane %v613_v39, 1 }
  0xfb   : > { %v826_v56 = vpop.permute.xlu0 %825  ;;  %v2365_v63 = vsel %vm864_vm4, %v2333_v19, %v2301_v21  ;;  %v1235_v45 = vshll.u32 %v1090_v14, 16  ;;  %v2161_v19 = vsel %vm477_vm1, %v2156_v36, %v2160_v37  ;;  %v611_v21 = vshrl.u32 %v5006_v12, 16 }
  0xfc   : > { %v892_v58 = vsel %vm864_vm4, %v859_v0, %v826_v56  ;;  %3632 = vmatmul.msk.bf16.gmra.mxu2 %vm1519_vm5, %v2365_v63  ;;  %v618_v0 = vshll.u32 %v472_v46, 16  ;;  %v785_v56 = vrot.slane %v472_v46, 1  ;;  %v1400_v44 = vrot.slane %v3833_v60, 1 }
  0xfd   : > { %3554 = vmatmul.msk.bf16.gmra.mxu3 %vm1519_vm5, %v892_v58  ;;  %v1237_v63 = vrot.slane %v1235_v45, 1  ;;  %v616_v62 = vor.u32 %v615_v35, %v611_v21  ;;  %v1401_v33 = vrot.slane %v1090_v14, 1 }
  0xfe   : > { %v620_v30 = vrot.slane %v618_v0, 1 }
  0xff   : > { %v1238_v38 = vsel %vm477_vm1, %v4954_v9, %v1237_v63  ;;  %v1402_v4 = vsel %vm750_vm0, %v1400_v44, %v1401_v33 }
 0x100   : > { %2184 = vrot.lane.b32.xlu1 %v2113_v27, %s4140_s24  ;;  %819 = vrot.lane.b32.xlu2 %v783_v2, %s4139_s23  ;;  %v621_v29 = vsel %vm477_vm1, %v616_v62, %v620_v30  ;;  %v5065_v2 = vld [vmem:[%s4190_s22 + $0x60] sm:$0xff]  }
 0x101   : > { %1435 = vrot.lane.b32.xlu0 %v1399_v25, %s4139_s23 }
 0x102   : > { %v810_v31 = vpop.permute.xlu1 %809  ;;  %v1300_v24 = vpop.permute.xlu2 %1299 }
 0x103   : > { %v1298_v1 = vpop.permute.xlu0 %1297  ;;  %v876_v40 = vsel %vm864_vm4, %v843_v8, %v810_v31  ;;  %v1460_v31 = vsel %vm831_vm3, %v4582_v3, %v1300_v24  ;;  %v5086_v3 = vld [vmem:[%s5681_s3] ss:$0 sm:$0xff] }
 0x104   : > { %v1458_v15 = vsel %vm831_vm3, %v4922_v22, %v1298_v1  ;;  %3546 = vmatmul.msk.bf16.gmra.mxu1 %vm1519_vm5, %v876_v40  ;;  %v5077_v1 = vld [vmem:[%s5680_s2] ss:$0 sm:$0xff] }
 0x105   : > { %v1490_v43 = vsel %vm864_vm4, %v1458_v15, %v4991_v54  ;;  %v784_v54 = vrot.slane %v4108_v48, 1 }
 0x106   : > { %3526 = vmatmul.msk.bf16.gmra.mxu0 %vm1519_vm5, %v1490_v43 }
 0x107   : > { %v786_v50 = vsel %vm750_vm0, %v784_v54, %v785_v56 }
 0x108   : > { %2320 = vrot.lane.b32.xlu1 %v2289_v7, %s4139_s23  ;;  %2192 = vrot.lane.b32.xlu2 %v2161_v19, %s4140_s24 }
 0x109   : > { %2312 = vrot.lane.b32.xlu0 %v2277_v49, %s4139_s23 }
 0x10a   : > { %v2175_v59 = vpop.permute.xlu1 %2174  ;;  %v701_v27 = vpop.permute.xlu2 %700 }
 0x10b   : > { %v699_v23 = vpop.permute.xlu0 %698  ;;  %v1694_v17 = vpop.f32.mrf.mxu1  ;;  %v863_v48 = vsel %vm831_vm3, %v4613_v20, %v701_v27 }
 0x10c   : > { %v861_v58 = vsel %vm831_vm3, %v4683_v32, %v699_v23 }
 0x10d   : > { %v894_v25 = vsel %vm864_vm4, %v861_v58, %v828_v55  ;;  %v2335_v55 = vsel %vm831_vm3, %v5065_v2, %v2175_v59 }
 0x10e   : > { %3555 = vmatmul.msk.bf16.gmra.mxu3 %vm1519_vm5, %v894_v25 }
 0x110   : > { %821 = vrot.lane.b32.xlu1 %v786_v50, %s4139_s23  ;;  %692 = vrot.lane.b32.xlu2 %v621_v29, %s4140_s24 }
 0x111   : > { %1309 = vrot.lane.b32.xlu0 %v1238_v38, %s4140_s24 }
 0x112   : > { %v683_v32 = vpop.permute.xlu1 %682  ;;  %v2305_v42 = vpop.permute.xlu2 %2304 }
 0x113   : > { %v2303_v13 = vpop.permute.xlu0 %2302  ;;  %v845_v40 = vsel %vm831_vm3, %v4922_v22, %v683_v32  ;;  %v1696_v7 = vpop.f32.mrf.mxu1 }
 0x114   : > { %v2367_v9 = vsel %vm864_vm4, %v2335_v55, %v2303_v13 }
 0x115   : > { %3633 = vmatmul.msk.bf16.gmra.mxu2 %vm1519_vm5, %v2367_v9 }
 0x118   : > { %1437 = vrot.lane.b32.xlu2 %v1402_v4, %s4139_s23 }
 0x119   : > { %v1565_v8 = vpop.f32.mrf.mxu0  ;;  %v2438_v34 = vpop.f32.mrf.mxu2 }
 0x11a   : > { %v1695_v57 = vadd.f32 %v1694_v17, %v1565_v8  ;;  %v1428_v14 = vpop.permute.xlu1 %1427  ;;  %v814_v24 = vpop.permute.xlu2 %813 }
 0x11b   : > { %v812_v36 = vpop.permute.xlu0 %811  ;;  %v1492_v37 = vsel %vm864_vm4, %v1460_v31, %v1428_v14 }
 0x11c   : > { %v2518_v39 = vadd.f32 %v2438_v34, %v1695_v57  ;;  %3527 = vmatmul.msk.bf16.gmra.mxu0 %vm1519_vm5, %v1492_v37  ;;  %v878_v15 = vsel %vm864_vm4, %v845_v40, %v812_v36 }
 0x11d   : > { %3547 = vmatmul.msk.bf16.gmra.mxu1 %vm1519_vm5, %v878_v15 }
 0x11e   : > { %v2554_v43 = vmul.f32 %v5077_v1, %v2518_v39 }
 0x120   : > { %v5093_v22 = vadd.f32 %v5086_v3, %v2554_v43 }
 0x121   : > { %v1567_v49 = vpop.f32.mrf.mxu0  ;;  %v5098_v19 = vpop.f32.mrf.mxu3 }
 0x122   : > { %v3643_v46 = vmul.f32 -1.442695, %v5093_v22  ;;  %v830_v45 = vpop.permute.xlu1 %829  ;;  %v1697_v21 = vadd.f32 %v1696_v7, %v1567_v49  ;;  %v2440_v54 = vpop.f32.mrf.mxu2 }
 0x123   : > { %v2177_v35 = vpop.permute.xlu0 %2176  ;;  %v896_v0 = vsel %vm864_vm4, %v863_v48, %v830_v45  ;;  %v2187_v59 = vpop.permute.xlu2 %2186  ;;  %v5142_v45 = vld [vmem:[%s4190_s22 + $0x78] sm:$0xff]  }
 0x124   : > { %3904 = vpow2.f32 %v3643_v46  ;;  %v2337_v56 = vsel %vm831_vm3, %v4603_v26, %v2177_v35  ;;  %3556 = vmatmul.msk.bf16.gmra.mxu3 %vm1519_vm5, %v896_v0  ;;  %v2519_v63 = vadd.f32 %v2440_v54, %v1697_v21  ;;  %v2347_v43 = vsel %vm831_vm3, %v4742_v11, %v2187_v59 }
 0x125   : > { %v2369_v23 = vsel %vm864_vm4, %v2337_v56, %v2305_v42 }
 0x126   : > { %3634 = vmatmul.msk.bf16.gmra.mxu2 %vm1519_vm5, %v2369_v23  ;;  %v2555_v20 = vmul.f32 %v5077_v1, %v2519_v63 }
 0x128   : > { %v5108_v62 = vadd.f32 %v5086_v3, %v2555_v20 }
 0x129   : > { %v5115_v50 = vpop.f32.mrf.mxu3 }
 0x12a   : > { %v3905_v30 = vpop.eup %3904  ;;  %v1302_v58 = vpop.permute.xlu1 %1301  ;;  %v3644_v51 = vmul.f32 -1.442695, %v5108_v62 }
 0x12b   : > { %v2718_v27 = vadd.f32 1.0, %v3905_v30  ;;  %v685_v61 = vpop.permute.xlu0 %684  ;;  %v5113_v25 = vpop.permute.xlu2 %686  ;;  %v1462_v44 = vsel %vm831_vm3, %v5065_v2, %v1302_v58 }
 0x12c   : > { %v847_v26 = vsel %vm831_vm3, %v4641_v6, %v685_v61  ;;  %v1699_v29 = vpop.f32.mrf.mxu1  ;;  %v2443_v60 = vpop.f32.mrf.mxu2 }
 0x12d   : > { %3906 = vrcp.f32 %v2718_v27  ;;  %v880_v38 = vsel %vm864_vm4, %v847_v26, %v814_v24  ;;  %v2761_v57 = vand.u32 2147483648, %v2718_v27  ;;  %v2759_v40 = vand.u32 2147483647, %v2718_v27 }
 0x12e   : > { %3908 = vpow2.f32 %v3644_v51  ;;  %3548 = vmatmul.msk.bf16.gmra.mxu1 %vm1519_vm5, %v880_v38  ;;  %vm2755_vm7 = vweird.f32 %v2718_v27 }
 0x12f   : > { %v2762_v49 = vor.u32 1.1754944e-38, %v2761_v57  ;;  %vm2760_vm9 = vcmp.eq.f32.partialorder %v2759_v40, 8.507059e+37 }
 0x131   : > { %v5128_v36 = vpop.f32.mrf.mxu3 }
 0x132   : > { %v1570_v32 = vpop.f32.mrf.mxu0  ;;  %v2179_v55 = vpop.permute.xlu1 %2178 }
 0x133   : > { %v3907_v13 = vpop.eup %3906  ;;  %v1700_v33 = vadd.f32 %v1699_v29, %v1570_v32  ;;  %v1430_v6 = vpop.permute.xlu0 %1429  ;;  %v2339_v21 = vsel %vm831_vm3, %v5142_v45, %v2179_v55 }
 0x134   : > { %v3909_v9 = vpop.eup %3908  ;;  %v2751_v42 = vmul.f32 %v3907_v13, %v2718_v27  ;;  %v1494_v17 = vsel %vm864_vm4, %v1462_v44, %v1430_v6  ;;  %v5122_v4 = vpop.permute.xlu2 %1431  ;;  %vm2756_vm6 = vweird.f32 %v3907_v13 }
 0x135   : > { %v5124_v8 = vadd.f32 1.0, %v3909_v9  ;;  %v2520_v31 = vadd.f32 %v2443_v60, %v1700_v33  ;;  %3528 = vmatmul.msk.bf16.gmra.mxu0 %vm1519_vm5, %v1494_v17  ;;  %v1701_v39 = vpop.f32.mrf.mxu1  ;;  %vm5137_vm8 = vmor %vm2755_vm7, %vm2756_vm6  ;;  %v2445_v11 = vpop.f32.mrf.mxu2 }
 0x136   : > { %v2752_v34 = vsub.f32 1.0, %v2751_v42 }
 0x137   : > { %3910 = vrcp.f32 %v5124_v8  ;;  %v2556_v37 = vmul.f32 %v5077_v1, %v2520_v31  ;;  %v2776_v38 = vand.u32 2147483648, %v5124_v8  ;;  %v2774_v55 = vand.u32 2147483647, %v5124_v8 }
 0x138   : > { %v2753_v14 = vmul.f32 %v3907_v13, %v2752_v34  ;;  %vm2770_vm11 = vweird.f32 %v5124_v8 }
 0x139   : > { %v5133_v24 = vadd.f32 %v5086_v3, %v2556_v37  ;;  %vm2775_vm13 = vcmp.eq.f32.partialorder %v2774_v55, 8.507059e+37 }
 0x13a   : > { %v2754_v15 = vadd.f32 %v3907_v13, %v2753_v14  ;;  %v1572_v7 = vpop.f32.mrf.mxu0  ;;  %v2315_v46 = vpop.permute.xlu1 %2314 }
 0x13b   : > { %v1702_v35 = vadd.f32 %v1701_v39, %v1572_v7  ;;  %v2379_v0 = vsel %vm864_vm4, %v2347_v43, %v2315_v46  ;;  %v2307_v54 = vpop.permute.xlu0 %2306  ;;  %v3645_v59 = vmul.f32 -1.442695, %v5133_v24 }
 0x13c   : > { %v2758_v56 = vsel %vm5137_vm8, %v3907_v13, %v2754_v15  ;;  %v2371_v63 = vsel %vm864_vm4, %v2339_v21, %v2307_v54  ;;  %3639 = vmatmul.msk.bf16.vlgmr.msra.gmra.mxu3 %vm1519_vm5, %v2379_v0  ;;  %v2309_v23 = vpop.permute.xlu2 %2308  ;;  %v5167_v13 = vpop.f32.mrf.mxu3 }
 0x13d   : > { %v3911_v20 = vpop.eup %3910  ;;  %v2763_v30 = vsel %vm2760_vm9, %v2762_v49, %v2758_v56  ;;  %v2521_v58 = vadd.f32 %v2445_v11, %v1702_v35  ;;  %3635 = vmatmul.msk.bf16.gmra.mxu2 %vm1519_vm5, %v2371_v63  ;;  %3912 = vpow2.f32 %v3645_v59 }
 0x13e   : > { %v3230_v27 = vmul.f32 %v2763_v30, %v5093_v22  ;;  %v2766_v51 = vmul.f32 %v3911_v20, %v5124_v8  ;;  %vm2771_vm10 = vweird.f32 %v3911_v20  ;;  %v849_v22 = vsel %vm831_vm3, %v5065_v2, %v5113_v25 }
 0x13f   : > { %v2557_v61 = vmul.f32 %v5077_v1, %v2521_v58  ;;  %v2448_v34 = vpop.f32.mrf.mxu2  ;;  %vm2772_vm12 = vmor %vm2770_vm11, %vm2771_vm10  ;;  %v2777_v25 = vor.u32 1.1754944e-38, %v2776_v38 }
 0x140   : > { %3262 = vst [vmem:[%s5155_s21] sm:$0xff] %v3230_v27  ;;  %v2767_v26 = vsub.f32 1.0, %v2766_v51 }
 0x141   : > { %v5164_v29 = vadd.f32 %v5086_v3, %v2557_v61  ;;  %v1704_v60 = vpop.f32.mrf.mxu1 }
 0x142   : > { %v2768_v32 = vmul.f32 %v3911_v20, %v2767_v26  ;;  %v816_v44 = vpop.permute.xlu1 %815 }
 0x143   : > { %v3646_v33 = vmul.f32 -1.442695, %v5164_v29  ;;  %v1304_v6 = vpop.permute.xlu0 %1303  ;;  %v1575_v9 = vpop.f32.mrf.mxu0  ;;  %v882_v42 = vsel %vm864_vm4, %v849_v22, %v816_v44 }
 0x144   : > { %v3913_v17 = vpop.eup %3912  ;;  %v2769_v31 = vadd.f32 %v3911_v20, %v2768_v32  ;;  %v1464_v57 = vsel %vm831_vm3, %v4732_v52, %v1304_v6  ;;  %v1705_v14 = vadd.f32 %v1704_v60, %v1575_v9  ;;  %3549 = vmatmul.msk.bf16.gmra.mxu1 %vm1519_vm5, %v882_v42  ;;  %v5178_v2 = vpop.permute.xlu2 %1305 }
 0x145   : > { %v2720_v40 = vadd.f32 1.0, %v3913_v17  ;;  %3914 = vpow2.f32 %v3646_v33  ;;  %v1496_v37 = vsel %vm864_vm4, %v1464_v57, %v5122_v4  ;;  %v5195_v11 = vpop.f32.mrf.mxu3 }
 0x146   : > { %v2773_v39 = vsel %vm2772_vm12, %v3911_v20, %v2769_v31  ;;  %v2522_v8 = vadd.f32 %v2448_v34, %v1705_v14  ;;  %3529 = vmatmul.msk.bf16.gmra.mxu0 %vm1519_vm5, %v1496_v37 }
 0x147   : > { %v2778_v52 = vsel %vm2775_vm13, %v2777_v25, %v2773_v39  ;;  %3916 = vrcp.f32 %v2720_v40  ;;  %v2450_v20 = vpop.f32.mrf.mxu2  ;;  %v2791_v51 = vand.u32 2147483648, %v2720_v40  ;;  %v2789_v26 = vand.u32 2147483647, %v2720_v40 }
 0x148   : > { %v3231_v15 = vmul.f32 %v2778_v52, %v5108_v62  ;;  %v2558_v43 = vmul.f32 %v5077_v1, %v2522_v8  ;;  %vm2785_vm15 = vweird.f32 %v2720_v40 }
 0x149   : > { %v1706_v7 = vpop.f32.mrf.mxu1  ;;  %v2792_v6 = vor.u32 1.1754944e-38, %v2791_v51  ;;  %vm2790_vm1 = vcmp.eq.f32.partialorder %v2789_v26, 8.507059e+37 }
 0x14a   : > { %3263 = vst [vmem:[%s5155_s21 + $0x8] sm:$0xff] %v3231_v15  ;;  %v5188_v46 = vadd.f32 %v5086_v3, %v2558_v43  ;;  %v2189_v48 = vpop.permute.xlu1 %2188  ;;  %v1466_v15 = vsel %vm831_vm3, %v5142_v45, %v5178_v2 }
 0x14b   : > { %v3915_v49 = vpop.eup %3914  ;;  %v2181_v21 = vpop.permute.xlu0 %2180 }
 0x14c   : > { %v1577_v4 = vpop.f32.mrf.mxu0  ;;  %v5190_v35 = vadd.f32 1.0, %v3915_v49  ;;  %v3647_v0 = vmul.f32 -1.442695, %v5188_v46  ;;  %v2341_v54 = vsel %vm831_vm3, %v4778_v47, %v2181_v21  ;;  %v5200_v30 = vpop.permute.xlu2 %2182 }
 0x14d   : > { %v1707_v56 = vadd.f32 %v1706_v7, %v1577_v4  ;;  %v3917_v62 = vpop.eup %3916  ;;  %v2373_v59 = vsel %vm864_vm4, %v2341_v54, %v2309_v23  ;;  %v2349_v23 = vsel %vm831_vm3, %v4771_v41, %v2189_v48  ;;  %v5214_v57 = vpop.f32.mrf.mxu3 }
 0x14e   : > { %v2781_v63 = vmul.f32 %v3917_v62, %v2720_v40  ;;  %3918 = vrcp.f32 %v5190_v35  ;;  %3636 = vmatmul.msk.bf16.gmra.mxu2 %vm1519_vm5, %v2373_v59  ;;  %vm2786_vm14 = vweird.f32 %v3917_v62  ;;  %v2806_v25 = vand.u32 2147483648, %v5190_v35 }
 0x14f   : > { %3920 = vpow2.f32 %v3647_v0  ;;  %v2523_v58 = vadd.f32 %v2450_v20, %v1707_v56  ;;  %vm2787_vm0 = vmor %vm2785_vm15, %vm2786_vm14  ;;  %v2804_v39 = vand.u32 2147483647, %v5190_v35  ;;  %vm2800_vm6 = vweird.f32 %v5190_v35 }
 0x150   : > { %v2782_v27 = vsub.f32 1.0, %v2781_v63  ;;  %v2807_v0 = vor.u32 1.1754944e-38, %v2806_v25 }
 0x151   : > { %v2559_v47 = vmul.f32 %v5077_v1, %v2523_v58  ;;  %vm2805_vm8 = vcmp.eq.f32.partialorder %v2804_v39, 8.507059e+37 }
 0x152   : > { %v2783_v61 = vmul.f32 %v3917_v62, %v2782_v27  ;;  %v689_v38 = vpop.permute.xlu1 %688 }
 0x153   : > { %v5206_v60 = vadd.f32 %v5086_v3, %v2559_v47  ;;  %v2317_v32 = vpop.permute.xlu0 %2316  ;;  %v851_v48 = vsel %vm831_vm3, %v4812_v18, %v689_v38 }
 0x154   : > { %v3919_v55 = vpop.eup %3918  ;;  %v2784_v22 = vadd.f32 %v3917_v62, %v2783_v61  ;;  %v2381_v44 = vsel %vm864_vm4, %v2349_v23, %v2317_v32  ;;  %v2319_v40 = vpop.permute.xlu2 %2318 }
 0x155   : > { %v3921_v33 = vpop.eup %3920  ;;  %v2796_v9 = vmul.f32 %v3919_v55, %v5190_v35  ;;  %v3648_v42 = vmul.f32 -1.442695, %v5206_v60  ;;  %3640 = vmatmul.msk.bf16.gmra.mxu3 %vm1519_vm5, %v2381_v44  ;;  %vm2801_vm2 = vweird.f32 %v3919_v55  ;;  %v5238_v51 = vpop.f32.mrf.mxu3 }
 0x156   : > { %v2788_v17 = vsel %vm2787_vm0, %v3917_v62, %v2784_v22  ;;  %v5212_v41 = vadd.f32 1.0, %v3921_v33  ;;  %vm2802_vm7 = vmor %vm2800_vm6, %vm2801_vm2 }
 0x157   : > { %v2793_v31 = vsel %vm2790_vm1, %v2792_v6, %v2788_v17  ;;  %v2797_v34 = vsub.f32 1.0, %v2796_v9  ;;  %3922 = vpow2.f32 %v3648_v42 }
 0x158   : > { %v3232_v14 = vmul.f32 %v2793_v31, %v5133_v24  ;;  %3924 = vrcp.f32 %v5212_v41  ;;  %v2453_v8 = vpop.f32.mrf.mxu2  ;;  %v2819_v26 = vand.u32 2147483647, %v5212_v41  ;;  %v2821_v38 = vand.u32 2147483648, %v5212_v41 }
 0x159   : > { %v2798_v37 = vmul.f32 %v3919_v55, %v2797_v34  ;;  %v1580_v52 = vpop.f32.mrf.mxu0  ;;  %vm2815_vm10 = vweird.f32 %v5212_v41 }
 0x15a   : > { %3264 = vst [vmem:[%s5155_s21 + $0x10] sm:$0xff] %v3232_v14  ;;  %v1709_v43 = vpop.f32.mrf.mxu1  ;;  %v1434_v24 = vpop.permute.xlu1 %1433  ;;  %v2822_v14 = vor.u32 1.1754944e-38, %v2821_v38  ;;  %vm2820_vm12 = vcmp.eq.f32.partialorder %v2819_v26, 8.507059e+37 }
 0x15b   : > { %v2799_v7 = vadd.f32 %v3919_v55, %v2798_v37  ;;  %v1710_v49 = vadd.f32 %v1709_v43, %v1580_v52  ;;  %v818_v21 = vpop.permute.xlu0 %817  ;;  %v1498_v4 = vsel %vm864_vm4, %v1466_v15, %v1434_v24 }
 0x15c   : > { %3530 = vmatmul.msk.bf16.gmra.mxu0 %vm1519_vm5, %v1498_v4  ;;  %v884_v35 = vsel %vm864_vm4, %v851_v48, %v818_v21  ;;  %v820_v9 = vpop.permute.xlu2 %819 }
 0x15d   : > { %v3923_v54 = vpop.eup %3922  ;;  %v2803_v56 = vsel %vm2802_vm7, %v3919_v55, %v2799_v7  ;;  %v2524_v2 = vadd.f32 %v2453_v8, %v1710_v49  ;;  %3550 = vmatmul.msk.bf16.gmra.mxu1 %vm1519_vm5, %v884_v35 }
 0x15e   : > { %v3925_v62 = vpop.eup %3924  ;;  %v2808_v59 = vsel %vm2805_vm8, %v2807_v0, %v2803_v56  ;;  %v5231_v18 = vadd.f32 1.0, %v3923_v54  ;;  %v5270_v0 = vpop.f32.mrf.mxu3 }
 0x15f   : > { %v3233_v63 = vmul.f32 %v2808_v59, %v5164_v29  ;;  %v2811_v20 = vmul.f32 %v3925_v62, %v5212_v41  ;;  %v2560_v58 = vmul.f32 %v5077_v1, %v2524_v2  ;;  %vm2816_vm9 = vweird.f32 %v3925_v62 }
 0x160   : > { %3926 = vrcp.f32 %v5231_v18  ;;  %v2343_v29 = vsel %vm831_vm3, %v4904_v28, %v5200_v30  ;;  %v2455_v42 = vpop.f32.mrf.mxu2  ;;  %vm2817_vm11 = vmor %vm2815_vm10, %vm2816_vm9  ;;  %v2834_v7 = vand.u32 2147483647, %v5231_v18  ;;  %vm2830_vm14 = vweird.f32 %v5231_v18 }
 0x161   : > { %3265 = vst [vmem:[%s5155_s21 + $0x18] sm:$0xff] %v3233_v63  ;;  %v2812_v27 = vsub.f32 1.0, %v2811_v20  ;;  %v5241_v47 = vadd.f32 %v5086_v3, %v2560_v58  ;;  %v1582_v61 = vpop.f32.mrf.mxu0 }
 0x162   : > { %v1711_v23 = vpop.f32.mrf.mxu1  ;;  %v2311_v32 = vpop.permute.xlu1 %2310  ;;  %vm2835_vm0 = vcmp.eq.f32.partialorder %v2834_v7, 8.507059e+37 }
 0x163   : > { %v2813_v55 = vmul.f32 %v3925_v62, %v2812_v27  ;;  %v3649_v22 = vmul.f32 -1.442695, %v5241_v47  ;;  %v1712_v44 = vadd.f32 %v1711_v23, %v1582_v61  ;;  %v2191_v33 = vpop.permute.xlu0 %2190  ;;  %v2375_v6 = vsel %vm864_vm4, %v2343_v29, %v2311_v32 }
 0x164   : > { %v2351_v17 = vsel %vm831_vm3, %v4899_v53, %v2191_v33  ;;  %3637 = vmatmul.msk.bf16.gmra.mxu2 %vm1519_vm5, %v2375_v6  ;;  %v2193_v54 = vpop.permute.xlu2 %2192 }
 0x165   : > { %v2814_v31 = vadd.f32 %v3925_v62, %v2813_v55  ;;  %3928 = vpow2.f32 %v3649_v22  ;;  %v2525_v28 = vadd.f32 %v2455_v42, %v1712_v44  ;;  %v2383_v30 = vsel %vm864_vm4, %v2351_v17, %v2319_v40 }
 0x166   : > { %v3927_v34 = vpop.eup %3926  ;;  %3641 = vmatmul.msk.bf16.gmra.mxu3 %vm1519_vm5, %v2383_v30  ;;  %v2836_v40 = vand.u32 2147483648, %v5231_v18  ;;  %v2353_v30 = vsel %vm831_vm3, %v4980_v10, %v2193_v54 }
 0x167   : > { %v2818_v25 = vsel %vm2817_vm11, %v3925_v62, %v2814_v31  ;;  %v2826_v41 = vmul.f32 %v3927_v34, %v5231_v18  ;;  %v2561_v53 = vmul.f32 %v5077_v1, %v2525_v28  ;;  %vm2831_vm13 = vweird.f32 %v3927_v34  ;;  %v5281_v55 = vpop.f32.mrf.mxu3 }
 0x168   : > { %v2823_v37 = vsel %vm2820_vm12, %v2822_v14, %v2818_v25  ;;  %vm2832_vm15 = vmor %vm2830_vm14, %vm2831_vm13  ;;  %v2837_v56 = vor.u32 1.1754944e-38, %v2836_v40 }
 0x169   : > { %v3234_v39 = vmul.f32 %v2823_v37, %v5188_v46  ;;  %v2827_v8 = vsub.f32 1.0, %v2826_v41  ;;  %v5261_v52 = vadd.f32 %v5086_v3, %v2561_v53  ;;  %v2458_v62 = vpop.f32.mrf.mxu2 }
 0x16a   : > { %v1308_v15 = vpop.permute.xlu1 %1307 }
 0x16b   : > { %v3929_v43 = vpop.eup %3928  ;;  %3266 = vst [vmem:[%s5155_s21 + $0x20] sm:$0xff] %v3234_v39  ;;  %v2828_v24 = vmul.f32 %v3927_v34, %v2827_v8  ;;  %v3650_v48 = vmul.f32 -1.442695, %v5261_v52  ;;  %v691_v49 = vpop.permute.xlu0 %690  ;;  %v1468_v27 = vsel %vm831_vm3, %v4893_v5, %v1308_v15 }
 0x16c   : > { %v2724_v21 = vadd.f32 1.0, %v3929_v43  ;;  %v853_v46 = vsel %vm831_vm3, %v5142_v45, %v691_v49  ;;  %v1714_v59 = vpop.f32.mrf.mxu1  ;;  %v693_v33 = vpop.permute.xlu2 %692 }
 0x16d   : > { %v2829_v4 = vadd.f32 %v3927_v34, %v2828_v24  ;;  %3930 = vpow2.f32 %v3650_v48  ;;  %v886_v35 = vsel %vm864_vm4, %v853_v46, %v820_v9 }
 0x16e   : > { %3932 = vrcp.f32 %v2724_v21  ;;  %3551 = vmatmul.msk.bf16.gmra.mxu1 %vm1519_vm5, %v886_v35  ;;  %v2851_v5 = vand.u32 2147483648, %v2724_v21  ;;  %v2849_v9 = vand.u32 2147483647, %v2724_v21  ;;  %vm2845_vm2 = vweird.f32 %v2724_v21 }
 0x16f   : > { %v2833_v2 = vsel %vm2832_vm15, %v3927_v34, %v2829_v4 }
 0x170   : > { %v2838_v45 = vsel %vm2835_vm0, %v2837_v56, %v2833_v2  ;;  %v2852_v40 = vor.u32 1.1754944e-38, %v2851_v5  ;;  %vm2850_vm7 = vcmp.eq.f32.partialorder %v2849_v9, 8.507059e+37 }
 0x171   : > { %v3235_v63 = vmul.f32 %v2838_v45, %v5206_v60  ;;  %v2460_v42 = vpop.f32.mrf.mxu2 }
 0x172   : > { %v1585_v18 = vpop.f32.mrf.mxu0  ;;  %v2185_v20 = vpop.permute.xlu1 %2184 }
 0x173   : > { %v3931_v58 = vpop.eup %3930  ;;  %3267 = vst [vmem:[%s5155_s21 + $0x28] sm:$0xff] %v3235_v63  ;;  %v1715_v61 = vadd.f32 %v1714_v59, %v1585_v18  ;;  %v1436_v26 = vpop.permute.xlu0 %1435  ;;  %v2345_v28 = vsel %vm831_vm3, %v4934_v16, %v2185_v20 }
 0x174   : > { %v3933_v38 = vpop.eup %3932  ;;  %v5278_v29 = vadd.f32 1.0, %v3931_v58  ;;  %v1500_v23 = vsel %vm864_vm4, %v1468_v27, %v1436_v26  ;;  %v1716_v31 = vpop.f32.mrf.mxu1 }
 0x175   : > { %v2841_v32 = vmul.f32 %v3933_v38, %v2724_v21  ;;  %v2526_v22 = vadd.f32 %v2458_v62, %v1715_v61  ;;  %3531 = vmatmul.msk.bf16.gmra.mxu0 %vm1519_vm5, %v1500_v23  ;;  %vm2846_vm1 = vweird.f32 %v3933_v38  ;;  %v5302_v21 = vpop.f32.mrf.mxu3  ;;  %v1438_v56 = vpop.permute.xlu2 %1437 }
 0x176   : > { %3934 = vrcp.f32 %v5278_v29  ;;  %vm2847_vm6 = vmor %vm2845_vm2, %vm2846_vm1  ;;  %v2866_v49 = vand.u32 2147483648, %v5278_v29  ;;  %v2864_v35 = vand.u32 2147483647, %v5278_v29  ;;  %vm2860_vm9 = vweird.f32 %v5278_v29 }
 0x177   : > { %v2842_v60 = vsub.f32 1.0, %v2841_v32  ;;  %v2562_v44 = vmul.f32 %v5077_v1, %v2526_v22 }
 0x178   : > { %v2867_v18 = vor.u32 1.1754944e-38, %v2866_v49  ;;  %vm2865_vm11 = vcmp.eq.f32.partialorder %v2864_v35, 8.507059e+37 }
 0x179   : > { %v2843_v6 = vmul.f32 %v3933_v38, %v2842_v60  ;;  %v5287_v17 = vadd.f32 %v5086_v3, %v2562_v44 }
 0x17a   : > { %v1587_v34 = vpop.f32.mrf.mxu0  ;;  %v2321_v14 = vpop.permute.xlu1 %2320 }
 0x17b   : > { %v2844_v25 = vadd.f32 %v3933_v38, %v2843_v6  ;;  %v3651_v41 = vmul.f32 -1.442695, %v5287_v17  ;;  %v1717_v53 = vadd.f32 %v1716_v31, %v1587_v34  ;;  %v2313_v37 = vpop.permute.xlu0 %2312  ;;  %v2385_v39 = vsel %vm864_vm4, %v2353_v30, %v2321_v14 }
 0x17c   : > { %v3935_v8 = vpop.eup %3934  ;;  %v2377_v15 = vsel %vm864_vm4, %v2345_v28, %v2313_v37  ;;  %3642 = vmatmul.msk.bf16.gmra.mxu3 %vm1519_vm5, %v2385_v39 }
 0x17d   : > { %v2848_v16 = vsel %vm2847_vm6, %v3933_v38, %v2844_v25  ;;  %v2856_v10 = vmul.f32 %v3935_v8, %v5278_v29  ;;  %3936 = vpow2.f32 %v3651_v41  ;;  %3638 = vmatmul.msk.bf16.gmra.mxu2 %vm1519_vm5, %v2377_v15  ;;  %v2527_v24 = vadd.f32 %v2460_v42, %v1717_v53  ;;  %v4040_v38 = vld [vmem:[%s4190_s22 + $0x90] sm:$0xff]  }
 0x17e   : > { %v2853_v43 = vsel %vm2850_vm7, %v2852_v40, %v2848_v16  ;;  %vm2861_vm8 = vweird.f32 %v3935_v8 }
 0x17f   : > { %v3236_v7 = vmul.f32 %v2853_v43, %v5241_v47  ;;  %v2857_v48 = vsub.f32 1.0, %v2856_v10  ;;  %v2563_v46 = vmul.f32 %v5077_v1, %v2527_v24  ;;  %v855_v47 = vsel %vm831_vm3, %v5006_v12, %v693_v33  ;;  %v2463_v62 = vpop.f32.mrf.mxu2  ;;  %vm2862_vm10 = vmor %vm2860_vm9, %vm2861_vm8 }
 0x180   : > { %v5322_v44 = vpop.f32.mrf.mxu3 }
 0x181   : > { %3268 = vst [vmem:[%s5155_s21 + $0x30] sm:$0xff] %v3236_v7  ;;  %v2858_v4 = vmul.f32 %v3935_v8, %v2857_v48  ;;  %v1719_v54 = vpop.f32.mrf.mxu1  ;;  %v5308_v2 = vadd.f32 %v5086_v3, %v2563_v46 }
 0x182   : > { %v822_v59 = vpop.permute.xlu1 %821 }
 0x183   : > { %v3937_v45 = vpop.eup %3936  ;;  %v2859_v63 = vadd.f32 %v3935_v8, %v2858_v4  ;;  %v1310_v20 = vpop.permute.xlu0 %1309  ;;  %v888_v27 = vsel %vm864_vm4, %v855_v47, %v822_v59  ;;  %v3652_v26 = vmul.f32 -1.442695, %v5308_v2 }
 0x184   : > { %v1590_v58 = vpop.f32.mrf.mxu0  ;;  %v2726_v61 = vadd.f32 1.0, %v3937_v45  ;;  %v1470_v12 = vsel %vm831_vm3, %v4040_v38, %v1310_v20  ;;  %3552 = vmatmul.msk.bf16.gmra.mxu1 %vm1519_vm5, %v888_v27 }
 0x185   : > { %v1720_v23 = vadd.f32 %v1719_v54, %v1590_v58  ;;  %v2863_v32 = vsel %vm2862_vm10, %v3935_v8, %v2859_v63  ;;  %v1502_v29 = vsel %vm864_vm4, %v1470_v12, %v1438_v56 }
 0x186   : > { %v2868_v22 = vsel %vm2865_vm11, %v2867_v18, %v2863_v32  ;;  %3938 = vrcp.f32 %v2726_v61  ;;  %3532 = vmatmul.msk.bf16.gmra.mxu0 %vm1519_vm5, %v1502_v29  ;;  %v2881_v37 = vand.u32 2147483648, %v2726_v61  ;;  %v2879_v8 = vand.u32 2147483647, %v2726_v61 }
 0x187   : > { %v3237_v60 = vmul.f32 %v2868_v22, %v5261_v52  ;;  %3940 = vpow2.f32 %v3652_v26  ;;  %v2528_v33 = vadd.f32 %v2463_v62, %v1720_v23  ;;  %v2465_v25 = vpop.f32.mrf.mxu2  ;;  %vm2875_vm4 = vweird.f32 %v2726_v61 }
 0x188   : > { %v5330_v40 = vpop.f32.mrf.mxu3  ;;  %v2882_v43 = vor.u32 1.1754944e-38, %v2881_v37  ;;  %vm2880_vm12 = vcmp.eq.f32.partialorder %v2879_v8, 8.507059e+37 }
 0x189   : > { %3269 = vst [vmem:[%s5155_s21 + $0x38] sm:$0xff] %v3237_v60  ;;  %v2564_v5 = vmul.f32 %v5077_v1, %v2528_v33  ;;  %v1721_v6 = vpop.f32.mrf.mxu1 }
 0x18b   : > { %v5327_v9 = vadd.f32 %v5086_v3, %v2564_v5 }
 0x18c   : > { %v1592_v42 = vpop.f32.mrf.mxu0  ;;  %v3939_v31 = vpop.eup %3938 }
 0x18d   : > { %v1722_v28 = vadd.f32 %v1721_v6, %v1592_v42  ;;  %v3941_v30 = vpop.eup %3940  ;;  %v2871_v34 = vmul.f32 %v3939_v31, %v2726_v61  ;;  %v3653_v14 = vmul.f32 -1.442695, %v5327_v9  ;;  %vm2876_vm3 = vweird.f32 %v3939_v31 }
 0x18e   : > { %v2727_v52 = vadd.f32 1.0, %v3941_v30  ;;  %vm2877_vm5 = vmor %vm2875_vm4, %vm2876_vm3 }
 0x18f   : > { %v2529_v41 = vadd.f32 %v2465_v25, %v1722_v28  ;;  %v2872_v53 = vsub.f32 1.0, %v2871_v34  ;;  %3942 = vpow2.f32 %v3653_v14 }
 0x190   : > { %3944 = vrcp.f32 %v2727_v52  ;;  %v2896_v62 = vand.u32 2147483648, %v2727_v52  ;;  %v2894_v18 = vand.u32 2147483647, %v2727_v52  ;;  %vm2890_vm14 = vweird.f32 %v2727_v52 }
 0x191   : > { %v2873_v39 = vmul.f32 %v3939_v31, %v2872_v53  ;;  %v2565_v15 = vmul.f32 %v5077_v1, %v2529_v41  ;;  %v5339_v20 = vpop.f32.mrf.mxu3 }
 0x192   : > { %v2897_v38 = vor.u32 1.1754944e-38, %v2896_v62  ;;  %vm2895_vm0 = vcmp.eq.f32.partialorder %v2894_v18, 8.507059e+37 }
 0x193   : > { %v2874_v16 = vadd.f32 %v3939_v31, %v2873_v39  ;;  %v5334_v10 = vadd.f32 %v5086_v3, %v2565_v15 }
 0x195   : > { %v3943_v24 = vpop.eup %3942  ;;  %v2878_v7 = vsel %vm2877_vm5, %v3939_v31, %v2874_v16  ;;  %v3654_v48 = vmul.f32 -1.442695, %v5334_v10 }
 0x196   : > { %v3945_v49 = vpop.eup %3944  ;;  %v2883_v46 = vsel %vm2880_vm12, %v2882_v43, %v2878_v7  ;;  %v2728_v4 = vadd.f32 1.0, %v3943_v24 }
 0x197   : > { %v3238_v35 = vmul.f32 %v2883_v46, %v5287_v17  ;;  %v2886_v54 = vmul.f32 %v3945_v49, %v2727_v52  ;;  %3946 = vpow2.f32 %v3654_v48  ;;  %vm2891_vm13 = vweird.f32 %v3945_v49 }
 0x198   : > { %3948 = vrcp.f32 %v2728_v4  ;;  %v2468_v59 = vpop.f32.mrf.mxu2  ;;  %vm2892_vm15 = vmor %vm2890_vm14, %vm2891_vm13  ;;  %v2909_v42 = vand.u32 2147483647, %v2728_v4  ;;  %v2911_v31 = vand.u32 2147483648, %v2728_v4  ;;  %vm2905_vm2 = vweird.f32 %v2728_v4 }
 0x199   : > { %3270 = vst [vmem:[%s5155_s21 + $0x40] sm:$0xff] %v3238_v35  ;;  %v2887_v56 = vsub.f32 1.0, %v2886_v54  ;;  %v1595_v47 = vpop.f32.mrf.mxu0  ;;  %v5348_v41 = vpop.f32.mrf.mxu3 }
 0x19a   : > { %v1724_v45 = vpop.f32.mrf.mxu1  ;;  %v2912_v37 = vor.u32 1.1754944e-38, %v2911_v31  ;;  %vm2910_vm7 = vcmp.eq.f32.partialorder %v2909_v42, 8.507059e+37 }
 0x19b   : > { %v2888_v63 = vmul.f32 %v3945_v49, %v2887_v56  ;;  %v1725_v58 = vadd.f32 %v1724_v45, %v1595_v47 }
 0x19d   : > { %v3947_v27 = vpop.eup %3946  ;;  %v2889_v61 = vadd.f32 %v3945_v49, %v2888_v63  ;;  %v2530_v26 = vadd.f32 %v2468_v59, %v1725_v58 }
 0x19e   : > { %v3949_v17 = vpop.eup %3948  ;;  %v2729_v12 = vadd.f32 1.0, %v3947_v27 }
 0x19f   : > { %v2893_v23 = vsel %vm2892_vm15, %v3945_v49, %v2889_v61  ;;  %v2901_v32 = vmul.f32 %v3949_v17, %v2728_v4  ;;  %v2566_v29 = vmul.f32 %v5077_v1, %v2530_v26  ;;  %vm2906_vm1 = vweird.f32 %v3949_v17 }
 0x1a0   : > { %v2898_v22 = vsel %vm2895_vm0, %v2897_v38, %v2893_v23  ;;  %3950 = vrcp.f32 %v2729_v12  ;;  %v2470_v25 = vpop.f32.mrf.mxu2  ;;  %vm2907_vm6 = vmor %vm2905_vm2, %vm2906_vm1  ;;  %v2926_v48 = vand.u32 2147483648, %v2729_v12  ;;  %v2924_v4 = vand.u32 2147483647, %v2729_v12 }
 0x1a1   : > { %v3239_v60 = vmul.f32 %v2898_v22, %v5308_v2  ;;  %v2902_v33 = vsub.f32 1.0, %v2901_v32  ;;  %v5344_v5 = vadd.f32 %v5086_v3, %v2566_v29  ;;  %v1597_v6 = vpop.f32.mrf.mxu0  ;;  %vm2920_vm9 = vweird.f32 %v2729_v12 }
 0x1a2   : > { %v1726_v28 = vpop.f32.mrf.mxu1  ;;  %vm2925_vm11 = vcmp.eq.f32.partialorder %v2924_v4, 8.507059e+37 }
 0x1a3   : > { %3271 = vst [vmem:[%s5155_s21 + $0x48] sm:$0xff] %v3239_v60  ;;  %v2903_v30 = vmul.f32 %v3949_v17, %v2902_v33  ;;  %v3655_v34 = vmul.f32 -1.442695, %v5344_v5  ;;  %v1727_v14 = vadd.f32 %v1726_v28, %v1597_v6 }
 0x1a5   : > { %v2904_v52 = vadd.f32 %v3949_v17, %v2903_v30  ;;  %3952 = vpow2.f32 %v3655_v34  ;;  %v2531_v2 = vadd.f32 %v2470_v25, %v1727_v14 }
 0x1a6   : > { %v3951_v53 = vpop.eup %3950 }
 0x1a7   : > { %v2908_v39 = vsel %vm2907_vm6, %v3949_v17, %v2904_v52  ;;  %v2916_v8 = vmul.f32 %v3951_v53, %v2729_v12  ;;  %v2567_v15 = vmul.f32 %v5077_v1, %v2531_v2  ;;  %vm2921_vm8 = vweird.f32 %v3951_v53  ;;  %v5357_v47 = vpop.f32.mrf.mxu3 }
 0x1a8   : > { %v2913_v16 = vsel %vm2910_vm7, %v2912_v37, %v2908_v39  ;;  %vm2922_vm10 = vmor %vm2920_vm9, %vm2921_vm8 }
 0x1a9   : > { %v3240_v43 = vmul.f32 %v2913_v16, %v5327_v9  ;;  %v2917_v24 = vsub.f32 1.0, %v2916_v8  ;;  %v5353_v7 = vadd.f32 %v5086_v3, %v2567_v15  ;;  %v2927_v9 = vor.u32 1.1754944e-38, %v2926_v48  ;;  %v2473_v18 = vpop.f32.mrf.mxu2  ;;  %v5374_v16 = vld [vmem:[%s5680_s2] ss:$0 sm:$0xff] }
 0x1ab   : > { %v3953_v49 = vpop.eup %3952  ;;  %3272 = vst [vmem:[%s5155_s21 + $0x50] sm:$0xff] %v3240_v43  ;;  %v2918_v46 = vmul.f32 %v3951_v53, %v2917_v24  ;;  %v3656_v35 = vmul.f32 -1.442695, %v5353_v7  ;;  %v1729_v59 = vpop.f32.mrf.mxu1 }
 0x1ac   : > { %v2730_v54 = vadd.f32 1.0, %v3953_v49 }
 0x1ad   : > { %v2919_v56 = vadd.f32 %v3951_v53, %v2918_v46  ;;  %3954 = vpow2.f32 %v3656_v35 }
 0x1ae   : > { %3956 = vrcp.f32 %v2730_v54  ;;  %v2941_v22 = vand.u32 2147483648, %v2730_v54  ;;  %v2939_v33 = vand.u32 2147483647, %v2730_v54  ;;  %vm2935_vm4 = vweird.f32 %v2730_v54 }
 0x1af   : > { %v2923_v62 = vsel %vm2922_vm10, %v3951_v53, %v2919_v56  ;;  %v5361_v32 = vpop.f32.mrf.mxu3 }
 0x1b0   : > { %v2928_v45 = vsel %vm2925_vm11, %v2927_v9, %v2923_v62  ;;  %v2942_v25 = vor.u32 1.1754944e-38, %v2941_v22  ;;  %vm2940_vm12 = vcmp.eq.f32.partialorder %v2939_v33, 8.507059e+37 }
 0x1b1   : > { %v3241_v63 = vmul.f32 %v2928_v45, %v5334_v10  ;;  %v2475_v28 = vpop.f32.mrf.mxu2 }
 0x1b2   : > { %v1600_v58 = vpop.f32.mrf.mxu0 }
 0x1b3   : > { %v3955_v27 = vpop.eup %3954  ;;  %3273 = vst [vmem:[%s5155_s21 + $0x58] sm:$0xff] %v3241_v63  ;;  %v1730_v61 = vadd.f32 %v1729_v59, %v1600_v58  ;;  %v1731_v6 = vpop.f32.mrf.mxu1  ;;  %v1757_v58 = vadd.f32 %v5302_v21, %v5115_v50 }
 0x1b4   : > { %v3957_v26 = vpop.eup %3956  ;;  %v2731_v17 = vadd.f32 1.0, %v3955_v27 }
 0x1b5   : > { %v2931_v38 = vmul.f32 %v3957_v26, %v2730_v54  ;;  %v2532_v12 = vadd.f32 %v2473_v18, %v1730_v61  ;;  %vm2936_vm3 = vweird.f32 %v3957_v26 }
 0x1b6   : > { %3958 = vrcp.f32 %v2731_v17  ;;  %vm2937_vm5 = vmor %vm2935_vm4, %vm2936_vm3  ;;  %v2956_v8 = vand.u32 2147483648, %v2731_v17  ;;  %v2954_v49 = vand.u32 2147483647, %v2731_v17  ;;  %vm2950_vm14 = vweird.f32 %v2731_v17 }
 0x1b7   : > { %v2932_v23 = vsub.f32 1.0, %v2931_v38  ;;  %v2568_v29 = vmul.f32 %v5077_v1, %v2532_v12 }
 0x1b8   : > { %v2957_v54 = vor.u32 1.1754944e-38, %v2956_v8  ;;  %vm2955_vm0 = vcmp.eq.f32.partialorder %v2954_v49, 8.507059e+37 }
 0x1b9   : > { %v2933_v60 = vmul.f32 %v3957_v26, %v2932_v23  ;;  %v5365_v10 = vadd.f32 %v5086_v3, %v2568_v29  ;;  %v1755_v3 = vadd.f32 %v5281_v55, %v5098_v19  ;;  %v5381_v55 = vld [vmem:[%s5681_s3] ss:$0 sm:$0xff] }
 0x1ba   : > { %v1602_v42 = vpop.f32.mrf.mxu0 }
 0x1bb   : > { %v2934_v31 = vadd.f32 %v3957_v26, %v2933_v60  ;;  %v3657_v30 = vmul.f32 -1.442695, %v5365_v10  ;;  %v1732_v34 = vadd.f32 %v1731_v6, %v1602_v42 }
 0x1bc   : > { %v3959_v14 = vpop.eup %3958 }
 0x1bd   : > { %v2938_v1 = vsel %vm2937_vm5, %v3957_v26, %v2934_v31  ;;  %v2946_v52 = vmul.f32 %v3959_v14, %v2731_v17  ;;  %3960 = vpow2.f32 %v3657_v30  ;;  %v2533_v53 = vadd.f32 %v2475_v28, %v1732_v34 }
 0x1be   : > { %v2943_v2 = vsel %vm2940_vm12, %v2942_v25, %v2938_v1  ;;  %vm2951_vm13 = vweird.f32 %v3959_v14 }
 0x1bf   : > { %v3242_v37 = vmul.f32 %v2943_v2, %v5344_v5  ;;  %v2947_v39 = vsub.f32 1.0, %v2946_v52  ;;  %v2498_v15 = vpop.f32.mrf.mxu3  ;;  %v2569_v43 = vmul.f32 %v5374_v16, %v2533_v53  ;;  %vm2952_vm15 = vmor %vm2950_vm14, %vm2951_vm13 }
 0x1c0   : > { %v2542_v24 = vadd.f32 %v2498_v15, %v1755_v3  ;;  %v2478_v56 = vpop.f32.mrf.mxu2 }
 0x1c1   : > { %3274 = vst [vmem:[%s5155_s21 + $0x60] sm:$0xff] %v3242_v37  ;;  %v2948_v48 = vmul.f32 %v3959_v14, %v2947_v39  ;;  %v1734_v19 = vpop.f32.mrf.mxu1  ;;  %v5384_v5 = vadd.f32 %v5381_v55, %v2569_v43 }
 0x1c2   : > { %v2578_v46 = vmul.f32 %v5374_v16, %v2542_v24 }
 0x1c3   : > { %v3961_v4 = vpop.eup %3960  ;;  %v2949_v35 = vadd.f32 %v3959_v14, %v2948_v48  ;;  %v1605_v9 = vpop.f32.mrf.mxu0  ;;  %v3658_v59 = vmul.f32 -1.442695, %v5384_v5 }
 0x1c4   : > { %v2732_v62 = vadd.f32 1.0, %v3961_v4  ;;  %v5389_v45 = vadd.f32 %v5381_v55, %v2578_v46  ;;  %v1735_v63 = vadd.f32 %v1734_v19, %v1605_v9  ;;  %v1760_v46 = vadd.f32 %v5322_v44, %v5128_v36 }
 0x1c5   : > { %v2953_v18 = vsel %vm2952_vm15, %v3959_v14, %v2949_v35  ;;  %v1762_v36 = vadd.f32 %v5330_v40, %v5167_v13 }
 0x1c6   : > { %v2958_v27 = vsel %vm2955_vm0, %v2957_v54, %v2953_v18  ;;  %3962 = vrcp.f32 %v2732_v62  ;;  %v3667_v26 = vmul.f32 -1.442695, %v5389_v45  ;;  %v2534_v38 = vadd.f32 %v2478_v56, %v1735_v63 }
 0x1c7   : > { %v3243_v61 = vmul.f32 %v2958_v27, %v5353_v7  ;;  %3964 = vpow2.f32 %v3658_v59  ;;  %v2500_v17 = vpop.f32.mrf.mxu3  ;;  %v2969_v52 = vand.u32 2147483647, %v2732_v62  ;;  %v2971_v3 = vand.u32 2147483648, %v2732_v62 }
 0x1c8   : > { %v2543_v12 = vadd.f32 %v2500_v17, %v1757_v58  ;;  %3966 = vpow2.f32 %v3667_v26  ;;  %v2570_v29 = vmul.f32 %v5374_v16, %v2534_v38  ;;  %v2480_v31 = vpop.f32.mrf.mxu2  ;;  %vm2965_vm2 = vweird.f32 %v2732_v62 }
 0x1c9   : > { %3275 = vst [vmem:[%s5155_s21 + $0x68] sm:$0xff] %v3243_v61  ;;  %v1736_v23 = vpop.f32.mrf.mxu1  ;;  %v2972_v8 = vor.u32 1.1754944e-38, %v2971_v3  ;;  %vm2970_vm7 = vcmp.eq.f32.partialorder %v2969_v52, 8.507059e+37  ;;  %v5430_v38 = vadd.f32 %v5339_v20, %v5195_v11 }
 0x1ca   : > { %v2579_v22 = vmul.f32 %v5374_v16, %v2543_v12  ;;  %v5399_v50 = vadd.f32 %v5381_v55, %v2570_v29 }
 0x1cb   : > { %v1607_v60 = vpop.f32.mrf.mxu0 }
 0x1cc   : > { %v3963_v33 = vpop.eup %3962  ;;  %v5402_v21 = vadd.f32 %v5381_v55, %v2579_v22  ;;  %v1737_v7 = vadd.f32 %v1736_v23, %v1607_v60  ;;  %v3659_v30 = vmul.f32 -1.442695, %v5399_v50 }
 0x1cd   : > { %v3965_v6 = vpop.eup %3964  ;;  %v2961_v42 = vmul.f32 %v3963_v33, %v2732_v62  ;;  %vm2966_vm1 = vweird.f32 %v3963_v33 }
 0x1ce   : > { %v2733_v28 = vadd.f32 1.0, %v3965_v6  ;;  %v3668_v34 = vmul.f32 -1.442695, %v5402_v21  ;;  %v2535_v14 = vadd.f32 %v2480_v31, %v1737_v7  ;;  %v3967_v25 = vpop.eup %3966  ;;  %vm2967_vm6 = vmor %vm2965_vm2, %vm2966_vm1 }
 0x1cf   : > { %v2962_v1 = vsub.f32 1.0, %v2961_v42  ;;  %v5406_v53 = vadd.f32 1.0, %v3967_v25 }
 0x1d0   : > { %3968 = vrcp.f32 %v2733_v28  ;;  %v2571_v37 = vmul.f32 %v5374_v16, %v2535_v14  ;;  %v2984_v56 = vand.u32 2147483647, %v2733_v28  ;;  %v2986_v9 = vand.u32 2147483648, %v2733_v28 }
 0x1d1   : > { %v2963_v2 = vmul.f32 %v3963_v33, %v2962_v1  ;;  %3970 = vpow2.f32 %v3659_v30  ;;  %v3119_v58 = vand.u32 2147483647, %v5406_v53  ;;  %vm2980_vm9 = vweird.f32 %v2733_v28  ;;  %v2483_v7 = vpop.f32.mrf.mxu2 }
 0x1d2   : > { %3972 = vpow2.f32 %v3668_v34  ;;  %v5411_v15 = vadd.f32 %v5381_v55, %v2571_v37  ;;  %vm5433_vm10 = vcmp.eq.f32.partialorder %v2984_v56, 8.507059e+37  ;;  %v2987_v13 = vor.u32 1.1754944e-38, %v2986_v9 }
 0x1d3   : > { %v2964_v39 = vadd.f32 %v3963_v33, %v2963_v2  ;;  %3974 = vrcp.f32 %v5406_v53  ;;  %vm3115_vm11 = vweird.f32 %v5406_v53  ;;  %vm5438_vm3 = vcmp.eq.f32.partialorder %v3119_v58, 8.507059e+37 }
 0x1d4   : > { %v3660_v49 = vmul.f32 -1.442695, %v5411_v15 }
 0x1d5   : > { %v2968_v43 = vsel %vm2967_vm6, %v3963_v33, %v2964_v39 }
 0x1d6   : > { %v3969_v24 = vpop.eup %3968  ;;  %v2973_v48 = vsel %vm2970_vm7, %v2972_v8, %v2968_v43  ;;  %3976 = vpow2.f32 %v3660_v49 }
 0x1d7   : > { %v3971_v19 = vpop.eup %3970  ;;  %v3244_v4 = vmul.f32 %v2973_v48, %v5365_v10  ;;  %v2976_v35 = vmul.f32 %v3969_v24, %v2733_v28  ;;  %v3121_v10 = vand.u32 2147483648, %v5406_v53  ;;  %vm2981_vm8 = vweird.f32 %v3969_v24 }
 0x1d8   : > { %v3973_v54 = vpop.eup %3972  ;;  %v5417_v62 = vadd.f32 1.0, %v3971_v19  ;;  %v2503_v59 = vpop.f32.mrf.mxu3  ;;  %vm2982_vm4 = vmor %vm2980_vm9, %vm2981_vm8 }
 0x1d9   : > { %v3975_v63 = vpop.eup %3974  ;;  %3276 = vst [vmem:[%s5155_s21 + $0x70] sm:$0xff] %v3244_v4  ;;  %v2977_v18 = vsub.f32 1.0, %v2976_v35  ;;  %v5421_v27 = vadd.f32 1.0, %v3973_v54  ;;  %v2544_v61 = vadd.f32 %v2503_v59, %v1760_v46  ;;  %v1610_v26 = vpop.f32.mrf.mxu0  ;;  %v3122_v33 = vor.u32 1.1754944e-38, %v3121_v10 }
 0x1da   : > { %v3111_v44 = vmul.f32 %v3975_v63, %v5406_v53  ;;  %3978 = vrcp.f32 %v5417_v62  ;;  %v1739_v17 = vpop.f32.mrf.mxu1  ;;  %vm3116_vm5 = vweird.f32 %v3975_v63  ;;  %vm2995_vm12 = vweird.f32 %v5417_v62 }
 0x1db   : > { %v2978_v12 = vmul.f32 %v3969_v24, %v2977_v18  ;;  %3980 = vrcp.f32 %v5421_v27  ;;  %v2580_v11 = vmul.f32 %v5374_v16, %v2544_v61  ;;  %v1740_v6 = vadd.f32 %v1739_v17, %v1610_v26  ;;  %vm3117_vm13 = vmor %vm3115_vm11, %vm3116_vm5 }
 0x1dc   : > { %v3112_v40 = vsub.f32 1.0, %v3111_v44  ;;  %v3977_v20 = vpop.eup %3976  ;;  %v2999_v31 = vand.u32 2147483647, %v5417_v62  ;;  %v3001_v28 = vand.u32 2147483648, %v5417_v62  ;;  %vm3130_vm14 = vweird.f32 %v5421_v27 }
 0x1dd   : > { %v2979_v29 = vadd.f32 %v3969_v24, %v2978_v12  ;;  %v5446_v30 = vadd.f32 1.0, %v3977_v20  ;;  %v5451_v1 = vadd.f32 %v5381_v55, %v2580_v11  ;;  %v2536_v52 = vadd.f32 %v2483_v7, %v1740_v6 }
 0x1de   : > { %v3113_v60 = vmul.f32 %v3975_v63, %v3112_v40  ;;  %v3136_v48 = vand.u32 2147483648, %v5421_v27  ;;  %vm5466_vm15 = vcmp.eq.f32.partialorder %v2999_v31, 8.507059e+37  ;;  %v3002_v19 = vor.u32 1.1754944e-38, %v3001_v28 }
 0x1df   : > { %v2983_v42 = vsel %vm2982_vm4, %v3969_v24, %v2979_v29  ;;  %3982 = vrcp.f32 %v5446_v30  ;;  %v3134_v24 = vand.u32 2147483647, %v5421_v27  ;;  %v3669_v56 = vmul.f32 -1.442695, %v5451_v1 }
 0x1e0   : > { %v3979_v34 = vpop.eup %3978  ;;  %v2988_v14 = vsel %vm5433_vm10, %v2987_v13, %v2983_v42  ;;  %v3114_v25 = vadd.f32 %v3975_v63, %v3113_v60  ;;  %v2505_v3 = vpop.f32.mrf.mxu3  ;;  %v2572_v9 = vmul.f32 %v5374_v16, %v2536_v52  ;;  %v3137_v10 = vor.u32 1.1754944e-38, %v3136_v48 }
 0x1e1   : > { %v3981_v2 = vpop.eup %3980  ;;  %v3245_v37 = vmul.f32 %v2988_v14, %v5384_v5  ;;  %v2991_v39 = vmul.f32 %v3979_v34, %v5417_v62  ;;  %v1612_v46 = vpop.f32.mrf.mxu0  ;;  %vm2996_vm0 = vweird.f32 %v3979_v34  ;;  %3984 = vpow2.f32 %v3669_v56 }
 0x1e2   : > { %v3118_v8 = vsel %vm3117_vm13, %v3975_v63, %v3114_v25  ;;  %v3126_v43 = vmul.f32 %v3981_v2, %v5421_v27  ;;  %v1741_v4 = vpop.f32.mrf.mxu1  ;;  %vm3131_vm1 = vweird.f32 %v3981_v2  ;;  %v2545_v63 = vadd.f32 %v2505_v3, %v1762_v36  ;;  %vm2997_vm6 = vmor %vm2995_vm12, %vm2996_vm0  ;;  %v2485_v13 = vpop.f32.mrf.mxu2 }
 0x1e3   : > { %3277 = vst [vmem:[%s5155_s21 + $0x78] sm:$0xff] %v3245_v37  ;;  %v3123_v5 = vsel %vm5438_vm3, %v3122_v33, %v3118_v8  ;;  %v2992_v53 = vsub.f32 1.0, %v2991_v39  ;;  %v5475_v58 = vadd.f32 %v5381_v55, %v2572_v9  ;;  %v1742_v61 = vadd.f32 %v1741_v4, %v1612_v46  ;;  %vm3132_vm7 = vmor %vm3130_vm14, %vm3131_vm1 }
 0x1e4   : > { %v3254_v35 = vmul.f32 %v3123_v5, %v5389_v45  ;;  %v3127_v54 = vsub.f32 1.0, %v3126_v43  ;;  %vm5477_vm2 = vcmp.eq.f32.partialorder %v3134_v24, 8.507059e+37  ;;  %v2581_v17 = vmul.f32 %v5374_v16, %v2545_v63 }
 0x1e5   : > { %v2993_v59 = vmul.f32 %v3979_v34, %v2992_v53  ;;  %v3983_v26 = vpop.eup %3982  ;;  %v3014_v23 = vand.u32 2147483647, %v5446_v30  ;;  %v3661_v40 = vmul.f32 -1.442695, %v5475_v58  ;;  %v3016_v22 = vand.u32 2147483648, %v5446_v30 }
 0x1e6   : > { %3286 = vst [vmem:[%s5155_s21 + $0xc0] sm:$0xff] %v3254_v35  ;;  %v3128_v18 = vmul.f32 %v3981_v2, %v3127_v54  ;;  %v3006_v12 = vmul.f32 %v3983_v26, %v5446_v30  ;;  %v5492_v11 = vadd.f32 %v5381_v55, %v2581_v17  ;;  %v2537_v62 = vadd.f32 %v2485_v13, %v1742_v61 }
 0x1e7   : > { %v2994_v44 = vadd.f32 %v3979_v34, %v2993_v59  ;;  %3986 = vpow2.f32 %v3661_v40  ;;  %v3985_v28 = vpop.eup %3984  ;;  %vm3011_vm8 = vweird.f32 %v3983_v26  ;;  %vm3010_vm9 = vweird.f32 %v5446_v30 }
 0x1e8   : > { %v3129_v36 = vadd.f32 %v3981_v2, %v3128_v18  ;;  %v3007_v7 = vsub.f32 1.0, %v3006_v12  ;;  %v3670_v42 = vmul.f32 -1.442695, %v5492_v11  ;;  %v2573_v31 = vmul.f32 %v5374_v16, %v2537_v62  ;;  %vm3012_vm10 = vmor %vm3010_vm9, %vm3011_vm8 }
 0x1e9   : > { %v2998_v29 = vsel %vm2997_vm6, %v3979_v34, %v2994_v44  ;;  %v2508_v20 = vpop.f32.mrf.mxu3  ;;  %v5504_v52 = vadd.f32 1.0, %v3985_v28  ;;  %v3017_v37 = vor.u32 1.1754944e-38, %v3016_v22  ;;  %vm3015_vm11 = vcmp.eq.f32.partialorder %v3014_v23, 8.507059e+37 }
 0x1ea   : > { %v3003_v60 = vsel %vm5466_vm15, %v3002_v19, %v2998_v29  ;;  %v3133_v33 = vsel %vm3132_vm7, %v3981_v2, %v3129_v36  ;;  %v3008_v14 = vmul.f32 %v3983_v26, %v3007_v7  ;;  %v2546_v25 = vadd.f32 %v2508_v20, %v5430_v38  ;;  %v2488_v9 = vpop.f32.mrf.mxu2 }
 0x1eb   : > { %v3246_v6 = vmul.f32 %v3003_v60, %v5399_v50  ;;  %v3138_v27 = vsel %vm5477_vm2, %v3137_v10, %v3133_v33  ;;  %3988 = vpow2.f32 %v3670_v42  ;;  %v5507_v50 = vadd.f32 %v5381_v55, %v2573_v31  ;;  %v1744_v48 = vpop.f32.mrf.mxu1 }
 0x1ec   : > { %v3255_v34 = vmul.f32 %v3138_v27, %v5402_v21  ;;  %v3009_v3 = vadd.f32 %v3983_v26, %v3008_v14  ;;  %v2582_v2 = vmul.f32 %v5374_v16, %v2546_v25  ;;  %v1767_v21 = vadd.f32 %v5348_v41, %v5214_v57 }
 0x1ed   : > { %3278 = vst [vmem:[%s5155_s21 + $0x80] sm:$0xff] %v3246_v6  ;;  %3990 = vrcp.f32 %v5504_v52  ;;  %v3987_v38 = vpop.eup %3986  ;;  %v3662_v8 = vmul.f32 -1.442695, %v5507_v50  ;;  %v3149_v46 = vand.u32 2147483647, %v5504_v52  ;;  %v3151_v4 = vand.u32 2147483648, %v5504_v52 }
 0x1ee   : > { %3287 = vst [vmem:[%s5155_s21 + $0xc8] sm:$0xff] %v3255_v34  ;;  %v3013_v39 = vsel %vm3012_vm10, %v3983_v26, %v3009_v3  ;;  %v5517_v43 = vadd.f32 %v5381_v55, %v2582_v2  ;;  %v5519_v30 = vadd.f32 1.0, %v3987_v38  ;;  %v1770_v63 = vadd.f32 %v5357_v47, %v5238_v51 }
 0x1ef   : > { %v3018_v24 = vsel %vm3015_vm11, %v3017_v37, %v3013_v39  ;;  %3992 = vpow2.f32 %v3662_v8  ;;  %v5536_v18 = vadd.f32 %v5361_v32, %v5270_v0  ;;  %vm3145_vm3 = vweird.f32 %v5504_v52 }
 0x1f0   : > { %v3247_v57 = vmul.f32 %v3018_v24, %v5411_v15  ;;  %v3671_v41 = vmul.f32 -1.442695, %v5517_v43  ;;  %3994 = vrcp.f32 %v5519_v30  ;;  %vm5542_vm4 = vcmp.eq.f32.partialorder %v3149_v46, 8.507059e+37 }
 0x1f1   : > { %v2510_v5 = vpop.f32.mrf.mxu3  ;;  %v3989_v19 = vpop.eup %3988  ;;  %v3152_v17 = vor.u32 1.1754944e-38, %v3151_v4  ;;  %v3029_v51 = vand.u32 2147483647, %v5519_v30  ;;  %v3031_v47 = vand.u32 2147483648, %v5519_v30  ;;  %vm3025_vm12 = vweird.f32 %v5519_v30 }
 0x1f2   : > { %v2547_v53 = vadd.f32 %v2510_v5, %v1767_v21  ;;  %v1615_v49 = vpop.f32.mrf.mxu0  ;;  %3279 = vst [vmem:[%s5155_s21 + $0x88] sm:$0xff] %v3247_v57  ;;  %v5527_v35 = vadd.f32 1.0, %v3989_v19  ;;  %3996 = vpow2.f32 %v3671_v41  ;;  %v2490_v2 = vpop.f32.mrf.mxu2 }
 0x1f3   : > { %v1745_v56 = vadd.f32 %v1744_v48, %v1615_v49  ;;  %v3991_v15 = vpop.eup %3990  ;;  %v1746_v20 = vpop.f32.mrf.mxu1  ;;  %vm5561_vm14 = vcmp.eq.f32.partialorder %v3029_v51, 8.507059e+37  ;;  %v3032_v42 = vor.u32 1.1754944e-38, %v3031_v47 }
 0x1f4   : > { %v2583_v54 = vmul.f32 %v5374_v16, %v2547_v53  ;;  %v3141_v59 = vmul.f32 %v3991_v15, %v5504_v52  ;;  %3998 = vrcp.f32 %v5527_v35  ;;  %vm3146_vm5 = vweird.f32 %v3991_v15 }
 0x1f5   : > { %v2538_v26 = vadd.f32 %v2488_v9, %v1745_v56  ;;  %v3993_v44 = vpop.eup %3992  ;;  %v3164_v29 = vand.u32 2147483647, %v5527_v35  ;;  %v3166_v22 = vand.u32 2147483648, %v5527_v35  ;;  %vm3147_vm13 = vmor %vm3145_vm3, %vm3146_vm5  ;;  %vm3160_vm15 = vweird.f32 %v5527_v35 }
 0x1f6   : > { %v5539_v61 = vadd.f32 %v5381_v55, %v2583_v54  ;;  %v3142_v45 = vsub.f32 1.0, %v3141_v59  ;;  %v3995_v36 = vpop.eup %3994  ;;  %v5548_v0 = vadd.f32 1.0, %v3993_v44 }
 0x1f7   : > { %v3021_v13 = vmul.f32 %v3995_v36, %v5519_v30  ;;  %v2574_v62 = vmul.f32 %v5374_v16, %v2538_v26  ;;  %vm3026_vm0 = vweird.f32 %v3995_v36  ;;  %vm5570_vm1 = vcmp.eq.f32.partialorder %v3164_v29, 8.507059e+37 }
 0x1f8   : > { %v3672_v32 = vmul.f32 -1.442695, %v5539_v61  ;;  %v3997_v12 = vpop.eup %3996  ;;  %v3143_v23 = vmul.f32 %v3991_v15, %v3142_v45  ;;  %4000 = vrcp.f32 %v5548_v0  ;;  %v3167_v3 = vor.u32 1.1754944e-38, %v3166_v22  ;;  %vm3027_vm6 = vmor %vm3025_vm12, %vm3026_vm0 }
 0x1f9   : > { %v3022_v7 = vsub.f32 1.0, %v3021_v13  ;;  %v5557_v6 = vadd.f32 1.0, %v3997_v12  ;;  %vm3040_vm2 = vweird.f32 %v5548_v0  ;;  %v5577_v39 = vadd.f32 %v5381_v55, %v2574_v62 }
 0x1fa   : > { %v1617_v40 = vpop.f32.mrf.mxu0  ;;  %v3999_v60 = vpop.eup %3998  ;;  %v3144_v33 = vadd.f32 %v3991_v15, %v3143_v23  ;;  %4002 = vpow2.f32 %v3672_v32  ;;  %v3044_v5 = vand.u32 2147483647, %v5548_v0  ;;  %v3046_v49 = vand.u32 2147483648, %v5548_v0 }
 0x1fb   : > { %v3156_v31 = vmul.f32 %v3999_v60, %v5527_v35  ;;  %v3023_v34 = vmul.f32 %v3995_v36, %v3022_v7  ;;  %4004 = vrcp.f32 %v5557_v6  ;;  %v1747_v8 = vadd.f32 %v1746_v20, %v1617_v40 }
 0x1fc   : > { %v3148_v28 = vsel %vm3147_vm13, %v3991_v15, %v3144_v33  ;;  %vm3161_vm7 = vweird.f32 %v3999_v60  ;;  %v3663_v19 = vmul.f32 -1.442695, %v5577_v39  ;;  %vm5595_vm9 = vcmp.eq.f32.partialorder %v3044_v5, 8.507059e+37 }
 0x1fd   : > { %v3153_v14 = vsel %vm5542_vm4, %v3152_v17, %v3148_v28  ;;  %v3157_v25 = vsub.f32 1.0, %v3156_v31  ;;  %v3024_v38 = vadd.f32 %v3995_v36, %v3023_v34  ;;  %v2539_v54 = vadd.f32 %v2490_v2, %v1747_v8  ;;  %vm3162_vm8 = vmor %vm3160_vm15, %vm3161_vm7 }
 0x1fe   : > { %v3256_v37 = vmul.f32 %v3153_v14, %v5451_v1  ;;  %v4001_v24 = vpop.eup %4000  ;;  %4006 = vpow2.f32 %v3663_v19  ;;  %v3047_v17 = vor.u32 1.1754944e-38, %v3046_v49  ;;  %vm3175_vm11 = vweird.f32 %v5557_v6 }
 0x1ff   : > { %v2513_v21 = vpop.f32.mrf.mxu3  ;;  %v3158_v48 = vmul.f32 %v3999_v60, %v3157_v25  ;;  %v3028_v53 = vsel %vm3027_vm6, %v3995_v36, %v3024_v38  ;;  %v3036_v1 = vmul.f32 %v4001_v24, %v5548_v0  ;;  %vm3041_vm10 = vweird.f32 %v4001_v24 }
 0x200   : > { %v2548_v57 = vadd.f32 %v2513_v21, %v1770_v63  ;;  %v4003_v41 = vpop.eup %4002  ;;  %3288 = vst [vmem:[%s5155_s21 + $0xd0] sm:$0xff] %v3256_v37  ;;  %v3033_v46 = vsel %vm5561_vm14, %v3032_v42, %v3028_v53  ;;  %v2575_v47 = vmul.f32 %v5374_v16, %v2539_v54  ;;  %v2493_v32 = vpop.f32.mrf.mxu2  ;;  %v3181_v13 = vand.u32 2147483648, %v5557_v6  ;;  %vm3042_vm3 = vmor %vm3040_vm2, %vm3041_vm10 }
 0x201   : > { %v3159_v30 = vadd.f32 %v3999_v60, %v3158_v48  ;;  %v5588_v4 = vadd.f32 1.0, %v4003_v41  ;;  %v1749_v56 = vpop.f32.mrf.mxu1  ;;  %v4005_v9 = vpop.eup %4004  ;;  %v3248_v59 = vmul.f32 %v3033_v46, %v5475_v58  ;;  %v3037_v63 = vsub.f32 1.0, %v3036_v1 }
 0x202   : > { %v2584_v26 = vmul.f32 %v5374_v16, %v2548_v57  ;;  %v3171_v10 = vmul.f32 %v4005_v9, %v5557_v6  ;;  %vm3176_vm4 = vweird.f32 %v4005_v9  ;;  %v5616_v62 = vadd.f32 %v5381_v55, %v2575_v47 }
 0x203   : > { %v1620_v15 = vpop.f32.mrf.mxu0  ;;  %v3163_v44 = vsel %vm3162_vm8, %v3999_v60, %v3159_v30  ;;  %4008 = vrcp.f32 %v5588_v4  ;;  %3280 = vst [vmem:[%s5155_s21 + $0x90] sm:$0xff] %v3248_v59  ;;  %v3038_v35 = vmul.f32 %v4001_v24, %v3037_v63  ;;  %vm3177_vm5 = vmor %vm3175_vm11, %vm3176_vm4  ;;  %v3182_v25 = vor.u32 1.1754944e-38, %v3181_v13 }
 0x204   : > { %v3168_v58 = vsel %vm5570_vm1, %v3167_v3, %v3163_v44  ;;  %v3172_v51 = vsub.f32 1.0, %v3171_v10  ;;  %v5609_v40 = vadd.f32 %v5381_v55, %v2584_v26  ;;  %v1750_v29 = vadd.f32 %v1749_v56, %v1620_v15  ;;  %v4007_v20 = vpop.eup %4006 }
 0x205   : > { %v3257_v36 = vmul.f32 %v3168_v58, %v5492_v11  ;;  %v3039_v23 = vadd.f32 %v4001_v24, %v3038_v35  ;;  %v3179_v11 = vand.u32 2147483647, %v5557_v6  ;;  %v5622_v28 = vadd.f32 1.0, %v4007_v20 }
 0x206   : > { %v3173_v22 = vmul.f32 %v4005_v9, %v3172_v51  ;;  %v3673_v33 = vmul.f32 -1.442695, %v5609_v40  ;;  %v2540_v7 = vadd.f32 %v2493_v32, %v1750_v29  ;;  %v3664_v34 = vmul.f32 -1.442695, %v5616_v62 }
 0x207   : > { %v2515_v12 = vpop.f32.mrf.mxu3  ;;  %3289 = vst [vmem:[%s5155_s21 + $0xd8] sm:$0xff] %v3257_v36  ;;  %v3043_v60 = vsel %vm3042_vm3, %v4001_v24, %v3039_v23  ;;  %vm3180_vm12 = vcmp.eq.f32.partialorder %v3179_v11, 8.507059e+37  ;;  %v3194_v38 = vand.u32 2147483647, %v5588_v4  ;;  %v3196_v6 = vand.u32 2147483648, %v5588_v4 }
 0x208   : > { %v2549_v27 = vadd.f32 %v2515_v12, %v5536_v18  ;;  %v3048_v0 = vsel %vm5595_vm9, %v3047_v17, %v3043_v60  ;;  %v3174_v31 = vadd.f32 %v4005_v9, %v3173_v22  ;;  %4010 = vpow2.f32 %v3673_v33  ;;  %v2495_v41 = vpop.f32.mrf.mxu2 }
 0x209   : > { %v4009_v42 = vpop.eup %4008  ;;  %v3249_v14 = vmul.f32 %v3048_v0, %v5507_v50  ;;  %4012 = vrcp.f32 %v5622_v28  ;;  %v1751_v3 = vpop.f32.mrf.mxu1  ;;  %v2576_v8 = vmul.f32 %v5374_v16, %v2540_v7  ;;  %vm3190_vm14 = vweird.f32 %v5588_v4 }
 0x20a   : > { %v3186_v52 = vmul.f32 %v4009_v42, %v5588_v4  ;;  %v3178_v18 = vsel %vm3177_vm5, %v4005_v9, %v3174_v31  ;;  %4014 = vpow2.f32 %v3664_v34  ;;  %v2585_v24 = vmul.f32 %v5374_v16, %v2549_v27 }
 0x20b   : > { %v1622_v2 = vpop.f32.mrf.mxu0  ;;  %3281 = vst [vmem:[%s5155_s21 + $0x98] sm:$0xff] %v3249_v14  ;;  %v3183_v21 = vsel %vm3180_vm12, %v3182_v25, %v3178_v18  ;;  %vm3191_vm13 = vweird.f32 %v4009_v42  ;;  %v5638_v57 = vadd.f32 %v5381_v55, %v2576_v8  ;;  %vm3195_vm0 = vcmp.eq.f32.partialorder %v3194_v38, 8.507059e+37 }
 0x20c   : > { %v3187_v37 = vsub.f32 1.0, %v3186_v52  ;;  %v3258_v50 = vmul.f32 %v3183_v21, %v5517_v43  ;;  %v1752_v5 = vadd.f32 %v1751_v3, %v1622_v2  ;;  %v5641_v53 = vadd.f32 %v5381_v55, %v2585_v24  ;;  %vm3192_vm15 = vmor %vm3190_vm14, %vm3191_vm13 }
 0x20d   : > { %v3197_v46 = vor.u32 1.1754944e-38, %v3196_v6  ;;  %v3665_v9 = vmul.f32 -1.442695, %v5638_v57  ;;  %v3061_v10 = vand.u32 2147483648, %v5622_v28  ;;  %v3059_v35 = vand.u32 2147483647, %v5622_v28 }
 0x20e   : > { %v3188_v48 = vmul.f32 %v4009_v42, %v3187_v37  ;;  %3290 = vst [vmem:[%s5155_s21 + $0xe0] sm:$0xff] %v3258_v50  ;;  %v4011_v1 = vpop.eup %4010  ;;  %v2541_v43 = vadd.f32 %v2495_v41, %v1752_v5  ;;  %v3674_v59 = vmul.f32 -1.442695, %v5641_v53  ;;  %vm3055_vm2 = vweird.f32 %v5622_v28 }
 0x20f   : > { %v4013_v19 = vpop.eup %4012  ;;  %v2748_v30 = vadd.f32 1.0, %v4011_v1  ;;  %vm3060_vm7 = vcmp.eq.f32.partialorder %v3059_v35, 8.507059e+37 }
 0x210   : > { %v3189_v49 = vadd.f32 %v4009_v42, %v3188_v48  ;;  %v4015_v54 = vpop.eup %4014  ;;  %v3051_v15 = vmul.f32 %v4013_v19, %v5622_v28  ;;  %v2577_v4 = vmul.f32 %v5374_v16, %v2541_v43  ;;  %vm3056_vm1 = vweird.f32 %v4013_v19 }
 0x211   : > { %v2739_v26 = vadd.f32 1.0, %v4015_v54  ;;  %4016 = vrcp.f32 %v2748_v30  ;;  %vm3057_vm6 = vmor %vm3055_vm2, %vm3056_vm1  ;;  %v3209_v20 = vand.u32 2147483647, %v2748_v30  ;;  %v3211_v60 = vand.u32 2147483648, %v2748_v30 }
 0x212   : > { %v3193_v56 = vsel %vm3192_vm15, %v4009_v42, %v3189_v49  ;;  %v3052_v45 = vsub.f32 1.0, %v3051_v15  ;;  %v5653_v17 = vadd.f32 %v5381_v55, %v2577_v4  ;;  %vm3205_vm9 = vweird.f32 %v2748_v30 }
 0x213   : > { %v3198_v63 = vsel %vm3195_vm0, %v3197_v46, %v3193_v56  ;;  %4018 = vrcp.f32 %v2739_v26  ;;  %v3074_v0 = vand.u32 2147483647, %v2739_v26  ;;  %v3076_v31 = vand.u32 2147483648, %v2739_v26 }
 0x214   : > { %v3259_v44 = vmul.f32 %v3198_v63, %v5539_v61  ;;  %v3053_v58 = vmul.f32 %v4013_v19, %v3052_v45  ;;  %4020 = vpow2.f32 %v3665_v9  ;;  %v3062_v61 = vor.u32 1.1754944e-38, %v3061_v10 }
 0x215   : > { %4022 = vpow2.f32 %v3674_v59  ;;  %v3666_v51 = vmul.f32 -1.442695, %v5653_v17  ;;  %vm3070_vm11 = vweird.f32 %v2739_v26  ;;  %v3212_v14 = vor.u32 1.1754944e-38, %v3211_v60 }
 0x216   : > { %3291 = vst [vmem:[%s5155_s21 + $0xe8] sm:$0xff] %v3259_v44  ;;  %v3054_v36 = vadd.f32 %v4013_v19, %v3053_v58  ;;  %vm3210_vm4 = vcmp.eq.f32.partialorder %v3209_v20, 8.507059e+37  ;;  %v3077_v3 = vor.u32 1.1754944e-38, %v3076_v31  ;;  %vm3075_vm12 = vcmp.eq.f32.partialorder %v3074_v0, 8.507059e+37 }
 0x217   : > { %v4017_v16 = vpop.eup %4016  ;;  %4024 = vpow2.f32 %v3666_v51 }
 0x218   : > { %v3058_v47 = vsel %vm3057_vm6, %v4013_v19, %v3054_v36  ;;  %v3201_v32 = vmul.f32 %v4017_v16, %v2748_v30  ;;  %vm3206_vm8 = vweird.f32 %v4017_v16 }
 0x219   : > { %v4019_v12 = vpop.eup %4018  ;;  %v3063_v23 = vsel %vm3060_vm7, %v3062_v61, %v3058_v47  ;;  %vm3207_vm3 = vmor %vm3205_vm9, %vm3206_vm8 }
 0x21a   : > { %v4021_v13 = vpop.eup %4020  ;;  %v3250_v29 = vmul.f32 %v3063_v23, %v5577_v39  ;;  %v3066_v55 = vmul.f32 %v4019_v12, %v2739_v26  ;;  %v3202_v22 = vsub.f32 1.0, %v3201_v32  ;;  %vm3071_vm10 = vweird.f32 %v4019_v12 }
 0x21b   : > { %v4023_v11 = vpop.eup %4022  ;;  %v2740_v33 = vadd.f32 1.0, %v4021_v13  ;;  %vm3072_vm5 = vmor %vm3070_vm11, %vm3071_vm10 }
 0x21c   : > { %3282 = vst [vmem:[%s5155_s21 + $0xa0] sm:$0xff] %v3250_v29  ;;  %v3067_v7 = vsub.f32 1.0, %v3066_v55  ;;  %v3203_v27 = vmul.f32 %v4017_v16, %v3202_v22  ;;  %v2749_v42 = vadd.f32 1.0, %v4023_v11 }
 0x21d   : > { %4026 = vrcp.f32 %v2740_v33  ;;  %v4025_v39 = vpop.eup %4024  ;;  %v3089_v41 = vand.u32 2147483647, %v2740_v33  ;;  %v3091_v1 = vand.u32 2147483648, %v2740_v33  ;;  %vm3085_vm15 = vweird.f32 %v2740_v33 }
 0x21e   : > { %v3068_v28 = vmul.f32 %v4019_v12, %v3067_v7  ;;  %v3204_v34 = vadd.f32 %v4017_v16, %v3203_v27  ;;  %4028 = vrcp.f32 %v2749_v42  ;;  %v2741_v18 = vadd.f32 1.0, %v4025_v39 }
 0x21f   : > { %v3224_v43 = vand.u32 2147483647, %v2749_v42  ;;  %v3226_v30 = vand.u32 2147483648, %v2749_v42  ;;  %vm3090_vm0 = vcmp.eq.f32.partialorder %v3089_v41, 8.507059e+37  ;;  %vm3220_vm1 = vweird.f32 %v2749_v42 }
 0x220   : > { %v3069_v25 = vadd.f32 %v4019_v12, %v3068_v28  ;;  %v3208_v52 = vsel %vm3207_vm3, %v4017_v16, %v3204_v34  ;;  %4030 = vrcp.f32 %v2741_v18  ;;  %v3104_v26 = vand.u32 2147483647, %v2741_v18 }
 0x221   : > { %v3213_v2 = vsel %vm3210_vm4, %v3212_v14, %v3208_v52  ;;  %vm3225_vm6 = vcmp.eq.f32.partialorder %v3224_v43, 8.507059e+37  ;;  %v3227_v63 = vor.u32 1.1754944e-38, %v3226_v30  ;;  %v3106_v4 = vand.u32 2147483648, %v2741_v18 }
 0x222   : > { %v3073_v21 = vsel %vm3072_vm5, %v4019_v12, %v3069_v25  ;;  %v3260_v37 = vmul.f32 %v3213_v2, %v5609_v40  ;;  %vm3100_vm9 = vweird.f32 %v2741_v18  ;;  %vm3105_vm11 = vcmp.eq.f32.partialorder %v3104_v26, 8.507059e+37 }
 0x223   : > { %v4027_v38 = vpop.eup %4026  ;;  %v3078_v50 = vsel %vm3075_vm12, %v3077_v3, %v3073_v21  ;;  %v3107_v61 = vor.u32 1.1754944e-38, %v3106_v4 }
 0x224   : > { %v4029_v6 = vpop.eup %4028  ;;  %v3251_v8 = vmul.f32 %v3078_v50, %v5616_v62  ;;  %3292 = vst [vmem:[%s5155_s21 + $0xf0] sm:$0xff] %v3260_v37  ;;  %v3081_v24 = vmul.f32 %v4027_v38, %v2740_v33  ;;  %vm3086_vm13 = vweird.f32 %v4027_v38  ;;  %v3092_v62 = vor.u32 1.1754944e-38, %v3091_v1 }
 0x225   : > { %v3216_v48 = vmul.f32 %v4029_v6, %v2749_v42  ;;  %vm3221_vm14 = vweird.f32 %v4029_v6  ;;  %vm3087_vm2 = vmor %vm3085_vm15, %vm3086_vm13 }
 0x226   : > { %3283 = vst [vmem:[%s5155_s21 + $0xa8] sm:$0xff] %v3251_v8  ;;  %v3082_v5 = vsub.f32 1.0, %v3081_v24  ;;  %v4031_v19 = vpop.eup %4030  ;;  %vm3222_vm7 = vmor %vm3220_vm1, %vm3221_vm14 }
 0x227   : > { %v3217_v49 = vsub.f32 1.0, %v3216_v48  ;;  %v3096_v54 = vmul.f32 %v4031_v19, %v2741_v18  ;;  %vm3101_vm8 = vweird.f32 %v4031_v19 }
 0x228   : > { %v3083_v46 = vmul.f32 %v4027_v38, %v3082_v5  ;;  %vm3102_vm10 = vmor %vm3100_vm9, %vm3101_vm8 }
 0x229   : > { %v3218_v40 = vmul.f32 %v4029_v6, %v3217_v49  ;;  %v3097_v9 = vsub.f32 1.0, %v3096_v54 }
 0x22a   : > { %v3084_v56 = vadd.f32 %v4027_v38, %v3083_v46 }
 0x22b   : > { %v3219_v15 = vadd.f32 %v4029_v6, %v3218_v40  ;;  %v3098_v10 = vmul.f32 %v4031_v19, %v3097_v9 }
 0x22c   : > { %v3088_v59 = vsel %vm3087_vm2, %v4027_v38, %v3084_v56 }
 0x22d   : > { %v3093_v44 = vsel %vm3090_vm0, %v3092_v62, %v3088_v59  ;;  %v3223_v45 = vsel %vm3222_vm7, %v4029_v6, %v3219_v15  ;;  %v3099_v16 = vadd.f32 %v4031_v19, %v3098_v10 }
 0x22e   : > { %v3252_v58 = vmul.f32 %v3093_v44, %v5638_v57  ;;  %v3228_v35 = vsel %vm3225_vm6, %v3227_v63, %v3223_v45 }
 0x22f   : > { %v3261_v36 = vmul.f32 %v3228_v35, %v5641_v53  ;;  %v3103_v51 = vsel %vm3102_vm10, %v4031_v19, %v3099_v16 }
 0x230   : > { %3284 = vst [vmem:[%s5155_s21 + $0xb0] sm:$0xff] %v3252_v58  ;;  %v3108_v47 = vsel %vm3105_vm11, %v3107_v61, %v3103_v51 }
 0x231   : > { %3293 = vst [vmem:[%s5155_s21 + $0xf8] sm:$0xff] %v3261_v36  ;;  %v3253_v32 = vmul.f32 %v3108_v47, %v5653_v17 }
 0x233   : > { %3285 = vst [vmem:[%s5155_s21 + $0xb8] sm:$0xff] %v3253_v32 }
 0x234 PF: > { %s14_s17 = sadd.s32 1, %s4137_s17   ;;  %s5701_s15 = smov %s4133_s16 }
 0x235   : > { %p11_p5 = scmp.ge.s32.totalorder %s14_s17, 4   ;;  %s5702_s16 = smov %s5704_s18 }
 0x237   :  { %13 = sbr.rel (!%p11_p5) target bundleno = 2 (0x2), region = 80 }

</bundles_post_ra>
